<compile_context>
chip_gen: v6e
topology: v6e:2x2x1
jax: 0.10.0
libtpu: 0.0.40
codegen_flags: <defaults>
</compile_context>

<pallas_src>
import functools

import jax
import jax.numpy as jnp
from jax import lax
from jax.experimental import pallas as pl
from jax.experimental.pallas import tpu as pltpu


def cnn_lstm_ae_kernel(x_ref,
                       wce_ref, bce_ref,              # conv encoder: (K, D, D), (1, D)
                       wihe_ref, whhe_ref, be_ref,    # lstm encoder: (4, D, H), (4, H, H), (4, 1, H)
                       wihd_ref, whhd_ref, bd_ref,    # lstm decoder: (4, H, D), (4, D, D), (4, 1, D)
                       wcd_ref, bcd_ref,              # conv decoder: (K, D, D), (1, D)
                       out_ref,
                       pad_ref, xg_ref,               # VMEM scratch
                       *, T, Bb, D, H, K, mm_dtype):
    pad = K // 2
    rows = T * Bb
    f32 = jnp.float32

    # ---- zero only the 2*pad edge rows of the shared padding buffer ----
    # (done unconditionally each grid step: correct even when the grid is sharded
    #  across TensorCores; the interior is fully overwritten below)
    zeros_edge = jnp.zeros((pad * Bb, D), f32)
    pad_ref[pl.ds(0, pad * Bb), :] = zeros_edge
    pad_ref[pl.ds((pad + T) * Bb, pad * Bb), :] = zeros_edge

    def conv1d(w_ref, b_ref):
        # "same" conv over time of whatever sits in pad_ref's interior; each tap
        # is a static time-shifted (rows, D) slab -> one matmul per tap, M = rows.
        acc = jnp.dot(pad_ref[pl.ds(0, rows), :].astype(mm_dtype),
                      w_ref[0].astype(mm_dtype), preferred_element_type=f32)
        for k in range(1, K):
            acc = acc + jnp.dot(pad_ref[pl.ds(k * Bb, rows), :].astype(mm_dtype),
                                w_ref[k].astype(mm_dtype), preferred_element_type=f32)
        return acc + b_ref[...].astype(f32)            # (rows, D) + (1, D)

    def lstm_cell(gi, gf, gg, go, c):                  # gate order: i, f, g, o
        c_new = jax.nn.sigmoid(gf) * c + jax.nn.sigmoid(gi) * jnp.tanh(gg)
        h_new = jax.nn.sigmoid(go) * jnp.tanh(c_new)
        return h_new, c_new

    # ---- CNN encoder ----
    pad_ref[pl.ds(pad * Bb, rows), :] = x_ref[...].astype(f32)
    xe = conv1d(wce_ref, bce_ref)                      # (rows, D), f32

    # ---- LSTM encoder: input projection hoisted out of the recurrence ----
    xe_mm = xe.astype(mm_dtype)
    for g in range(4):
        xg_ref[g] = (jnp.dot(xe_mm, wihe_ref[g].astype(mm_dtype),
                             preferred_element_type=f32)
                     + be_ref[g].astype(f32))          # (rows, H), lane-aligned per gate

    whh_e = [whhe_ref[g].astype(mm_dtype) for g in range(4)]   # hoisted weight loads

    def enc_step(t, carry):
        h, c = carry                                   # (Bb, H) f32
        hm = h.astype(mm_dtype)
        r0 = t * Bb
        gi = xg_ref[0, pl.ds(r0, Bb), :] + jnp.dot(hm, whh_e[0], preferred_element_type=f32)
        gf = xg_ref[1, pl.ds(r0, Bb), :] + jnp.dot(hm, whh_e[1], preferred_element_type=f32)
        gg = xg_ref[2, pl.ds(r0, Bb), :] + jnp.dot(hm, whh_e[2], preferred_element_type=f32)
        go = xg_ref[3, pl.ds(r0, Bb), :] + jnp.dot(hm, whh_e[3], preferred_element_type=f32)
        return lstm_cell(gi, gf, gg, go, c)

    h0 = jnp.zeros((Bb, H), f32)
    c0 = jnp.zeros((Bb, H), f32)
    h_enc, _ = lax.fori_loop(0, T, enc_step, (h0, c0), unroll=True)

    # ---- LSTM decoder: same input (h_enc) every step -> input gates hoisted ----
    h_enc_mm = h_enc.astype(mm_dtype)
    din = [jnp.dot(h_enc_mm, wihd_ref[g].astype(mm_dtype), preferred_element_type=f32)
           + bd_ref[g].astype(f32) for g in range(4)]  # each (Bb, D), time-invariant
    whh_d = [whhd_ref[g].astype(mm_dtype) for g in range(4)]

    def dec_step(t, carry):
        h, c = carry                                   # (Bb, D) f32
        hm = h.astype(mm_dtype)
        gi = din[0] + jnp.dot(hm, whh_d[0], preferred_element_type=f32)
        gf = din[1] + jnp.dot(hm, whh_d[1], preferred_element_type=f32)
        gg = din[2] + jnp.dot(hm, whh_d[2], preferred_element_type=f32)
        go = din[3] + jnp.dot(hm, whh_d[3], preferred_element_type=f32)
        h_new, c_new = lstm_cell(gi, gf, gg, go, c)
        # decoder hidden goes straight into the conv padding buffer's interior
        pad_ref[pl.ds((pad + t) * Bb, Bb), :] = h_new
        return (h_new, c_new)

    hd0 = jnp.zeros((Bb, D), f32)
    cd0 = jnp.zeros((Bb, D), f32)
    lax.fori_loop(0, T, dec_step, (hd0, cd0), unroll=True)

    # ---- CNN decoder ----
    out_ref[...] = conv1d(wcd_ref, bcd_ref).astype(out_ref.dtype)


def cnn_lstm_ae(x, params, *, block_b=None, matmul_dtype=jnp.float32):
    B, T, D = x.shape
    H = params["wihe"].shape[1] // 4
    K = params["wce"].shape[0]
    pad = K // 2

    if block_b is None:
        block_b = B if B <= 128 else 128
    Bb = block_b
    nb = -(-B // Bb)
    Bpad = nb * Bb
    if Bpad != B:  # pad batch to a multiple of the block (rows are independent)
        x = jnp.concatenate([x, jnp.zeros((Bpad - B, T, D), x.dtype)], axis=0)

    # layout plumbing: (Bpad, T, D) -> (nb, T*Bb, D); row r = t*Bb + b (time-major)
    x_blk = x.reshape(nb, Bb, T, D).transpose(0, 2, 1, 3).reshape(nb, T * Bb, D)

    # per-gate weight stacks (PyTorch gate order i, f, g, o), lane-aligned per gate
    def split_w(w, hid):       # (in, 4*hid) -> (4, in, hid)
        return w.reshape(w.shape[0], 4, hid).transpose(1, 0, 2)

    def split_b(b, hid):       # (1, 4*hid) -> (4, 1, hid)
        return b.reshape(1, 4, hid).transpose(1, 0, 2)

    wihe_s, whhe_s = split_w(params["wihe"], H), split_w(params["whhe"], H)
    be_s = split_b(params["be"], H)
    wihd_s, whhd_s = split_w(params["wihd"], D), split_w(params["whhd"], D)
    bd_s = split_b(params["bd"], D)

    kernel = functools.partial(cnn_lstm_ae_kernel, T=T, Bb=Bb, D=D, H=H, K=K,
                               mm_dtype=matmul_dtype)

    def full(shape):  # weights: same (whole-array) block for every grid step
        return pl.BlockSpec(shape, lambda i: (0,) * len(shape))

    out = pl.pallas_call(
        kernel,
        out_shape=jax.ShapeDtypeStruct((nb, T * Bb, D), x.dtype),
        grid=(nb,),
        in_specs=[
            pl.BlockSpec((None, T * Bb, D), lambda i: (i, 0, 0)),   # x block -> (T*Bb, D)
            full((K, D, D)), full((1, D)),                          # conv encoder
            full((4, D, H)), full((4, H, H)), full((4, 1, H)),      # lstm encoder (per gate)
            full((4, H, D)), full((4, D, D)), full((4, 1, D)),      # lstm decoder (per gate)
            full((K, D, D)), full((1, D)),                          # conv decoder
        ],
        out_specs=pl.BlockSpec((None, T * Bb, D), lambda i: (i, 0, 0)),
        scratch_shapes=[
            pltpu.VMEM(((T + 2 * pad) * Bb, D), jnp.float32),  # shared zero-padded conv buffer
            pltpu.VMEM((4, T * Bb, H), jnp.float32),           # hoisted encoder gate inputs
        ],
        compiler_params=pltpu.CompilerParams(dimension_semantics=("parallel",)),
    )(x_blk, params["wce"], params["bce"],
      wihe_s, whhe_s, be_s, wihd_s, whhd_s, bd_s,
      params["wcd"], params["bcd"])

    # undo layout plumbing: (nb, T*Bb, D) -> (Bpad, T, D) -> (B, T, D)
    out = out.reshape(nb, T, Bb, D).transpose(0, 2, 1, 3).reshape(Bpad, T, D)
    return out[:B]


# ---------------- pure-JAX reference (for correctness check) ----------------
def reference(x, p):
    B, T, D = x.shape
    H = p["wihe"].shape[1] // 4
    K = p["wce"].shape[0]
    pad = K // 2

    def conv1d(xs, w, b):  # xs: (B, T, D); w: (K, D_in, D_out); b: (1, D_out)
        xp = jnp.pad(xs, ((0, 0), (pad, pad), (0, 0)))
        out = jnp.zeros((B, T, w.shape[2])) + b
        for k in range(K):
            out = out + jnp.einsum("btd,de->bte", xp[:, k:k + T, :], w[k])
        return out

    def lstm(xs, w_ih, w_hh, b, hid):
        def step(carry, x_t):
            h, c = carry
            gates = x_t @ w_ih + h @ w_hh + b
            i, f, g, o = jnp.split(gates, 4, axis=-1)
            c = jax.nn.sigmoid(f) * c + jax.nn.sigmoid(i) * jnp.tanh(g)
            h = jax.nn.sigmoid(o) * jnp.tanh(c)
            return (h, c), h

        h0 = jnp.zeros((xs.shape[0], hid))
        c0 = jnp.zeros((xs.shape[0], hid))
        (h, _), hs = lax.scan(step, (h0, c0), jnp.swapaxes(xs, 0, 1))
        return jnp.swapaxes(hs, 0, 1), h

    xe = conv1d(x, p["wce"], p["bce"])
    _, h_enc = lstm(xe, p["wihe"], p["whhe"], p["be"], H)
    dec_in = jnp.repeat(h_enc[:, None, :], T, axis=1)       # h.repeat(T,1,1).permute(1,0,2)
    dec_out, _ = lstm(dec_in, p["wihd"], p["whhd"], p["bd"], D)
    return conv1d(dec_out, p["wcd"], p["bcd"])


if __name__ == "__main__":
    B, T, D, H, K = 2, 8, 16, 32, 3   # batch, seq len, input_dim, hidden_dim, kernel_size

    key = jax.random.PRNGKey(0)
    keys = jax.random.split(key, 12)

    def u(k, shape, scale):
        return jax.random.uniform(k, shape, jnp.float32, -scale, scale)

    sc_conv = 1.0 / (D * K) ** 0.5
    sc_e = 1.0 / H ** 0.5
    sc_d = 1.0 / D ** 0.5

    # Deterministic synthetic parameters (PyTorch-equivalent shapes, kernel-friendly layout:
    # conv weights as (K, D_in, D_out); LSTM W_ih/W_hh pre-transposed; biases fused b_ih+b_hh).
    params = dict(
        wce=u(keys[0], (K, D, D), sc_conv), bce=u(keys[1], (1, D), sc_conv),
        wihe=u(keys[2], (D, 4 * H), sc_e), whhe=u(keys[3], (H, 4 * H), sc_e),
        be=u(keys[4], (1, 4 * H), sc_e),
        wihd=u(keys[5], (H, 4 * D), sc_d), whhd=u(keys[6], (D, 4 * D), sc_d),
        bd=u(keys[7], (1, 4 * D), sc_d),
        wcd=u(keys[8], (K, D, D), sc_conv), bcd=u(keys[9], (1, D), sc_conv),
    )

    x = jax.random.normal(keys[10], (B, T, D), jnp.float32)
    ref = reference(x, params)

    # f32 matmul operands (default; v5e-friendly, tight tolerance)
    out = jax.block_until_ready(cnn_lstm_ae(x, params))
    assert out.shape == (B, T, D), out.shape
    assert jnp.allclose(out, ref, atol=1e-4, rtol=1e-4), float(jnp.max(jnp.abs(out - ref)))

    # bf16 matmul operands, f32 accumulate + f32 state/elementwise (v6e/v7x MXU path)
    out_bf16 = jax.block_until_ready(cnn_lstm_ae(x, params, matmul_dtype=jnp.bfloat16))
    assert out_bf16.shape == (B, T, D), out_bf16.shape
    assert jnp.allclose(out_bf16, ref, atol=5e-2, rtol=5e-2), \
        float(jnp.max(jnp.abs(out_bf16 - ref)))

    print("KERNEL_OK")
</pallas_src>

<mosaic_0001>
module attributes {stable_mosaic.version = 11 : i64} {
  func.func @cnn_lstm_ae_kernel(%arg0: i32, %arg1: memref<1x16x16xf32, #tpu.memory_space<vmem>>, %arg2: memref<3x16x16xf32, #tpu.memory_space<vmem>>, %arg3: memref<1x16xf32, #tpu.memory_space<vmem>>, %arg4: memref<4x16x32xf32, #tpu.memory_space<vmem>>, %arg5: memref<4x32x32xf32, #tpu.memory_space<vmem>>, %arg6: memref<4x1x32xf32, #tpu.memory_space<vmem>>, %arg7: memref<4x32x16xf32, #tpu.memory_space<vmem>>, %arg8: memref<4x16x16xf32, #tpu.memory_space<vmem>>, %arg9: memref<4x1x16xf32, #tpu.memory_space<vmem>>, %arg10: memref<3x16x16xf32, #tpu.memory_space<vmem>>, %arg11: memref<1x16xf32, #tpu.memory_space<vmem>>, %arg12: memref<1x16x16xf32, #tpu.memory_space<vmem>>, %arg13: memref<20x16xf32, #tpu.memory_space<vmem>>, %arg14: memref<4x16x32xf32, #tpu.memory_space<vmem>>) attributes {dimension_semantics = [#tpu.dimension_semantics<parallel>], iteration_bounds = array<i64: 1>, scalar_prefetch = 0 : i64, scratch_operands = 2 : i64, tpu.core_type = #tpu.core_type<tc>, window_params = [{transform_indices = @transform_0, window_bounds = array<i64: 1, 16, 16>}, {pipeline_mode = #tpu.pipeline_mode<synchronous>, transform_indices = @transform_1, window_bounds = array<i64: 3, 16, 16>}, {pipeline_mode = #tpu.pipeline_mode<synchronous>, transform_indices = @transform_2, window_bounds = array<i64: 1, 16>}, {pipeline_mode = #tpu.pipeline_mode<synchronous>, transform_indices = @transform_3, window_bounds = array<i64: 4, 16, 32>}, {pipeline_mode = #tpu.pipeline_mode<synchronous>, transform_indices = @transform_4, window_bounds = array<i64: 4, 32, 32>}, {pipeline_mode = #tpu.pipeline_mode<synchronous>, transform_indices = @transform_5, window_bounds = array<i64: 4, 1, 32>}, {pipeline_mode = #tpu.pipeline_mode<synchronous>, transform_indices = @transform_6, window_bounds = array<i64: 4, 32, 16>}, {pipeline_mode = #tpu.pipeline_mode<synchronous>, transform_indices = @transform_7, window_bounds = array<i64: 4, 16, 16>}, {pipeline_mode = #tpu.pipeline_mode<synchronous>, transform_indices = @transform_8, window_bounds = array<i64: 4, 1, 16>}, {pipeline_mode = #tpu.pipeline_mode<synchronous>, transform_indices = @transform_9, window_bounds = array<i64: 3, 16, 16>}, {pipeline_mode = #tpu.pipeline_mode<synchronous>, transform_indices = @transform_10, window_bounds = array<i64: 1, 16>}, {transform_indices = @transform_11, window_bounds = array<i64: 1, 16, 16>}]} {
    %cst = arith.constant 0.000000e+00 : f32
    %0 = vector.broadcast %cst : f32 to vector<2x16xf32>
    %c0 = arith.constant 0 : index
    %c0_0 = arith.constant 0 : index
    %1 = vector.load %arg13[%c0, %c0_0] : memref<20x16xf32, #tpu.memory_space<vmem>>, vector<2x16xf32>
    tpu.vector_store %arg13[%c0, %c0_0], %0 {strides = array<i32>} : memref<20x16xf32, #tpu.memory_space<vmem>>, vector<2x16xf32>,
    %c18 = arith.constant 18 : index
    %c0_1 = arith.constant 0 : index
    %2 = vector.load %arg13[%c18, %c0_1] : memref<20x16xf32, #tpu.memory_space<vmem>>, vector<2x16xf32>
    tpu.vector_store %arg13[%c18, %c0_1], %0 {strides = array<i32>} : memref<20x16xf32, #tpu.memory_space<vmem>>, vector<2x16xf32>,
    %c0_2 = arith.constant 0 : index
    %c0_3 = arith.constant 0 : index
    %c0_4 = arith.constant 0 : index
    %3 = vector.load %arg1[%c0_2, %c0_3, %c0_4] : memref<1x16x16xf32, #tpu.memory_space<vmem>>, vector<1x16x16xf32>
    %4 = vector.shape_cast %3 : vector<1x16x16xf32> to vector<16x16xf32>
    %c2 = arith.constant 2 : index
    %c0_5 = arith.constant 0 : index
    %5 = vector.load %arg13[%c2, %c0_5] : memref<20x16xf32, #tpu.memory_space<vmem>>, vector<16x16xf32>
    tpu.vector_store %arg13[%c2, %c0_5], %4 {strides = array<i32>} : memref<20x16xf32, #tpu.memory_space<vmem>>, vector<16x16xf32>,
    %c0_6 = arith.constant 0 : index
    %c0_7 = arith.constant 0 : index
    %6 = vector.load %arg13[%c0_6, %c0_7] : memref<20x16xf32, #tpu.memory_space<vmem>>, vector<16x16xf32>
    %c0_8 = arith.constant 0 : index
    %c0_9 = arith.constant 0 : index
    %c0_10 = arith.constant 0 : index
    %7 = vector.load %arg2[%c0_8, %c0_9, %c0_10] : memref<3x16x16xf32, #tpu.memory_space<vmem>>, vector<1x16x16xf32>
    %8 = vector.shape_cast %7 : vector<1x16x16xf32> to vector<16x16xf32>
    %cst_11 = arith.constant dense<0.000000e+00> : vector<16x16xf32>
    %9 = tpu.matmul %6, %8, %cst_11 {dimension_numbers = #tpu.dot_dimension_numbers<[1], [0], [0], [1], [0, 0, 1, 1], [], []>} : vector<16x16xf32>, vector<16x16xf32>, vector<16x16xf32> -> vector<16x16xf32>
    %c2_12 = arith.constant 2 : index
    %c0_13 = arith.constant 0 : index
    %10 = vector.load %arg13[%c2_12, %c0_13] : memref<20x16xf32, #tpu.memory_space<vmem>>, vector<16x16xf32>
    %c1 = arith.constant 1 : index
    %c0_14 = arith.constant 0 : index
    %c0_15 = arith.constant 0 : index
    %11 = vector.load %arg2[%c1, %c0_14, %c0_15] : memref<3x16x16xf32, #tpu.memory_space<vmem>>, vector<1x16x16xf32>
    %12 = vector.shape_cast %11 : vector<1x16x16xf32> to vector<16x16xf32>
    %cst_16 = arith.constant dense<0.000000e+00> : vector<16x16xf32>
    %13 = tpu.matmul %10, %12, %cst_16 {dimension_numbers = #tpu.dot_dimension_numbers<[1], [0], [0], [1], [0, 0, 1, 1], [], []>} : vector<16x16xf32>, vector<16x16xf32>, vector<16x16xf32> -> vector<16x16xf32>
    %14 = arith.addf %9, %13 : vector<16x16xf32>
    %c4 = arith.constant 4 : index
    %c0_17 = arith.constant 0 : index
    %15 = vector.load %arg13[%c4, %c0_17] : memref<20x16xf32, #tpu.memory_space<vmem>>, vector<16x16xf32>
    %c2_18 = arith.constant 2 : index
    %c0_19 = arith.constant 0 : index
    %c0_20 = arith.constant 0 : index
    %16 = vector.load %arg2[%c2_18, %c0_19, %c0_20] : memref<3x16x16xf32, #tpu.memory_space<vmem>>, vector<1x16x16xf32>
    %17 = vector.shape_cast %16 : vector<1x16x16xf32> to vector<16x16xf32>
    %cst_21 = arith.constant dense<0.000000e+00> : vector<16x16xf32>
    %18 = tpu.matmul %15, %17, %cst_21 {dimension_numbers = #tpu.dot_dimension_numbers<[1], [0], [0], [1], [0, 0, 1, 1], [], []>} : vector<16x16xf32>, vector<16x16xf32>, vector<16x16xf32> -> vector<16x16xf32>
    %19 = arith.addf %14, %18 : vector<16x16xf32>
    %c0_22 = arith.constant 0 : index
    %c0_23 = arith.constant 0 : index
    %20 = vector.load %arg3[%c0_22, %c0_23] : memref<1x16xf32, #tpu.memory_space<vmem>>, vector<1x16xf32>
    %21 = vector.broadcast %20 : vector<1x16xf32> to vector<16x16xf32>
    %22 = arith.addf %19, %21 : vector<16x16xf32>
    %c0_24 = arith.constant 0 : index
    %c0_25 = arith.constant 0 : index
    %c0_26 = arith.constant 0 : index
    %23 = vector.load %arg4[%c0_24, %c0_25, %c0_26] : memref<4x16x32xf32, #tpu.memory_space<vmem>>, vector<1x16x32xf32>
    %24 = vector.shape_cast %23 : vector<1x16x32xf32> to vector<16x32xf32>
    %cst_27 = arith.constant dense<0.000000e+00> : vector<16x32xf32>
    %25 = tpu.matmul %22, %24, %cst_27 {dimension_numbers = #tpu.dot_dimension_numbers<[1], [0], [0], [1], [0, 0, 1, 1], [], []>} : vector<16x16xf32>, vector<16x32xf32>, vector<16x32xf32> -> vector<16x32xf32>
    %c0_28 = arith.constant 0 : index
    %c0_29 = arith.constant 0 : index
    %c0_30 = arith.constant 0 : index
    %26 = vector.load %arg6[%c0_28, %c0_29, %c0_30] : memref<4x1x32xf32, #tpu.memory_space<vmem>>, vector<1x1x32xf32>
    %27 = vector.shape_cast %26 : vector<1x1x32xf32> to vector<1x32xf32>
    %28 = vector.broadcast %27 : vector<1x32xf32> to vector<16x32xf32>
    %29 = arith.addf %25, %28 : vector<16x32xf32>
    %c0_31 = arith.constant 0 : index
    %c0_32 = arith.constant 0 : index
    %c0_33 = arith.constant 0 : index
    %30 = vector.load %arg14[%c0_31, %c0_32, %c0_33] : memref<4x16x32xf32, #tpu.memory_space<vmem>>, vector<1x16x32xf32>
    %31 = vector.shape_cast %30 : vector<1x16x32xf32> to vector<16x32xf32>
    %32 = vector.shape_cast %29 : vector<16x32xf32> to vector<1x16x32xf32>
    tpu.vector_store %arg14[%c0_31, %c0_32, %c0_33], %32 {strides = array<i32>} : memref<4x16x32xf32, #tpu.memory_space<vmem>>, vector<1x16x32xf32>,
    %c1_34 = arith.constant 1 : index
    %c0_35 = arith.constant 0 : index
    %c0_36 = arith.constant 0 : index
    %33 = vector.load %arg4[%c1_34, %c0_35, %c0_36] : memref<4x16x32xf32, #tpu.memory_space<vmem>>, vector<1x16x32xf32>
    %34 = vector.shape_cast %33 : vector<1x16x32xf32> to vector<16x32xf32>
    %cst_37 = arith.constant dense<0.000000e+00> : vector<16x32xf32>
    %35 = tpu.matmul %22, %34, %cst_37 {dimension_numbers = #tpu.dot_dimension_numbers<[1], [0], [0], [1], [0, 0, 1, 1], [], []>} : vector<16x16xf32>, vector<16x32xf32>, vector<16x32xf32> -> vector<16x32xf32>
    %c1_38 = arith.constant 1 : index
    %c0_39 = arith.constant 0 : index
    %c0_40 = arith.constant 0 : index
    %36 = vector.load %arg6[%c1_38, %c0_39, %c0_40] : memref<4x1x32xf32, #tpu.memory_space<vmem>>, vector<1x1x32xf32>
    %37 = vector.shape_cast %36 : vector<1x1x32xf32> to vector<1x32xf32>
    %38 = vector.broadcast %37 : vector<1x32xf32> to vector<16x32xf32>
    %39 = arith.addf %35, %38 : vector<16x32xf32>
    %c1_41 = arith.constant 1 : index
    %c0_42 = arith.constant 0 : index
    %c0_43 = arith.constant 0 : index
    %40 = vector.load %arg14[%c1_41, %c0_42, %c0_43] : memref<4x16x32xf32, #tpu.memory_space<vmem>>, vector<1x16x32xf32>
    %41 = vector.shape_cast %40 : vector<1x16x32xf32> to vector<16x32xf32>
    %42 = vector.shape_cast %39 : vector<16x32xf32> to vector<1x16x32xf32>
    tpu.vector_store %arg14[%c1_41, %c0_42, %c0_43], %42 {strides = array<i32>} : memref<4x16x32xf32, #tpu.memory_space<vmem>>, vector<1x16x32xf32>,
    %c2_44 = arith.constant 2 : index
    %c0_45 = arith.constant 0 : index
    %c0_46 = arith.constant 0 : index
    %43 = vector.load %arg4[%c2_44, %c0_45, %c0_46] : memref<4x16x32xf32, #tpu.memory_space<vmem>>, vector<1x16x32xf32>
    %44 = vector.shape_cast %43 : vector<1x16x32xf32> to vector<16x32xf32>
    %cst_47 = arith.constant dense<0.000000e+00> : vector<16x32xf32>
    %45 = tpu.matmul %22, %44, %cst_47 {dimension_numbers = #tpu.dot_dimension_numbers<[1], [0], [0], [1], [0, 0, 1, 1], [], []>} : vector<16x16xf32>, vector<16x32xf32>, vector<16x32xf32> -> vector<16x32xf32>
    %c2_48 = arith.constant 2 : index
    %c0_49 = arith.constant 0 : index
    %c0_50 = arith.constant 0 : index
    %46 = vector.load %arg6[%c2_48, %c0_49, %c0_50] : memref<4x1x32xf32, #tpu.memory_space<vmem>>, vector<1x1x32xf32>
    %47 = vector.shape_cast %46 : vector<1x1x32xf32> to vector<1x32xf32>
    %48 = vector.broadcast %47 : vector<1x32xf32> to vector<16x32xf32>
    %49 = arith.addf %45, %48 : vector<16x32xf32>
    %c2_51 = arith.constant 2 : index
    %c0_52 = arith.constant 0 : index
    %c0_53 = arith.constant 0 : index
    %50 = vector.load %arg14[%c2_51, %c0_52, %c0_53] : memref<4x16x32xf32, #tpu.memory_space<vmem>>, vector<1x16x32xf32>
    %51 = vector.shape_cast %50 : vector<1x16x32xf32> to vector<16x32xf32>
    %52 = vector.shape_cast %49 : vector<16x32xf32> to vector<1x16x32xf32>
    tpu.vector_store %arg14[%c2_51, %c0_52, %c0_53], %52 {strides = array<i32>} : memref<4x16x32xf32, #tpu.memory_space<vmem>>, vector<1x16x32xf32>,
    %c3 = arith.constant 3 : index
    %c0_54 = arith.constant 0 : index
    %c0_55 = arith.constant 0 : index
    %53 = vector.load %arg4[%c3, %c0_54, %c0_55] : memref<4x16x32xf32, #tpu.memory_space<vmem>>, vector<1x16x32xf32>
    %54 = vector.shape_cast %53 : vector<1x16x32xf32> to vector<16x32xf32>
    %cst_56 = arith.constant dense<0.000000e+00> : vector<16x32xf32>
    %55 = tpu.matmul %22, %54, %cst_56 {dimension_numbers = #tpu.dot_dimension_numbers<[1], [0], [0], [1], [0, 0, 1, 1], [], []>} : vector<16x16xf32>, vector<16x32xf32>, vector<16x32xf32> -> vector<16x32xf32>
    %c3_57 = arith.constant 3 : index
    %c0_58 = arith.constant 0 : index
    %c0_59 = arith.constant 0 : index
    %56 = vector.load %arg6[%c3_57, %c0_58, %c0_59] : memref<4x1x32xf32, #tpu.memory_space<vmem>>, vector<1x1x32xf32>
    %57 = vector.shape_cast %56 : vector<1x1x32xf32> to vector<1x32xf32>
    %58 = vector.broadcast %57 : vector<1x32xf32> to vector<16x32xf32>
    %59 = arith.addf %55, %58 : vector<16x32xf32>
    %c3_60 = arith.constant 3 : index
    %c0_61 = arith.constant 0 : index
    %c0_62 = arith.constant 0 : index
    %60 = vector.load %arg14[%c3_60, %c0_61, %c0_62] : memref<4x16x32xf32, #tpu.memory_space<vmem>>, vector<1x16x32xf32>
    %61 = vector.shape_cast %60 : vector<1x16x32xf32> to vector<16x32xf32>
    %62 = vector.shape_cast %59 : vector<16x32xf32> to vector<1x16x32xf32>
    tpu.vector_store %arg14[%c3_60, %c0_61, %c0_62], %62 {strides = array<i32>} : memref<4x16x32xf32, #tpu.memory_space<vmem>>, vector<1x16x32xf32>,
    %c0_63 = arith.constant 0 : index
    %c0_64 = arith.constant 0 : index
    %c0_65 = arith.constant 0 : index
    %63 = vector.load %arg5[%c0_63, %c0_64, %c0_65] : memref<4x32x32xf32, #tpu.memory_space<vmem>>, vector<1x32x32xf32>
    %64 = vector.shape_cast %63 : vector<1x32x32xf32> to vector<32x32xf32>
    %c1_66 = arith.constant 1 : index
    %c0_67 = arith.constant 0 : index
    %c0_68 = arith.constant 0 : index
    %65 = vector.load %arg5[%c1_66, %c0_67, %c0_68] : memref<4x32x32xf32, #tpu.memory_space<vmem>>, vector<1x32x32xf32>
    %66 = vector.shape_cast %65 : vector<1x32x32xf32> to vector<32x32xf32>
    %c2_69 = arith.constant 2 : index
    %c0_70 = arith.constant 0 : index
    %c0_71 = arith.constant 0 : index
    %67 = vector.load %arg5[%c2_69, %c0_70, %c0_71] : memref<4x32x32xf32, #tpu.memory_space<vmem>>, vector<1x32x32xf32>
    %68 = vector.shape_cast %67 : vector<1x32x32xf32> to vector<32x32xf32>
    %c3_72 = arith.constant 3 : index
    %c0_73 = arith.constant 0 : index
    %c0_74 = arith.constant 0 : index
    %69 = vector.load %arg5[%c3_72, %c0_73, %c0_74] : memref<4x32x32xf32, #tpu.memory_space<vmem>>, vector<1x32x32xf32>
    %70 = vector.shape_cast %69 : vector<1x32x32xf32> to vector<32x32xf32>
    %cst_75 = arith.constant 0.000000e+00 : f32
    %71 = vector.broadcast %cst_75 : f32 to vector<2x32xf32>
    %cst_76 = arith.constant 0.000000e+00 : f32
    %72 = vector.broadcast %cst_76 : f32 to vector<2x32xf32>
    %c0_i32 = arith.constant 0 : i32
    %c2_i32 = arith.constant 2 : i32
    %73 = arith.muli %c0_i32, %c2_i32 : i32
    %c0_77 = arith.constant 0 : index
    %74 = arith.index_cast %73 : i32 to index
    %c0_78 = arith.constant 0 : index
    %75 = vector.load %arg14[%c0_77, %74, %c0_78] : memref<4x16x32xf32, #tpu.memory_space<vmem>>, vector<1x2x32xf32>
    %76 = vector.shape_cast %75 : vector<1x2x32xf32> to vector<2x32xf32>
    %cst_79 = arith.constant dense<0.000000e+00> : vector<2x32xf32>
    %77 = tpu.matmul %71, %64, %cst_79 {dimension_numbers = #tpu.dot_dimension_numbers<[1], [0], [0], [1], [0, 0, 1, 1], [], []>} : vector<2x32xf32>, vector<32x32xf32>, vector<2x32xf32> -> vector<2x32xf32>
    %78 = arith.addf %76, %77 : vector<2x32xf32>
    %c1_80 = arith.constant 1 : index
    %79 = arith.index_cast %73 : i32 to index
    %c0_81 = arith.constant 0 : index
    %80 = vector.load %arg14[%c1_80, %79, %c0_81] : memref<4x16x32xf32, #tpu.memory_space<vmem>>, vector<1x2x32xf32>
    %81 = vector.shape_cast %80 : vector<1x2x32xf32> to vector<2x32xf32>
    %cst_82 = arith.constant dense<0.000000e+00> : vector<2x32xf32>
    %82 = tpu.matmul %71, %66, %cst_82 {dimension_numbers = #tpu.dot_dimension_numbers<[1], [0], [0], [1], [0, 0, 1, 1], [], []>} : vector<2x32xf32>, vector<32x32xf32>, vector<2x32xf32> -> vector<2x32xf32>
    %83 = arith.addf %81, %82 : vector<2x32xf32>
    %c2_83 = arith.constant 2 : index
    %84 = arith.index_cast %73 : i32 to index
    %c0_84 = arith.constant 0 : index
    %85 = vector.load %arg14[%c2_83, %84, %c0_84] : memref<4x16x32xf32, #tpu.memory_space<vmem>>, vector<1x2x32xf32>
    %86 = vector.shape_cast %85 : vector<1x2x32xf32> to vector<2x32xf32>
    %cst_85 = arith.constant dense<0.000000e+00> : vector<2x32xf32>
    %87 = tpu.matmul %71, %68, %cst_85 {dimension_numbers = #tpu.dot_dimension_numbers<[1], [0], [0], [1], [0, 0, 1, 1], [], []>} : vector<2x32xf32>, vector<32x32xf32>, vector<2x32xf32> -> vector<2x32xf32>
    %88 = arith.addf %86, %87 : vector<2x32xf32>
    %c3_86 = arith.constant 3 : index
    %89 = arith.index_cast %73 : i32 to index
    %c0_87 = arith.constant 0 : index
    %90 = vector.load %arg14[%c3_86, %89, %c0_87] : memref<4x16x32xf32, #tpu.memory_space<vmem>>, vector<1x2x32xf32>
    %91 = vector.shape_cast %90 : vector<1x2x32xf32> to vector<2x32xf32>
    %cst_88 = arith.constant dense<0.000000e+00> : vector<2x32xf32>
    %92 = tpu.matmul %71, %70, %cst_88 {dimension_numbers = #tpu.dot_dimension_numbers<[1], [0], [0], [1], [0, 0, 1, 1], [], []>} : vector<2x32xf32>, vector<32x32xf32>, vector<2x32xf32> -> vector<2x32xf32>
    %93 = arith.addf %91, %92 : vector<2x32xf32>
    %94 = arith.negf %83 : vector<2x32xf32>
    %95 = math.exp %94 : vector<2x32xf32>
    %cst_89 = arith.constant 1.000000e+00 : f32
    %96 = vector.broadcast %cst_89 : f32 to vector<2x32xf32>
    %97 = arith.addf %96, %95 : vector<2x32xf32>
    %98 = arith.divf %96, %97 : vector<2x32xf32>
    %99 = arith.mulf %98, %72 : vector<2x32xf32>
    %100 = arith.negf %78 : vector<2x32xf32>
    %101 = math.exp %100 : vector<2x32xf32>
    %cst_90 = arith.constant 1.000000e+00 : f32
    %102 = vector.broadcast %cst_90 : f32 to vector<2x32xf32>
    %103 = arith.addf %102, %101 : vector<2x32xf32>
    %104 = arith.divf %102, %103 : vector<2x32xf32>
    %105 = math.tanh %88 : vector<2x32xf32>
    %106 = arith.mulf %104, %105 : vector<2x32xf32>
    %107 = arith.addf %99, %106 : vector<2x32xf32>
    %108 = arith.negf %93 : vector<2x32xf32>
    %109 = math.exp %108 : vector<2x32xf32>
    %cst_91 = arith.constant 1.000000e+00 : f32
    %110 = vector.broadcast %cst_91 : f32 to vector<2x32xf32>
    %111 = arith.addf %110, %109 : vector<2x32xf32>
    %112 = arith.divf %110, %111 : vector<2x32xf32>
    %113 = math.tanh %107 : vector<2x32xf32>
    %114 = arith.mulf %112, %113 : vector<2x32xf32>
    %c1_i32 = arith.constant 1 : i32
    %c2_i32_92 = arith.constant 2 : i32
    %115 = arith.muli %c1_i32, %c2_i32_92 : i32
    %c0_93 = arith.constant 0 : index
    %116 = arith.index_cast %115 : i32 to index
    %c0_94 = arith.constant 0 : index
    %117 = vector.load %arg14[%c0_93, %116, %c0_94] : memref<4x16x32xf32, #tpu.memory_space<vmem>>, vector<1x2x32xf32>
    %118 = vector.shape_cast %117 : vector<1x2x32xf32> to vector<2x32xf32>
    %cst_95 = arith.constant dense<0.000000e+00> : vector<2x32xf32>
    %119 = tpu.matmul %114, %64, %cst_95 {dimension_numbers = #tpu.dot_dimension_numbers<[1], [0], [0], [1], [0, 0, 1, 1], [], []>} : vector<2x32xf32>, vector<32x32xf32>, vector<2x32xf32> -> vector<2x32xf32>
    %120 = arith.addf %118, %119 : vector<2x32xf32>
    %c1_96 = arith.constant 1 : index
    %121 = arith.index_cast %115 : i32 to index
    %c0_97 = arith.constant 0 : index
    %122 = vector.load %arg14[%c1_96, %121, %c0_97] : memref<4x16x32xf32, #tpu.memory_space<vmem>>, vector<1x2x32xf32>
    %123 = vector.shape_cast %122 : vector<1x2x32xf32> to vector<2x32xf32>
    %cst_98 = arith.constant dense<0.000000e+00> : vector<2x32xf32>
    %124 = tpu.matmul %114, %66, %cst_98 {dimension_numbers = #tpu.dot_dimension_numbers<[1], [0], [0], [1], [0, 0, 1, 1], [], []>} : vector<2x32xf32>, vector<32x32xf32>, vector<2x32xf32> -> vector<2x32xf32>
    %125 = arith.addf %123, %124 : vector<2x32xf32>
    %c2_99 = arith.constant 2 : index
    %126 = arith.index_cast %115 : i32 to index
    %c0_100 = arith.constant 0 : index
    %127 = vector.load %arg14[%c2_99, %126, %c0_100] : memref<4x16x32xf32, #tpu.memory_space<vmem>>, vector<1x2x32xf32>
    %128 = vector.shape_cast %127 : vector<1x2x32xf32> to vector<2x32xf32>
    %cst_101 = arith.constant dense<0.000000e+00> : vector<2x32xf32>
    %129 = tpu.matmul %114, %68, %cst_101 {dimension_numbers = #tpu.dot_dimension_numbers<[1], [0], [0], [1], [0, 0, 1, 1], [], []>} : vector<2x32xf32>, vector<32x32xf32>, vector<2x32xf32> -> vector<2x32xf32>
    %130 = arith.addf %128, %129 : vector<2x32xf32>
    %c3_102 = arith.constant 3 : index
    %131 = arith.index_cast %115 : i32 to index
    %c0_103 = arith.constant 0 : index
    %132 = vector.load %arg14[%c3_102, %131, %c0_103] : memref<4x16x32xf32, #tpu.memory_space<vmem>>, vector<1x2x32xf32>
    %133 = vector.shape_cast %132 : vector<1x2x32xf32> to vector<2x32xf32>
    %cst_104 = arith.constant dense<0.000000e+00> : vector<2x32xf32>
    %134 = tpu.matmul %114, %70, %cst_104 {dimension_numbers = #tpu.dot_dimension_numbers<[1], [0], [0], [1], [0, 0, 1, 1], [], []>} : vector<2x32xf32>, vector<32x32xf32>, vector<2x32xf32> -> vector<2x32xf32>
    %135 = arith.addf %133, %134 : vector<2x32xf32>
    %136 = arith.negf %125 : vector<2x32xf32>
    %137 = math.exp %136 : vector<2x32xf32>
    %cst_105 = arith.constant 1.000000e+00 : f32
    %138 = vector.broadcast %cst_105 : f32 to vector<2x32xf32>
    %139 = arith.addf %138, %137 : vector<2x32xf32>
    %140 = arith.divf %138, %139 : vector<2x32xf32>
    %141 = arith.mulf %140, %107 : vector<2x32xf32>
    %142 = arith.negf %120 : vector<2x32xf32>
    %143 = math.exp %142 : vector<2x32xf32>
    %cst_106 = arith.constant 1.000000e+00 : f32
    %144 = vector.broadcast %cst_106 : f32 to vector<2x32xf32>
    %145 = arith.addf %144, %143 : vector<2x32xf32>
    %146 = arith.divf %144, %145 : vector<2x32xf32>
    %147 = math.tanh %130 : vector<2x32xf32>
    %148 = arith.mulf %146, %147 : vector<2x32xf32>
    %149 = arith.addf %141, %148 : vector<2x32xf32>
    %150 = arith.negf %135 : vector<2x32xf32>
    %151 = math.exp %150 : vector<2x32xf32>
    %cst_107 = arith.constant 1.000000e+00 : f32
    %152 = vector.broadcast %cst_107 : f32 to vector<2x32xf32>
    %153 = arith.addf %152, %151 : vector<2x32xf32>
    %154 = arith.divf %152, %153 : vector<2x32xf32>
    %155 = math.tanh %149 : vector<2x32xf32>
    %156 = arith.mulf %154, %155 : vector<2x32xf32>
    %c2_i32_108 = arith.constant 2 : i32
    %c2_i32_109 = arith.constant 2 : i32
    %157 = arith.muli %c2_i32_108, %c2_i32_109 : i32
    %c0_110 = arith.constant 0 : index
    %158 = arith.index_cast %157 : i32 to index
    %c0_111 = arith.constant 0 : index
    %159 = vector.load %arg14[%c0_110, %158, %c0_111] : memref<4x16x32xf32, #tpu.memory_space<vmem>>, vector<1x2x32xf32>
    %160 = vector.shape_cast %159 : vector<1x2x32xf32> to vector<2x32xf32>
    %cst_112 = arith.constant dense<0.000000e+00> : vector<2x32xf32>
    %161 = tpu.matmul %156, %64, %cst_112 {dimension_numbers = #tpu.dot_dimension_numbers<[1], [0], [0], [1], [0, 0, 1, 1], [], []>} : vector<2x32xf32>, vector<32x32xf32>, vector<2x32xf32> -> vector<2x32xf32>
    %162 = arith.addf %160, %161 : vector<2x32xf32>
    %c1_113 = arith.constant 1 : index
    %163 = arith.index_cast %157 : i32 to index
    %c0_114 = arith.constant 0 : index
    %164 = vector.load %arg14[%c1_113, %163, %c0_114] : memref<4x16x32xf32, #tpu.memory_space<vmem>>, vector<1x2x32xf32>
    %165 = vector.shape_cast %164 : vector<1x2x32xf32> to vector<2x32xf32>
    %cst_115 = arith.constant dense<0.000000e+00> : vector<2x32xf32>
    %166 = tpu.matmul %156, %66, %cst_115 {dimension_numbers = #tpu.dot_dimension_numbers<[1], [0], [0], [1], [0, 0, 1, 1], [], []>} : vector<2x32xf32>, vector<32x32xf32>, vector<2x32xf32> -> vector<2x32xf32>
    %167 = arith.addf %165, %166 : vector<2x32xf32>
    %c2_116 = arith.constant 2 : index
    %168 = arith.index_cast %157 : i32 to index
    %c0_117 = arith.constant 0 : index
    %169 = vector.load %arg14[%c2_116, %168, %c0_117] : memref<4x16x32xf32, #tpu.memory_space<vmem>>, vector<1x2x32xf32>
    %170 = vector.shape_cast %169 : vector<1x2x32xf32> to vector<2x32xf32>
    %cst_118 = arith.constant dense<0.000000e+00> : vector<2x32xf32>
    %171 = tpu.matmul %156, %68, %cst_118 {dimension_numbers = #tpu.dot_dimension_numbers<[1], [0], [0], [1], [0, 0, 1, 1], [], []>} : vector<2x32xf32>, vector<32x32xf32>, vector<2x32xf32> -> vector<2x32xf32>
    %172 = arith.addf %170, %171 : vector<2x32xf32>
    %c3_119 = arith.constant 3 : index
    %173 = arith.index_cast %157 : i32 to index
    %c0_120 = arith.constant 0 : index
    %174 = vector.load %arg14[%c3_119, %173, %c0_120] : memref<4x16x32xf32, #tpu.memory_space<vmem>>, vector<1x2x32xf32>
    %175 = vector.shape_cast %174 : vector<1x2x32xf32> to vector<2x32xf32>
    %cst_121 = arith.constant dense<0.000000e+00> : vector<2x32xf32>
    %176 = tpu.matmul %156, %70, %cst_121 {dimension_numbers = #tpu.dot_dimension_numbers<[1], [0], [0], [1], [0, 0, 1, 1], [], []>} : vector<2x32xf32>, vector<32x32xf32>, vector<2x32xf32> -> vector<2x32xf32>
    %177 = arith.addf %175, %176 : vector<2x32xf32>
    %178 = arith.negf %167 : vector<2x32xf32>
    %179 = math.exp %178 : vector<2x32xf32>
    %cst_122 = arith.constant 1.000000e+00 : f32
    %180 = vector.broadcast %cst_122 : f32 to vector<2x32xf32>
    %181 = arith.addf %180, %179 : vector<2x32xf32>
    %182 = arith.divf %180, %181 : vector<2x32xf32>
    %183 = arith.mulf %182, %149 : vector<2x32xf32>
    %184 = arith.negf %162 : vector<2x32xf32>
    %185 = math.exp %184 : vector<2x32xf32>
    %cst_123 = arith.constant 1.000000e+00 : f32
    %186 = vector.broadcast %cst_123 : f32 to vector<2x32xf32>
    %187 = arith.addf %186, %185 : vector<2x32xf32>
    %188 = arith.divf %186, %187 : vector<2x32xf32>
    %189 = math.tanh %172 : vector<2x32xf32>
    %190 = arith.mulf %188, %189 : vector<2x32xf32>
    %191 = arith.addf %183, %190 : vector<2x32xf32>
    %192 = arith.negf %177 : vector<2x32xf32>
    %193 = math.exp %192 : vector<2x32xf32>
    %cst_124 = arith.constant 1.000000e+00 : f32
    %194 = vector.broadcast %cst_124 : f32 to vector<2x32xf32>
    %195 = arith.addf %194, %193 : vector<2x32xf32>
    %196 = arith.divf %194, %195 : vector<2x32xf32>
    %197 = math.tanh %191 : vector<2x32xf32>
    %198 = arith.mulf %196, %197 : vector<2x32xf32>
    %c3_i32 = arith.constant 3 : i32
    %c2_i32_125 = arith.constant 2 : i32
    %199 = arith.muli %c3_i32, %c2_i32_125 : i32
    %c0_126 = arith.constant 0 : index
    %200 = arith.index_cast %199 : i32 to index
    %c0_127 = arith.constant 0 : index
    %201 = vector.load %arg14[%c0_126, %200, %c0_127] : memref<4x16x32xf32, #tpu.memory_space<vmem>>, vector<1x2x32xf32>
    %202 = vector.shape_cast %201 : vector<1x2x32xf32> to vector<2x32xf32>
    %cst_128 = arith.constant dense<0.000000e+00> : vector<2x32xf32>
    %203 = tpu.matmul %198, %64, %cst_128 {dimension_numbers = #tpu.dot_dimension_numbers<[1], [0], [0], [1], [0, 0, 1, 1], [], []>} : vector<2x32xf32>, vector<32x32xf32>, vector<2x32xf32> -> vector<2x32xf32>
    %204 = arith.addf %202, %203 : vector<2x32xf32>
    %c1_129 = arith.constant 1 : index
    %205 = arith.index_cast %199 : i32 to index
    %c0_130 = arith.constant 0 : index
    %206 = vector.load %arg14[%c1_129, %205, %c0_130] : memref<4x16x32xf32, #tpu.memory_space<vmem>>, vector<1x2x32xf32>
    %207 = vector.shape_cast %206 : vector<1x2x32xf32> to vector<2x32xf32>
    %cst_131 = arith.constant dense<0.000000e+00> : vector<2x32xf32>
    %208 = tpu.matmul %198, %66, %cst_131 {dimension_numbers = #tpu.dot_dimension_numbers<[1], [0], [0], [1], [0, 0, 1, 1], [], []>} : vector<2x32xf32>, vector<32x32xf32>, vector<2x32xf32> -> vector<2x32xf32>
    %209 = arith.addf %207, %208 : vector<2x32xf32>
    %c2_132 = arith.constant 2 : index
    %210 = arith.index_cast %199 : i32 to index
    %c0_133 = arith.constant 0 : index
    %211 = vector.load %arg14[%c2_132, %210, %c0_133] : memref<4x16x32xf32, #tpu.memory_space<vmem>>, vector<1x2x32xf32>
    %212 = vector.shape_cast %211 : vector<1x2x32xf32> to vector<2x32xf32>
    %cst_134 = arith.constant dense<0.000000e+00> : vector<2x32xf32>
    %213 = tpu.matmul %198, %68, %cst_134 {dimension_numbers = #tpu.dot_dimension_numbers<[1], [0], [0], [1], [0, 0, 1, 1], [], []>} : vector<2x32xf32>, vector<32x32xf32>, vector<2x32xf32> -> vector<2x32xf32>
    %214 = arith.addf %212, %213 : vector<2x32xf32>
    %c3_135 = arith.constant 3 : index
    %215 = arith.index_cast %199 : i32 to index
    %c0_136 = arith.constant 0 : index
    %216 = vector.load %arg14[%c3_135, %215, %c0_136] : memref<4x16x32xf32, #tpu.memory_space<vmem>>, vector<1x2x32xf32>
    %217 = vector.shape_cast %216 : vector<1x2x32xf32> to vector<2x32xf32>
    %cst_137 = arith.constant dense<0.000000e+00> : vector<2x32xf32>
    %218 = tpu.matmul %198, %70, %cst_137 {dimension_numbers = #tpu.dot_dimension_numbers<[1], [0], [0], [1], [0, 0, 1, 1], [], []>} : vector<2x32xf32>, vector<32x32xf32>, vector<2x32xf32> -> vector<2x32xf32>
    %219 = arith.addf %217, %218 : vector<2x32xf32>
    %220 = arith.negf %209 : vector<2x32xf32>
    %221 = math.exp %220 : vector<2x32xf32>
    %cst_138 = arith.constant 1.000000e+00 : f32
    %222 = vector.broadcast %cst_138 : f32 to vector<2x32xf32>
    %223 = arith.addf %222, %221 : vector<2x32xf32>
    %224 = arith.divf %222, %223 : vector<2x32xf32>
    %225 = arith.mulf %224, %191 : vector<2x32xf32>
    %226 = arith.negf %204 : vector<2x32xf32>
    %227 = math.exp %226 : vector<2x32xf32>
    %cst_139 = arith.constant 1.000000e+00 : f32
    %228 = vector.broadcast %cst_139 : f32 to vector<2x32xf32>
    %229 = arith.addf %228, %227 : vector<2x32xf32>
    %230 = arith.divf %228, %229 : vector<2x32xf32>
    %231 = math.tanh %214 : vector<2x32xf32>
    %232 = arith.mulf %230, %231 : vector<2x32xf32>
    %233 = arith.addf %225, %232 : vector<2x32xf32>
    %234 = arith.negf %219 : vector<2x32xf32>
    %235 = math.exp %234 : vector<2x32xf32>
    %cst_140 = arith.constant 1.000000e+00 : f32
    %236 = vector.broadcast %cst_140 : f32 to vector<2x32xf32>
    %237 = arith.addf %236, %235 : vector<2x32xf32>
    %238 = arith.divf %236, %237 : vector<2x32xf32>
    %239 = math.tanh %233 : vector<2x32xf32>
    %240 = arith.mulf %238, %239 : vector<2x32xf32>
    %c4_i32 = arith.constant 4 : i32
    %c2_i32_141 = arith.constant 2 : i32
    %241 = arith.muli %c4_i32, %c2_i32_141 : i32
    %c0_142 = arith.constant 0 : index
    %242 = arith.index_cast %241 : i32 to index
    %c0_143 = arith.constant 0 : index
    %243 = vector.load %arg14[%c0_142, %242, %c0_143] : memref<4x16x32xf32, #tpu.memory_space<vmem>>, vector<1x2x32xf32>
    %244 = vector.shape_cast %243 : vector<1x2x32xf32> to vector<2x32xf32>
    %cst_144 = arith.constant dense<0.000000e+00> : vector<2x32xf32>
    %245 = tpu.matmul %240, %64, %cst_144 {dimension_numbers = #tpu.dot_dimension_numbers<[1], [0], [0], [1], [0, 0, 1, 1], [], []>} : vector<2x32xf32>, vector<32x32xf32>, vector<2x32xf32> -> vector<2x32xf32>
    %246 = arith.addf %244, %245 : vector<2x32xf32>
    %c1_145 = arith.constant 1 : index
    %247 = arith.index_cast %241 : i32 to index
    %c0_146 = arith.constant 0 : index
    %248 = vector.load %arg14[%c1_145, %247, %c0_146] : memref<4x16x32xf32, #tpu.memory_space<vmem>>, vector<1x2x32xf32>
    %249 = vector.shape_cast %248 : vector<1x2x32xf32> to vector<2x32xf32>
    %cst_147 = arith.constant dense<0.000000e+00> : vector<2x32xf32>
    %250 = tpu.matmul %240, %66, %cst_147 {dimension_numbers = #tpu.dot_dimension_numbers<[1], [0], [0], [1], [0, 0, 1, 1], [], []>} : vector<2x32xf32>, vector<32x32xf32>, vector<2x32xf32> -> vector<2x32xf32>
    %251 = arith.addf %249, %250 : vector<2x32xf32>
    %c2_148 = arith.constant 2 : index
    %252 = arith.index_cast %241 : i32 to index
    %c0_149 = arith.constant 0 : index
    %253 = vector.load %arg14[%c2_148, %252, %c0_149] : memref<4x16x32xf32, #tpu.memory_space<vmem>>, vector<1x2x32xf32>
    %254 = vector.shape_cast %253 : vector<1x2x32xf32> to vector<2x32xf32>
    %cst_150 = arith.constant dense<0.000000e+00> : vector<2x32xf32>
    %255 = tpu.matmul %240, %68, %cst_150 {dimension_numbers = #tpu.dot_dimension_numbers<[1], [0], [0], [1], [0, 0, 1, 1], [], []>} : vector<2x32xf32>, vector<32x32xf32>, vector<2x32xf32> -> vector<2x32xf32>
    %256 = arith.addf %254, %255 : vector<2x32xf32>
    %c3_151 = arith.constant 3 : index
    %257 = arith.index_cast %241 : i32 to index
    %c0_152 = arith.constant 0 : index
    %258 = vector.load %arg14[%c3_151, %257, %c0_152] : memref<4x16x32xf32, #tpu.memory_space<vmem>>, vector<1x2x32xf32>
    %259 = vector.shape_cast %258 : vector<1x2x32xf32> to vector<2x32xf32>
    %cst_153 = arith.constant dense<0.000000e+00> : vector<2x32xf32>
    %260 = tpu.matmul %240, %70, %cst_153 {dimension_numbers = #tpu.dot_dimension_numbers<[1], [0], [0], [1], [0, 0, 1, 1], [], []>} : vector<2x32xf32>, vector<32x32xf32>, vector<2x32xf32> -> vector<2x32xf32>
    %261 = arith.addf %259, %260 : vector<2x32xf32>
    %262 = arith.negf %251 : vector<2x32xf32>
    %263 = math.exp %262 : vector<2x32xf32>
    %cst_154 = arith.constant 1.000000e+00 : f32
    %264 = vector.broadcast %cst_154 : f32 to vector<2x32xf32>
    %265 = arith.addf %264, %263 : vector<2x32xf32>
    %266 = arith.divf %264, %265 : vector<2x32xf32>
    %267 = arith.mulf %266, %233 : vector<2x32xf32>
    %268 = arith.negf %246 : vector<2x32xf32>
    %269 = math.exp %268 : vector<2x32xf32>
    %cst_155 = arith.constant 1.000000e+00 : f32
    %270 = vector.broadcast %cst_155 : f32 to vector<2x32xf32>
    %271 = arith.addf %270, %269 : vector<2x32xf32>
    %272 = arith.divf %270, %271 : vector<2x32xf32>
    %273 = math.tanh %256 : vector<2x32xf32>
    %274 = arith.mulf %272, %273 : vector<2x32xf32>
    %275 = arith.addf %267, %274 : vector<2x32xf32>
    %276 = arith.negf %261 : vector<2x32xf32>
    %277 = math.exp %276 : vector<2x32xf32>
    %cst_156 = arith.constant 1.000000e+00 : f32
    %278 = vector.broadcast %cst_156 : f32 to vector<2x32xf32>
    %279 = arith.addf %278, %277 : vector<2x32xf32>
    %280 = arith.divf %278, %279 : vector<2x32xf32>
    %281 = math.tanh %275 : vector<2x32xf32>
    %282 = arith.mulf %280, %281 : vector<2x32xf32>
    %c5_i32 = arith.constant 5 : i32
    %c2_i32_157 = arith.constant 2 : i32
    %283 = arith.muli %c5_i32, %c2_i32_157 : i32
    %c0_158 = arith.constant 0 : index
    %284 = arith.index_cast %283 : i32 to index
    %c0_159 = arith.constant 0 : index
    %285 = vector.load %arg14[%c0_158, %284, %c0_159] : memref<4x16x32xf32, #tpu.memory_space<vmem>>, vector<1x2x32xf32>
    %286 = vector.shape_cast %285 : vector<1x2x32xf32> to vector<2x32xf32>
    %cst_160 = arith.constant dense<0.000000e+00> : vector<2x32xf32>
    %287 = tpu.matmul %282, %64, %cst_160 {dimension_numbers = #tpu.dot_dimension_numbers<[1], [0], [0], [1], [0, 0, 1, 1], [], []>} : vector<2x32xf32>, vector<32x32xf32>, vector<2x32xf32> -> vector<2x32xf32>
    %288 = arith.addf %286, %287 : vector<2x32xf32>
    %c1_161 = arith.constant 1 : index
    %289 = arith.index_cast %283 : i32 to index
    %c0_162 = arith.constant 0 : index
    %290 = vector.load %arg14[%c1_161, %289, %c0_162] : memref<4x16x32xf32, #tpu.memory_space<vmem>>, vector<1x2x32xf32>
    %291 = vector.shape_cast %290 : vector<1x2x32xf32> to vector<2x32xf32>
    %cst_163 = arith.constant dense<0.000000e+00> : vector<2x32xf32>
    %292 = tpu.matmul %282, %66, %cst_163 {dimension_numbers = #tpu.dot_dimension_numbers<[1], [0], [0], [1], [0, 0, 1, 1], [], []>} : vector<2x32xf32>, vector<32x32xf32>, vector<2x32xf32> -> vector<2x32xf32>
    %293 = arith.addf %291, %292 : vector<2x32xf32>
    %c2_164 = arith.constant 2 : index
    %294 = arith.index_cast %283 : i32 to index
    %c0_165 = arith.constant 0 : index
    %295 = vector.load %arg14[%c2_164, %294, %c0_165] : memref<4x16x32xf32, #tpu.memory_space<vmem>>, vector<1x2x32xf32>
    %296 = vector.shape_cast %295 : vector<1x2x32xf32> to vector<2x32xf32>
    %cst_166 = arith.constant dense<0.000000e+00> : vector<2x32xf32>
    %297 = tpu.matmul %282, %68, %cst_166 {dimension_numbers = #tpu.dot_dimension_numbers<[1], [0], [0], [1], [0, 0, 1, 1], [], []>} : vector<2x32xf32>, vector<32x32xf32>, vector<2x32xf32> -> vector<2x32xf32>
    %298 = arith.addf %296, %297 : vector<2x32xf32>
    %c3_167 = arith.constant 3 : index
    %299 = arith.index_cast %283 : i32 to index
    %c0_168 = arith.constant 0 : index
    %300 = vector.load %arg14[%c3_167, %299, %c0_168] : memref<4x16x32xf32, #tpu.memory_space<vmem>>, vector<1x2x32xf32>
    %301 = vector.shape_cast %300 : vector<1x2x32xf32> to vector<2x32xf32>
    %cst_169 = arith.constant dense<0.000000e+00> : vector<2x32xf32>
    %302 = tpu.matmul %282, %70, %cst_169 {dimension_numbers = #tpu.dot_dimension_numbers<[1], [0], [0], [1], [0, 0, 1, 1], [], []>} : vector<2x32xf32>, vector<32x32xf32>, vector<2x32xf32> -> vector<2x32xf32>
    %303 = arith.addf %301, %302 : vector<2x32xf32>
    %304 = arith.negf %293 : vector<2x32xf32>
    %305 = math.exp %304 : vector<2x32xf32>
    %cst_170 = arith.constant 1.000000e+00 : f32
    %306 = vector.broadcast %cst_170 : f32 to vector<2x32xf32>
    %307 = arith.addf %306, %305 : vector<2x32xf32>
    %308 = arith.divf %306, %307 : vector<2x32xf32>
    %309 = arith.mulf %308, %275 : vector<2x32xf32>
    %310 = arith.negf %288 : vector<2x32xf32>
    %311 = math.exp %310 : vector<2x32xf32>
    %cst_171 = arith.constant 1.000000e+00 : f32
    %312 = vector.broadcast %cst_171 : f32 to vector<2x32xf32>
    %313 = arith.addf %312, %311 : vector<2x32xf32>
    %314 = arith.divf %312, %313 : vector<2x32xf32>
    %315 = math.tanh %298 : vector<2x32xf32>
    %316 = arith.mulf %314, %315 : vector<2x32xf32>
    %317 = arith.addf %309, %316 : vector<2x32xf32>
    %318 = arith.negf %303 : vector<2x32xf32>
    %319 = math.exp %318 : vector<2x32xf32>
    %cst_172 = arith.constant 1.000000e+00 : f32
    %320 = vector.broadcast %cst_172 : f32 to vector<2x32xf32>
    %321 = arith.addf %320, %319 : vector<2x32xf32>
    %322 = arith.divf %320, %321 : vector<2x32xf32>
    %323 = math.tanh %317 : vector<2x32xf32>
    %324 = arith.mulf %322, %323 : vector<2x32xf32>
    %c6_i32 = arith.constant 6 : i32
    %c2_i32_173 = arith.constant 2 : i32
    %325 = arith.muli %c6_i32, %c2_i32_173 : i32
    %c0_174 = arith.constant 0 : index
    %326 = arith.index_cast %325 : i32 to index
    %c0_175 = arith.constant 0 : index
    %327 = vector.load %arg14[%c0_174, %326, %c0_175] : memref<4x16x32xf32, #tpu.memory_space<vmem>>, vector<1x2x32xf32>
    %328 = vector.shape_cast %327 : vector<1x2x32xf32> to vector<2x32xf32>
    %cst_176 = arith.constant dense<0.000000e+00> : vector<2x32xf32>
    %329 = tpu.matmul %324, %64, %cst_176 {dimension_numbers = #tpu.dot_dimension_numbers<[1], [0], [0], [1], [0, 0, 1, 1], [], []>} : vector<2x32xf32>, vector<32x32xf32>, vector<2x32xf32> -> vector<2x32xf32>
    %330 = arith.addf %328, %329 : vector<2x32xf32>
    %c1_177 = arith.constant 1 : index
    %331 = arith.index_cast %325 : i32 to index
    %c0_178 = arith.constant 0 : index
    %332 = vector.load %arg14[%c1_177, %331, %c0_178] : memref<4x16x32xf32, #tpu.memory_space<vmem>>, vector<1x2x32xf32>
    %333 = vector.shape_cast %332 : vector<1x2x32xf32> to vector<2x32xf32>
    %cst_179 = arith.constant dense<0.000000e+00> : vector<2x32xf32>
    %334 = tpu.matmul %324, %66, %cst_179 {dimension_numbers = #tpu.dot_dimension_numbers<[1], [0], [0], [1], [0, 0, 1, 1], [], []>} : vector<2x32xf32>, vector<32x32xf32>, vector<2x32xf32> -> vector<2x32xf32>
    %335 = arith.addf %333, %334 : vector<2x32xf32>
    %c2_180 = arith.constant 2 : index
    %336 = arith.index_cast %325 : i32 to index
    %c0_181 = arith.constant 0 : index
    %337 = vector.load %arg14[%c2_180, %336, %c0_181] : memref<4x16x32xf32, #tpu.memory_space<vmem>>, vector<1x2x32xf32>
    %338 = vector.shape_cast %337 : vector<1x2x32xf32> to vector<2x32xf32>
    %cst_182 = arith.constant dense<0.000000e+00> : vector<2x32xf32>
    %339 = tpu.matmul %324, %68, %cst_182 {dimension_numbers = #tpu.dot_dimension_numbers<[1], [0], [0], [1], [0, 0, 1, 1], [], []>} : vector<2x32xf32>, vector<32x32xf32>, vector<2x32xf32> -> vector<2x32xf32>
    %340 = arith.addf %338, %339 : vector<2x32xf32>
    %c3_183 = arith.constant 3 : index
    %341 = arith.index_cast %325 : i32 to index
    %c0_184 = arith.constant 0 : index
    %342 = vector.load %arg14[%c3_183, %341, %c0_184] : memref<4x16x32xf32, #tpu.memory_space<vmem>>, vector<1x2x32xf32>
    %343 = vector.shape_cast %342 : vector<1x2x32xf32> to vector<2x32xf32>
    %cst_185 = arith.constant dense<0.000000e+00> : vector<2x32xf32>
    %344 = tpu.matmul %324, %70, %cst_185 {dimension_numbers = #tpu.dot_dimension_numbers<[1], [0], [0], [1], [0, 0, 1, 1], [], []>} : vector<2x32xf32>, vector<32x32xf32>, vector<2x32xf32> -> vector<2x32xf32>
    %345 = arith.addf %343, %344 : vector<2x32xf32>
    %346 = arith.negf %335 : vector<2x32xf32>
    %347 = math.exp %346 : vector<2x32xf32>
    %cst_186 = arith.constant 1.000000e+00 : f32
    %348 = vector.broadcast %cst_186 : f32 to vector<2x32xf32>
    %349 = arith.addf %348, %347 : vector<2x32xf32>
    %350 = arith.divf %348, %349 : vector<2x32xf32>
    %351 = arith.mulf %350, %317 : vector<2x32xf32>
    %352 = arith.negf %330 : vector<2x32xf32>
    %353 = math.exp %352 : vector<2x32xf32>
    %cst_187 = arith.constant 1.000000e+00 : f32
    %354 = vector.broadcast %cst_187 : f32 to vector<2x32xf32>
    %355 = arith.addf %354, %353 : vector<2x32xf32>
    %356 = arith.divf %354, %355 : vector<2x32xf32>
    %357 = math.tanh %340 : vector<2x32xf32>
    %358 = arith.mulf %356, %357 : vector<2x32xf32>
    %359 = arith.addf %351, %358 : vector<2x32xf32>
    %360 = arith.negf %345 : vector<2x32xf32>
    %361 = math.exp %360 : vector<2x32xf32>
    %cst_188 = arith.constant 1.000000e+00 : f32
    %362 = vector.broadcast %cst_188 : f32 to vector<2x32xf32>
    %363 = arith.addf %362, %361 : vector<2x32xf32>
    %364 = arith.divf %362, %363 : vector<2x32xf32>
    %365 = math.tanh %359 : vector<2x32xf32>
    %366 = arith.mulf %364, %365 : vector<2x32xf32>
    %c7_i32 = arith.constant 7 : i32
    %c2_i32_189 = arith.constant 2 : i32
    %367 = arith.muli %c7_i32, %c2_i32_189 : i32
    %c0_190 = arith.constant 0 : index
    %368 = arith.index_cast %367 : i32 to index
    %c0_191 = arith.constant 0 : index
    %369 = vector.load %arg14[%c0_190, %368, %c0_191] : memref<4x16x32xf32, #tpu.memory_space<vmem>>, vector<1x2x32xf32>
    %370 = vector.shape_cast %369 : vector<1x2x32xf32> to vector<2x32xf32>
    %cst_192 = arith.constant dense<0.000000e+00> : vector<2x32xf32>
    %371 = tpu.matmul %366, %64, %cst_192 {dimension_numbers = #tpu.dot_dimension_numbers<[1], [0], [0], [1], [0, 0, 1, 1], [], []>} : vector<2x32xf32>, vector<32x32xf32>, vector<2x32xf32> -> vector<2x32xf32>
    %372 = arith.addf %370, %371 : vector<2x32xf32>
    %c1_193 = arith.constant 1 : index
    %373 = arith.index_cast %367 : i32 to index
    %c0_194 = arith.constant 0 : index
    %374 = vector.load %arg14[%c1_193, %373, %c0_194] : memref<4x16x32xf32, #tpu.memory_space<vmem>>, vector<1x2x32xf32>
    %375 = vector.shape_cast %374 : vector<1x2x32xf32> to vector<2x32xf32>
    %cst_195 = arith.constant dense<0.000000e+00> : vector<2x32xf32>
    %376 = tpu.matmul %366, %66, %cst_195 {dimension_numbers = #tpu.dot_dimension_numbers<[1], [0], [0], [1], [0, 0, 1, 1], [], []>} : vector<2x32xf32>, vector<32x32xf32>, vector<2x32xf32> -> vector<2x32xf32>
    %377 = arith.addf %375, %376 : vector<2x32xf32>
    %c2_196 = arith.constant 2 : index
    %378 = arith.index_cast %367 : i32 to index
    %c0_197 = arith.constant 0 : index
    %379 = vector.load %arg14[%c2_196, %378, %c0_197] : memref<4x16x32xf32, #tpu.memory_space<vmem>>, vector<1x2x32xf32>
    %380 = vector.shape_cast %379 : vector<1x2x32xf32> to vector<2x32xf32>
    %cst_198 = arith.constant dense<0.000000e+00> : vector<2x32xf32>
    %381 = tpu.matmul %366, %68, %cst_198 {dimension_numbers = #tpu.dot_dimension_numbers<[1], [0], [0], [1], [0, 0, 1, 1], [], []>} : vector<2x32xf32>, vector<32x32xf32>, vector<2x32xf32> -> vector<2x32xf32>
    %382 = arith.addf %380, %381 : vector<2x32xf32>
    %c3_199 = arith.constant 3 : index
    %383 = arith.index_cast %367 : i32 to index
    %c0_200 = arith.constant 0 : index
    %384 = vector.load %arg14[%c3_199, %383, %c0_200] : memref<4x16x32xf32, #tpu.memory_space<vmem>>, vector<1x2x32xf32>
    %385 = vector.shape_cast %384 : vector<1x2x32xf32> to vector<2x32xf32>
    %cst_201 = arith.constant dense<0.000000e+00> : vector<2x32xf32>
    %386 = tpu.matmul %366, %70, %cst_201 {dimension_numbers = #tpu.dot_dimension_numbers<[1], [0], [0], [1], [0, 0, 1, 1], [], []>} : vector<2x32xf32>, vector<32x32xf32>, vector<2x32xf32> -> vector<2x32xf32>
    %387 = arith.addf %385, %386 : vector<2x32xf32>
    %388 = arith.negf %377 : vector<2x32xf32>
    %389 = math.exp %388 : vector<2x32xf32>
    %cst_202 = arith.constant 1.000000e+00 : f32
    %390 = vector.broadcast %cst_202 : f32 to vector<2x32xf32>
    %391 = arith.addf %390, %389 : vector<2x32xf32>
    %392 = arith.divf %390, %391 : vector<2x32xf32>
    %393 = arith.mulf %392, %359 : vector<2x32xf32>
    %394 = arith.negf %372 : vector<2x32xf32>
    %395 = math.exp %394 : vector<2x32xf32>
    %cst_203 = arith.constant 1.000000e+00 : f32
    %396 = vector.broadcast %cst_203 : f32 to vector<2x32xf32>
    %397 = arith.addf %396, %395 : vector<2x32xf32>
    %398 = arith.divf %396, %397 : vector<2x32xf32>
    %399 = math.tanh %382 : vector<2x32xf32>
    %400 = arith.mulf %398, %399 : vector<2x32xf32>
    %401 = arith.addf %393, %400 : vector<2x32xf32>
    %402 = arith.negf %387 : vector<2x32xf32>
    %403 = math.exp %402 : vector<2x32xf32>
    %cst_204 = arith.constant 1.000000e+00 : f32
    %404 = vector.broadcast %cst_204 : f32 to vector<2x32xf32>
    %405 = arith.addf %404, %403 : vector<2x32xf32>
    %406 = arith.divf %404, %405 : vector<2x32xf32>
    %407 = math.tanh %401 : vector<2x32xf32>
    %408 = arith.mulf %406, %407 : vector<2x32xf32>
    %c8_i32 = arith.constant 8 : i32
    %c0_205 = arith.constant 0 : index
    %c0_206 = arith.constant 0 : index
    %c0_207 = arith.constant 0 : index
    %409 = vector.load %arg7[%c0_205, %c0_206, %c0_207] : memref<4x32x16xf32, #tpu.memory_space<vmem>>, vector<1x32x16xf32>
    %410 = vector.shape_cast %409 : vector<1x32x16xf32> to vector<32x16xf32>
    %cst_208 = arith.constant dense<0.000000e+00> : vector<2x16xf32>
    %411 = tpu.matmul %408, %410, %cst_208 {dimension_numbers = #tpu.dot_dimension_numbers<[1], [0], [0], [1], [0, 0, 1, 1], [], []>} : vector<2x32xf32>, vector<32x16xf32>, vector<2x16xf32> -> vector<2x16xf32>
    %c0_209 = arith.constant 0 : index
    %c0_210 = arith.constant 0 : index
    %c0_211 = arith.constant 0 : index
    %412 = vector.load %arg9[%c0_209, %c0_210, %c0_211] : memref<4x1x16xf32, #tpu.memory_space<vmem>>, vector<1x1x16xf32>
    %413 = vector.shape_cast %412 : vector<1x1x16xf32> to vector<1x16xf32>
    %414 = vector.broadcast %413 : vector<1x16xf32> to vector<2x16xf32>
    %415 = arith.addf %411, %414 : vector<2x16xf32>
    %c1_212 = arith.constant 1 : index
    %c0_213 = arith.constant 0 : index
    %c0_214 = arith.constant 0 : index
    %416 = vector.load %arg7[%c1_212, %c0_213, %c0_214] : memref<4x32x16xf32, #tpu.memory_space<vmem>>, vector<1x32x16xf32>
    %417 = vector.shape_cast %416 : vector<1x32x16xf32> to vector<32x16xf32>
    %cst_215 = arith.constant dense<0.000000e+00> : vector<2x16xf32>
    %418 = tpu.matmul %408, %417, %cst_215 {dimension_numbers = #tpu.dot_dimension_numbers<[1], [0], [0], [1], [0, 0, 1, 1], [], []>} : vector<2x32xf32>, vector<32x16xf32>, vector<2x16xf32> -> vector<2x16xf32>
    %c1_216 = arith.constant 1 : index
    %c0_217 = arith.constant 0 : index
    %c0_218 = arith.constant 0 : index
    %419 = vector.load %arg9[%c1_216, %c0_217, %c0_218] : memref<4x1x16xf32, #tpu.memory_space<vmem>>, vector<1x1x16xf32>
    %420 = vector.shape_cast %419 : vector<1x1x16xf32> to vector<1x16xf32>
    %421 = vector.broadcast %420 : vector<1x16xf32> to vector<2x16xf32>
    %422 = arith.addf %418, %421 : vector<2x16xf32>
    %c2_219 = arith.constant 2 : index
    %c0_220 = arith.constant 0 : index
    %c0_221 = arith.constant 0 : index
    %423 = vector.load %arg7[%c2_219, %c0_220, %c0_221] : memref<4x32x16xf32, #tpu.memory_space<vmem>>, vector<1x32x16xf32>
    %424 = vector.shape_cast %423 : vector<1x32x16xf32> to vector<32x16xf32>
    %cst_222 = arith.constant dense<0.000000e+00> : vector<2x16xf32>
    %425 = tpu.matmul %408, %424, %cst_222 {dimension_numbers = #tpu.dot_dimension_numbers<[1], [0], [0], [1], [0, 0, 1, 1], [], []>} : vector<2x32xf32>, vector<32x16xf32>, vector<2x16xf32> -> vector<2x16xf32>
    %c2_223 = arith.constant 2 : index
    %c0_224 = arith.constant 0 : index
    %c0_225 = arith.constant 0 : index
    %426 = vector.load %arg9[%c2_223, %c0_224, %c0_225] : memref<4x1x16xf32, #tpu.memory_space<vmem>>, vector<1x1x16xf32>
    %427 = vector.shape_cast %426 : vector<1x1x16xf32> to vector<1x16xf32>
    %428 = vector.broadcast %427 : vector<1x16xf32> to vector<2x16xf32>
    %429 = arith.addf %425, %428 : vector<2x16xf32>
    %c3_226 = arith.constant 3 : index
    %c0_227 = arith.constant 0 : index
    %c0_228 = arith.constant 0 : index
    %430 = vector.load %arg7[%c3_226, %c0_227, %c0_228] : memref<4x32x16xf32, #tpu.memory_space<vmem>>, vector<1x32x16xf32>
    %431 = vector.shape_cast %430 : vector<1x32x16xf32> to vector<32x16xf32>
    %cst_229 = arith.constant dense<0.000000e+00> : vector<2x16xf32>
    %432 = tpu.matmul %408, %431, %cst_229 {dimension_numbers = #tpu.dot_dimension_numbers<[1], [0], [0], [1], [0, 0, 1, 1], [], []>} : vector<2x32xf32>, vector<32x16xf32>, vector<2x16xf32> -> vector<2x16xf32>
    %c3_230 = arith.constant 3 : index
    %c0_231 = arith.constant 0 : index
    %c0_232 = arith.constant 0 : index
    %433 = vector.load %arg9[%c3_230, %c0_231, %c0_232] : memref<4x1x16xf32, #tpu.memory_space<vmem>>, vector<1x1x16xf32>
    %434 = vector.shape_cast %433 : vector<1x1x16xf32> to vector<1x16xf32>
    %435 = vector.broadcast %434 : vector<1x16xf32> to vector<2x16xf32>
    %436 = arith.addf %432, %435 : vector<2x16xf32>
    %c0_233 = arith.constant 0 : index
    %c0_234 = arith.constant 0 : index
    %c0_235 = arith.constant 0 : index
    %437 = vector.load %arg8[%c0_233, %c0_234, %c0_235] : memref<4x16x16xf32, #tpu.memory_space<vmem>>, vector<1x16x16xf32>
    %438 = vector.shape_cast %437 : vector<1x16x16xf32> to vector<16x16xf32>
    %c1_236 = arith.constant 1 : index
    %c0_237 = arith.constant 0 : index
    %c0_238 = arith.constant 0 : index
    %439 = vector.load %arg8[%c1_236, %c0_237, %c0_238] : memref<4x16x16xf32, #tpu.memory_space<vmem>>, vector<1x16x16xf32>
    %440 = vector.shape_cast %439 : vector<1x16x16xf32> to vector<16x16xf32>
    %c2_239 = arith.constant 2 : index
    %c0_240 = arith.constant 0 : index
    %c0_241 = arith.constant 0 : index
    %441 = vector.load %arg8[%c2_239, %c0_240, %c0_241] : memref<4x16x16xf32, #tpu.memory_space<vmem>>, vector<1x16x16xf32>
    %442 = vector.shape_cast %441 : vector<1x16x16xf32> to vector<16x16xf32>
    %c3_242 = arith.constant 3 : index
    %c0_243 = arith.constant 0 : index
    %c0_244 = arith.constant 0 : index
    %443 = vector.load %arg8[%c3_242, %c0_243, %c0_244] : memref<4x16x16xf32, #tpu.memory_space<vmem>>, vector<1x16x16xf32>
    %444 = vector.shape_cast %443 : vector<1x16x16xf32> to vector<16x16xf32>
    %cst_245 = arith.constant 0.000000e+00 : f32
    %445 = vector.broadcast %cst_245 : f32 to vector<2x16xf32>
    %cst_246 = arith.constant 0.000000e+00 : f32
    %446 = vector.broadcast %cst_246 : f32 to vector<2x16xf32>
    %c0_i32_247 = arith.constant 0 : i32
    %cst_248 = arith.constant dense<0.000000e+00> : vector<2x16xf32>
    %447 = tpu.matmul %445, %438, %cst_248 {dimension_numbers = #tpu.dot_dimension_numbers<[1], [0], [0], [1], [0, 0, 1, 1], [], []>} : vector<2x16xf32>, vector<16x16xf32>, vector<2x16xf32> -> vector<2x16xf32>
    %448 = arith.addf %415, %447 : vector<2x16xf32>
    %cst_249 = arith.constant dense<0.000000e+00> : vector<2x16xf32>
    %449 = tpu.matmul %445, %440, %cst_249 {dimension_numbers = #tpu.dot_dimension_numbers<[1], [0], [0], [1], [0, 0, 1, 1], [], []>} : vector<2x16xf32>, vector<16x16xf32>, vector<2x16xf32> -> vector<2x16xf32>
    %450 = arith.addf %422, %449 : vector<2x16xf32>
    %cst_250 = arith.constant dense<0.000000e+00> : vector<2x16xf32>
    %451 = tpu.matmul %445, %442, %cst_250 {dimension_numbers = #tpu.dot_dimension_numbers<[1], [0], [0], [1], [0, 0, 1, 1], [], []>} : vector<2x16xf32>, vector<16x16xf32>, vector<2x16xf32> -> vector<2x16xf32>
    %452 = arith.addf %429, %451 : vector<2x16xf32>
    %cst_251 = arith.constant dense<0.000000e+00> : vector<2x16xf32>
    %453 = tpu.matmul %445, %444, %cst_251 {dimension_numbers = #tpu.dot_dimension_numbers<[1], [0], [0], [1], [0, 0, 1, 1], [], []>} : vector<2x16xf32>, vector<16x16xf32>, vector<2x16xf32> -> vector<2x16xf32>
    %454 = arith.addf %436, %453 : vector<2x16xf32>
    %455 = arith.negf %450 : vector<2x16xf32>
    %456 = math.exp %455 : vector<2x16xf32>
    %cst_252 = arith.constant 1.000000e+00 : f32
    %457 = vector.broadcast %cst_252 : f32 to vector<2x16xf32>
    %458 = arith.addf %457, %456 : vector<2x16xf32>
    %459 = arith.divf %457, %458 : vector<2x16xf32>
    %460 = arith.mulf %459, %446 : vector<2x16xf32>
    %461 = arith.negf %448 : vector<2x16xf32>
    %462 = math.exp %461 : vector<2x16xf32>
    %cst_253 = arith.constant 1.000000e+00 : f32
    %463 = vector.broadcast %cst_253 : f32 to vector<2x16xf32>
    %464 = arith.addf %463, %462 : vector<2x16xf32>
    %465 = arith.divf %463, %464 : vector<2x16xf32>
    %466 = math.tanh %452 : vector<2x16xf32>
    %467 = arith.mulf %465, %466 : vector<2x16xf32>
    %468 = arith.addf %460, %467 : vector<2x16xf32>
    %469 = arith.negf %454 : vector<2x16xf32>
    %470 = math.exp %469 : vector<2x16xf32>
    %cst_254 = arith.constant 1.000000e+00 : f32
    %471 = vector.broadcast %cst_254 : f32 to vector<2x16xf32>
    %472 = arith.addf %471, %470 : vector<2x16xf32>
    %473 = arith.divf %471, %472 : vector<2x16xf32>
    %474 = math.tanh %468 : vector<2x16xf32>
    %475 = arith.mulf %473, %474 : vector<2x16xf32>
    %c1_i32_255 = arith.constant 1 : i32
    %476 = arith.addi %c1_i32_255, %c0_i32_247 : i32
    %c2_i32_256 = arith.constant 2 : i32
    %477 = arith.muli %476, %c2_i32_256 : i32
    %478 = arith.index_cast %477 : i32 to index
    %c0_257 = arith.constant 0 : index
    %479 = vector.load %arg13[%478, %c0_257] : memref<20x16xf32, #tpu.memory_space<vmem>>, vector<2x16xf32>
    tpu.vector_store %arg13[%478, %c0_257], %475 {strides = array<i32>} : memref<20x16xf32, #tpu.memory_space<vmem>>, vector<2x16xf32>,
    %c1_i32_258 = arith.constant 1 : i32
    %cst_259 = arith.constant dense<0.000000e+00> : vector<2x16xf32>
    %480 = tpu.matmul %475, %438, %cst_259 {dimension_numbers = #tpu.dot_dimension_numbers<[1], [0], [0], [1], [0, 0, 1, 1], [], []>} : vector<2x16xf32>, vector<16x16xf32>, vector<2x16xf32> -> vector<2x16xf32>
    %481 = arith.addf %415, %480 : vector<2x16xf32>
    %cst_260 = arith.constant dense<0.000000e+00> : vector<2x16xf32>
    %482 = tpu.matmul %475, %440, %cst_260 {dimension_numbers = #tpu.dot_dimension_numbers<[1], [0], [0], [1], [0, 0, 1, 1], [], []>} : vector<2x16xf32>, vector<16x16xf32>, vector<2x16xf32> -> vector<2x16xf32>
    %483 = arith.addf %422, %482 : vector<2x16xf32>
    %cst_261 = arith.constant dense<0.000000e+00> : vector<2x16xf32>
    %484 = tpu.matmul %475, %442, %cst_261 {dimension_numbers = #tpu.dot_dimension_numbers<[1], [0], [0], [1], [0, 0, 1, 1], [], []>} : vector<2x16xf32>, vector<16x16xf32>, vector<2x16xf32> -> vector<2x16xf32>
    %485 = arith.addf %429, %484 : vector<2x16xf32>
    %cst_262 = arith.constant dense<0.000000e+00> : vector<2x16xf32>
    %486 = tpu.matmul %475, %444, %cst_262 {dimension_numbers = #tpu.dot_dimension_numbers<[1], [0], [0], [1], [0, 0, 1, 1], [], []>} : vector<2x16xf32>, vector<16x16xf32>, vector<2x16xf32> -> vector<2x16xf32>
    %487 = arith.addf %436, %486 : vector<2x16xf32>
    %488 = arith.negf %483 : vector<2x16xf32>
    %489 = math.exp %488 : vector<2x16xf32>
    %cst_263 = arith.constant 1.000000e+00 : f32
    %490 = vector.broadcast %cst_263 : f32 to vector<2x16xf32>
    %491 = arith.addf %490, %489 : vector<2x16xf32>
    %492 = arith.divf %490, %491 : vector<2x16xf32>
    %493 = arith.mulf %492, %468 : vector<2x16xf32>
    %494 = arith.negf %481 : vector<2x16xf32>
    %495 = math.exp %494 : vector<2x16xf32>
    %cst_264 = arith.constant 1.000000e+00 : f32
    %496 = vector.broadcast %cst_264 : f32 to vector<2x16xf32>
    %497 = arith.addf %496, %495 : vector<2x16xf32>
    %498 = arith.divf %496, %497 : vector<2x16xf32>
    %499 = math.tanh %485 : vector<2x16xf32>
    %500 = arith.mulf %498, %499 : vector<2x16xf32>
    %501 = arith.addf %493, %500 : vector<2x16xf32>
    %502 = arith.negf %487 : vector<2x16xf32>
    %503 = math.exp %502 : vector<2x16xf32>
    %cst_265 = arith.constant 1.000000e+00 : f32
    %504 = vector.broadcast %cst_265 : f32 to vector<2x16xf32>
    %505 = arith.addf %504, %503 : vector<2x16xf32>
    %506 = arith.divf %504, %505 : vector<2x16xf32>
    %507 = math.tanh %501 : vector<2x16xf32>
    %508 = arith.mulf %506, %507 : vector<2x16xf32>
    %c1_i32_266 = arith.constant 1 : i32
    %509 = arith.addi %c1_i32_266, %c1_i32_258 : i32
    %c2_i32_267 = arith.constant 2 : i32
    %510 = arith.muli %509, %c2_i32_267 : i32
    %511 = arith.index_cast %510 : i32 to index
    %c0_268 = arith.constant 0 : index
    %512 = vector.load %arg13[%511, %c0_268] : memref<20x16xf32, #tpu.memory_space<vmem>>, vector<2x16xf32>
    tpu.vector_store %arg13[%511, %c0_268], %508 {strides = array<i32>} : memref<20x16xf32, #tpu.memory_space<vmem>>, vector<2x16xf32>,
    %c2_i32_269 = arith.constant 2 : i32
    %cst_270 = arith.constant dense<0.000000e+00> : vector<2x16xf32>
    %513 = tpu.matmul %508, %438, %cst_270 {dimension_numbers = #tpu.dot_dimension_numbers<[1], [0], [0], [1], [0, 0, 1, 1], [], []>} : vector<2x16xf32>, vector<16x16xf32>, vector<2x16xf32> -> vector<2x16xf32>
    %514 = arith.addf %415, %513 : vector<2x16xf32>
    %cst_271 = arith.constant dense<0.000000e+00> : vector<2x16xf32>
    %515 = tpu.matmul %508, %440, %cst_271 {dimension_numbers = #tpu.dot_dimension_numbers<[1], [0], [0], [1], [0, 0, 1, 1], [], []>} : vector<2x16xf32>, vector<16x16xf32>, vector<2x16xf32> -> vector<2x16xf32>
    %516 = arith.addf %422, %515 : vector<2x16xf32>
    %cst_272 = arith.constant dense<0.000000e+00> : vector<2x16xf32>
    %517 = tpu.matmul %508, %442, %cst_272 {dimension_numbers = #tpu.dot_dimension_numbers<[1], [0], [0], [1], [0, 0, 1, 1], [], []>} : vector<2x16xf32>, vector<16x16xf32>, vector<2x16xf32> -> vector<2x16xf32>
    %518 = arith.addf %429, %517 : vector<2x16xf32>
    %cst_273 = arith.constant dense<0.000000e+00> : vector<2x16xf32>
    %519 = tpu.matmul %508, %444, %cst_273 {dimension_numbers = #tpu.dot_dimension_numbers<[1], [0], [0], [1], [0, 0, 1, 1], [], []>} : vector<2x16xf32>, vector<16x16xf32>, vector<2x16xf32> -> vector<2x16xf32>
    %520 = arith.addf %436, %519 : vector<2x16xf32>
    %521 = arith.negf %516 : vector<2x16xf32>
    %522 = math.exp %521 : vector<2x16xf32>
    %cst_274 = arith.constant 1.000000e+00 : f32
    %523 = vector.broadcast %cst_274 : f32 to vector<2x16xf32>
    %524 = arith.addf %523, %522 : vector<2x16xf32>
    %525 = arith.divf %523, %524 : vector<2x16xf32>
    %526 = arith.mulf %525, %501 : vector<2x16xf32>
    %527 = arith.negf %514 : vector<2x16xf32>
    %528 = math.exp %527 : vector<2x16xf32>
    %cst_275 = arith.constant 1.000000e+00 : f32
    %529 = vector.broadcast %cst_275 : f32 to vector<2x16xf32>
    %530 = arith.addf %529, %528 : vector<2x16xf32>
    %531 = arith.divf %529, %530 : vector<2x16xf32>
    %532 = math.tanh %518 : vector<2x16xf32>
    %533 = arith.mulf %531, %532 : vector<2x16xf32>
    %534 = arith.addf %526, %533 : vector<2x16xf32>
    %535 = arith.negf %520 : vector<2x16xf32>
    %536 = math.exp %535 : vector<2x16xf32>
    %cst_276 = arith.constant 1.000000e+00 : f32
    %537 = vector.broadcast %cst_276 : f32 to vector<2x16xf32>
    %538 = arith.addf %537, %536 : vector<2x16xf32>
    %539 = arith.divf %537, %538 : vector<2x16xf32>
    %540 = math.tanh %534 : vector<2x16xf32>
    %541 = arith.mulf %539, %540 : vector<2x16xf32>
    %c1_i32_277 = arith.constant 1 : i32
    %542 = arith.addi %c1_i32_277, %c2_i32_269 : i32
    %c2_i32_278 = arith.constant 2 : i32
    %543 = arith.muli %542, %c2_i32_278 : i32
    %544 = arith.index_cast %543 : i32 to index
    %c0_279 = arith.constant 0 : index
    %545 = vector.load %arg13[%544, %c0_279] : memref<20x16xf32, #tpu.memory_space<vmem>>, vector<2x16xf32>
    tpu.vector_store %arg13[%544, %c0_279], %541 {strides = array<i32>} : memref<20x16xf32, #tpu.memory_space<vmem>>, vector<2x16xf32>,
    %c3_i32_280 = arith.constant 3 : i32
    %cst_281 = arith.constant dense<0.000000e+00> : vector<2x16xf32>
    %546 = tpu.matmul %541, %438, %cst_281 {dimension_numbers = #tpu.dot_dimension_numbers<[1], [0], [0], [1], [0, 0, 1, 1], [], []>} : vector<2x16xf32>, vector<16x16xf32>, vector<2x16xf32> -> vector<2x16xf32>
    %547 = arith.addf %415, %546 : vector<2x16xf32>
    %cst_282 = arith.constant dense<0.000000e+00> : vector<2x16xf32>
    %548 = tpu.matmul %541, %440, %cst_282 {dimension_numbers = #tpu.dot_dimension_numbers<[1], [0], [0], [1], [0, 0, 1, 1], [], []>} : vector<2x16xf32>, vector<16x16xf32>, vector<2x16xf32> -> vector<2x16xf32>
    %549 = arith.addf %422, %548 : vector<2x16xf32>
    %cst_283 = arith.constant dense<0.000000e+00> : vector<2x16xf32>
    %550 = tpu.matmul %541, %442, %cst_283 {dimension_numbers = #tpu.dot_dimension_numbers<[1], [0], [0], [1], [0, 0, 1, 1], [], []>} : vector<2x16xf32>, vector<16x16xf32>, vector<2x16xf32> -> vector<2x16xf32>
    %551 = arith.addf %429, %550 : vector<2x16xf32>
    %cst_284 = arith.constant dense<0.000000e+00> : vector<2x16xf32>
    %552 = tpu.matmul %541, %444, %cst_284 {dimension_numbers = #tpu.dot_dimension_numbers<[1], [0], [0], [1], [0, 0, 1, 1], [], []>} : vector<2x16xf32>, vector<16x16xf32>, vector<2x16xf32> -> vector<2x16xf32>
    %553 = arith.addf %436, %552 : vector<2x16xf32>
    %554 = arith.negf %549 : vector<2x16xf32>
    %555 = math.exp %554 : vector<2x16xf32>
    %cst_285 = arith.constant 1.000000e+00 : f32
    %556 = vector.broadcast %cst_285 : f32 to vector<2x16xf32>
    %557 = arith.addf %556, %555 : vector<2x16xf32>
    %558 = arith.divf %556, %557 : vector<2x16xf32>
    %559 = arith.mulf %558, %534 : vector<2x16xf32>
    %560 = arith.negf %547 : vector<2x16xf32>
    %561 = math.exp %560 : vector<2x16xf32>
    %cst_286 = arith.constant 1.000000e+00 : f32
    %562 = vector.broadcast %cst_286 : f32 to vector<2x16xf32>
    %563 = arith.addf %562, %561 : vector<2x16xf32>
    %564 = arith.divf %562, %563 : vector<2x16xf32>
    %565 = math.tanh %551 : vector<2x16xf32>
    %566 = arith.mulf %564, %565 : vector<2x16xf32>
    %567 = arith.addf %559, %566 : vector<2x16xf32>
    %568 = arith.negf %553 : vector<2x16xf32>
    %569 = math.exp %568 : vector<2x16xf32>
    %cst_287 = arith.constant 1.000000e+00 : f32
    %570 = vector.broadcast %cst_287 : f32 to vector<2x16xf32>
    %571 = arith.addf %570, %569 : vector<2x16xf32>
    %572 = arith.divf %570, %571 : vector<2x16xf32>
    %573 = math.tanh %567 : vector<2x16xf32>
    %574 = arith.mulf %572, %573 : vector<2x16xf32>
    %c1_i32_288 = arith.constant 1 : i32
    %575 = arith.addi %c1_i32_288, %c3_i32_280 : i32
    %c2_i32_289 = arith.constant 2 : i32
    %576 = arith.muli %575, %c2_i32_289 : i32
    %577 = arith.index_cast %576 : i32 to index
    %c0_290 = arith.constant 0 : index
    %578 = vector.load %arg13[%577, %c0_290] : memref<20x16xf32, #tpu.memory_space<vmem>>, vector<2x16xf32>
    tpu.vector_store %arg13[%577, %c0_290], %574 {strides = array<i32>} : memref<20x16xf32, #tpu.memory_space<vmem>>, vector<2x16xf32>,
    %c4_i32_291 = arith.constant 4 : i32
    %cst_292 = arith.constant dense<0.000000e+00> : vector<2x16xf32>
    %579 = tpu.matmul %574, %438, %cst_292 {dimension_numbers = #tpu.dot_dimension_numbers<[1], [0], [0], [1], [0, 0, 1, 1], [], []>} : vector<2x16xf32>, vector<16x16xf32>, vector<2x16xf32> -> vector<2x16xf32>
    %580 = arith.addf %415, %579 : vector<2x16xf32>
    %cst_293 = arith.constant dense<0.000000e+00> : vector<2x16xf32>
    %581 = tpu.matmul %574, %440, %cst_293 {dimension_numbers = #tpu.dot_dimension_numbers<[1], [0], [0], [1], [0, 0, 1, 1], [], []>} : vector<2x16xf32>, vector<16x16xf32>, vector<2x16xf32> -> vector<2x16xf32>
    %582 = arith.addf %422, %581 : vector<2x16xf32>
    %cst_294 = arith.constant dense<0.000000e+00> : vector<2x16xf32>
    %583 = tpu.matmul %574, %442, %cst_294 {dimension_numbers = #tpu.dot_dimension_numbers<[1], [0], [0], [1], [0, 0, 1, 1], [], []>} : vector<2x16xf32>, vector<16x16xf32>, vector<2x16xf32> -> vector<2x16xf32>
    %584 = arith.addf %429, %583 : vector<2x16xf32>
    %cst_295 = arith.constant dense<0.000000e+00> : vector<2x16xf32>
    %585 = tpu.matmul %574, %444, %cst_295 {dimension_numbers = #tpu.dot_dimension_numbers<[1], [0], [0], [1], [0, 0, 1, 1], [], []>} : vector<2x16xf32>, vector<16x16xf32>, vector<2x16xf32> -> vector<2x16xf32>
    %586 = arith.addf %436, %585 : vector<2x16xf32>
    %587 = arith.negf %582 : vector<2x16xf32>
    %588 = math.exp %587 : vector<2x16xf32>
    %cst_296 = arith.constant 1.000000e+00 : f32
    %589 = vector.broadcast %cst_296 : f32 to vector<2x16xf32>
    %590 = arith.addf %589, %588 : vector<2x16xf32>
    %591 = arith.divf %589, %590 : vector<2x16xf32>
    %592 = arith.mulf %591, %567 : vector<2x16xf32>
    %593 = arith.negf %580 : vector<2x16xf32>
    %594 = math.exp %593 : vector<2x16xf32>
    %cst_297 = arith.constant 1.000000e+00 : f32
    %595 = vector.broadcast %cst_297 : f32 to vector<2x16xf32>
    %596 = arith.addf %595, %594 : vector<2x16xf32>
    %597 = arith.divf %595, %596 : vector<2x16xf32>
    %598 = math.tanh %584 : vector<2x16xf32>
    %599 = arith.mulf %597, %598 : vector<2x16xf32>
    %600 = arith.addf %592, %599 : vector<2x16xf32>
    %601 = arith.negf %586 : vector<2x16xf32>
    %602 = math.exp %601 : vector<2x16xf32>
    %cst_298 = arith.constant 1.000000e+00 : f32
    %603 = vector.broadcast %cst_298 : f32 to vector<2x16xf32>
    %604 = arith.addf %603, %602 : vector<2x16xf32>
    %605 = arith.divf %603, %604 : vector<2x16xf32>
    %606 = math.tanh %600 : vector<2x16xf32>
    %607 = arith.mulf %605, %606 : vector<2x16xf32>
    %c1_i32_299 = arith.constant 1 : i32
    %608 = arith.addi %c1_i32_299, %c4_i32_291 : i32
    %c2_i32_300 = arith.constant 2 : i32
    %609 = arith.muli %608, %c2_i32_300 : i32
    %610 = arith.index_cast %609 : i32 to index
    %c0_301 = arith.constant 0 : index
    %611 = vector.load %arg13[%610, %c0_301] : memref<20x16xf32, #tpu.memory_space<vmem>>, vector<2x16xf32>
    tpu.vector_store %arg13[%610, %c0_301], %607 {strides = array<i32>} : memref<20x16xf32, #tpu.memory_space<vmem>>, vector<2x16xf32>,
    %c5_i32_302 = arith.constant 5 : i32
    %cst_303 = arith.constant dense<0.000000e+00> : vector<2x16xf32>
    %612 = tpu.matmul %607, %438, %cst_303 {dimension_numbers = #tpu.dot_dimension_numbers<[1], [0], [0], [1], [0, 0, 1, 1], [], []>} : vector<2x16xf32>, vector<16x16xf32>, vector<2x16xf32> -> vector<2x16xf32>
    %613 = arith.addf %415, %612 : vector<2x16xf32>
    %cst_304 = arith.constant dense<0.000000e+00> : vector<2x16xf32>
    %614 = tpu.matmul %607, %440, %cst_304 {dimension_numbers = #tpu.dot_dimension_numbers<[1], [0], [0], [1], [0, 0, 1, 1], [], []>} : vector<2x16xf32>, vector<16x16xf32>, vector<2x16xf32> -> vector<2x16xf32>
    %615 = arith.addf %422, %614 : vector<2x16xf32>
    %cst_305 = arith.constant dense<0.000000e+00> : vector<2x16xf32>
    %616 = tpu.matmul %607, %442, %cst_305 {dimension_numbers = #tpu.dot_dimension_numbers<[1], [0], [0], [1], [0, 0, 1, 1], [], []>} : vector<2x16xf32>, vector<16x16xf32>, vector<2x16xf32> -> vector<2x16xf32>
    %617 = arith.addf %429, %616 : vector<2x16xf32>
    %cst_306 = arith.constant dense<0.000000e+00> : vector<2x16xf32>
    %618 = tpu.matmul %607, %444, %cst_306 {dimension_numbers = #tpu.dot_dimension_numbers<[1], [0], [0], [1], [0, 0, 1, 1], [], []>} : vector<2x16xf32>, vector<16x16xf32>, vector<2x16xf32> -> vector<2x16xf32>
    %619 = arith.addf %436, %618 : vector<2x16xf32>
    %620 = arith.negf %615 : vector<2x16xf32>
    %621 = math.exp %620 : vector<2x16xf32>
    %cst_307 = arith.constant 1.000000e+00 : f32
    %622 = vector.broadcast %cst_307 : f32 to vector<2x16xf32>
    %623 = arith.addf %622, %621 : vector<2x16xf32>
    %624 = arith.divf %622, %623 : vector<2x16xf32>
    %625 = arith.mulf %624, %600 : vector<2x16xf32>
    %626 = arith.negf %613 : vector<2x16xf32>
    %627 = math.exp %626 : vector<2x16xf32>
    %cst_308 = arith.constant 1.000000e+00 : f32
    %628 = vector.broadcast %cst_308 : f32 to vector<2x16xf32>
    %629 = arith.addf %628, %627 : vector<2x16xf32>
    %630 = arith.divf %628, %629 : vector<2x16xf32>
    %631 = math.tanh %617 : vector<2x16xf32>
    %632 = arith.mulf %630, %631 : vector<2x16xf32>
    %633 = arith.addf %625, %632 : vector<2x16xf32>
    %634 = arith.negf %619 : vector<2x16xf32>
    %635 = math.exp %634 : vector<2x16xf32>
    %cst_309 = arith.constant 1.000000e+00 : f32
    %636 = vector.broadcast %cst_309 : f32 to vector<2x16xf32>
    %637 = arith.addf %636, %635 : vector<2x16xf32>
    %638 = arith.divf %636, %637 : vector<2x16xf32>
    %639 = math.tanh %633 : vector<2x16xf32>
    %640 = arith.mulf %638, %639 : vector<2x16xf32>
    %c1_i32_310 = arith.constant 1 : i32
    %641 = arith.addi %c1_i32_310, %c5_i32_302 : i32
    %c2_i32_311 = arith.constant 2 : i32
    %642 = arith.muli %641, %c2_i32_311 : i32
    %643 = arith.index_cast %642 : i32 to index
    %c0_312 = arith.constant 0 : index
    %644 = vector.load %arg13[%643, %c0_312] : memref<20x16xf32, #tpu.memory_space<vmem>>, vector<2x16xf32>
    tpu.vector_store %arg13[%643, %c0_312], %640 {strides = array<i32>} : memref<20x16xf32, #tpu.memory_space<vmem>>, vector<2x16xf32>,
    %c6_i32_313 = arith.constant 6 : i32
    %cst_314 = arith.constant dense<0.000000e+00> : vector<2x16xf32>
    %645 = tpu.matmul %640, %438, %cst_314 {dimension_numbers = #tpu.dot_dimension_numbers<[1], [0], [0], [1], [0, 0, 1, 1], [], []>} : vector<2x16xf32>, vector<16x16xf32>, vector<2x16xf32> -> vector<2x16xf32>
    %646 = arith.addf %415, %645 : vector<2x16xf32>
    %cst_315 = arith.constant dense<0.000000e+00> : vector<2x16xf32>
    %647 = tpu.matmul %640, %440, %cst_315 {dimension_numbers = #tpu.dot_dimension_numbers<[1], [0], [0], [1], [0, 0, 1, 1], [], []>} : vector<2x16xf32>, vector<16x16xf32>, vector<2x16xf32> -> vector<2x16xf32>
    %648 = arith.addf %422, %647 : vector<2x16xf32>
    %cst_316 = arith.constant dense<0.000000e+00> : vector<2x16xf32>
    %649 = tpu.matmul %640, %442, %cst_316 {dimension_numbers = #tpu.dot_dimension_numbers<[1], [0], [0], [1], [0, 0, 1, 1], [], []>} : vector<2x16xf32>, vector<16x16xf32>, vector<2x16xf32> -> vector<2x16xf32>
    %650 = arith.addf %429, %649 : vector<2x16xf32>
    %cst_317 = arith.constant dense<0.000000e+00> : vector<2x16xf32>
    %651 = tpu.matmul %640, %444, %cst_317 {dimension_numbers = #tpu.dot_dimension_numbers<[1], [0], [0], [1], [0, 0, 1, 1], [], []>} : vector<2x16xf32>, vector<16x16xf32>, vector<2x16xf32> -> vector<2x16xf32>
    %652 = arith.addf %436, %651 : vector<2x16xf32>
    %653 = arith.negf %648 : vector<2x16xf32>
    %654 = math.exp %653 : vector<2x16xf32>
    %cst_318 = arith.constant 1.000000e+00 : f32
    %655 = vector.broadcast %cst_318 : f32 to vector<2x16xf32>
    %656 = arith.addf %655, %654 : vector<2x16xf32>
    %657 = arith.divf %655, %656 : vector<2x16xf32>
    %658 = arith.mulf %657, %633 : vector<2x16xf32>
    %659 = arith.negf %646 : vector<2x16xf32>
    %660 = math.exp %659 : vector<2x16xf32>
    %cst_319 = arith.constant 1.000000e+00 : f32
    %661 = vector.broadcast %cst_319 : f32 to vector<2x16xf32>
    %662 = arith.addf %661, %660 : vector<2x16xf32>
    %663 = arith.divf %661, %662 : vector<2x16xf32>
    %664 = math.tanh %650 : vector<2x16xf32>
    %665 = arith.mulf %663, %664 : vector<2x16xf32>
    %666 = arith.addf %658, %665 : vector<2x16xf32>
    %667 = arith.negf %652 : vector<2x16xf32>
    %668 = math.exp %667 : vector<2x16xf32>
    %cst_320 = arith.constant 1.000000e+00 : f32
    %669 = vector.broadcast %cst_320 : f32 to vector<2x16xf32>
    %670 = arith.addf %669, %668 : vector<2x16xf32>
    %671 = arith.divf %669, %670 : vector<2x16xf32>
    %672 = math.tanh %666 : vector<2x16xf32>
    %673 = arith.mulf %671, %672 : vector<2x16xf32>
    %c1_i32_321 = arith.constant 1 : i32
    %674 = arith.addi %c1_i32_321, %c6_i32_313 : i32
    %c2_i32_322 = arith.constant 2 : i32
    %675 = arith.muli %674, %c2_i32_322 : i32
    %676 = arith.index_cast %675 : i32 to index
    %c0_323 = arith.constant 0 : index
    %677 = vector.load %arg13[%676, %c0_323] : memref<20x16xf32, #tpu.memory_space<vmem>>, vector<2x16xf32>
    tpu.vector_store %arg13[%676, %c0_323], %673 {strides = array<i32>} : memref<20x16xf32, #tpu.memory_space<vmem>>, vector<2x16xf32>,
    %c7_i32_324 = arith.constant 7 : i32
    %cst_325 = arith.constant dense<0.000000e+00> : vector<2x16xf32>
    %678 = tpu.matmul %673, %438, %cst_325 {dimension_numbers = #tpu.dot_dimension_numbers<[1], [0], [0], [1], [0, 0, 1, 1], [], []>} : vector<2x16xf32>, vector<16x16xf32>, vector<2x16xf32> -> vector<2x16xf32>
    %679 = arith.addf %415, %678 : vector<2x16xf32>
    %cst_326 = arith.constant dense<0.000000e+00> : vector<2x16xf32>
    %680 = tpu.matmul %673, %440, %cst_326 {dimension_numbers = #tpu.dot_dimension_numbers<[1], [0], [0], [1], [0, 0, 1, 1], [], []>} : vector<2x16xf32>, vector<16x16xf32>, vector<2x16xf32> -> vector<2x16xf32>
    %681 = arith.addf %422, %680 : vector<2x16xf32>
    %cst_327 = arith.constant dense<0.000000e+00> : vector<2x16xf32>
    %682 = tpu.matmul %673, %442, %cst_327 {dimension_numbers = #tpu.dot_dimension_numbers<[1], [0], [0], [1], [0, 0, 1, 1], [], []>} : vector<2x16xf32>, vector<16x16xf32>, vector<2x16xf32> -> vector<2x16xf32>
    %683 = arith.addf %429, %682 : vector<2x16xf32>
    %cst_328 = arith.constant dense<0.000000e+00> : vector<2x16xf32>
    %684 = tpu.matmul %673, %444, %cst_328 {dimension_numbers = #tpu.dot_dimension_numbers<[1], [0], [0], [1], [0, 0, 1, 1], [], []>} : vector<2x16xf32>, vector<16x16xf32>, vector<2x16xf32> -> vector<2x16xf32>
    %685 = arith.addf %436, %684 : vector<2x16xf32>
    %686 = arith.negf %681 : vector<2x16xf32>
    %687 = math.exp %686 : vector<2x16xf32>
    %cst_329 = arith.constant 1.000000e+00 : f32
    %688 = vector.broadcast %cst_329 : f32 to vector<2x16xf32>
    %689 = arith.addf %688, %687 : vector<2x16xf32>
    %690 = arith.divf %688, %689 : vector<2x16xf32>
    %691 = arith.mulf %690, %666 : vector<2x16xf32>
    %692 = arith.negf %679 : vector<2x16xf32>
    %693 = math.exp %692 : vector<2x16xf32>
    %cst_330 = arith.constant 1.000000e+00 : f32
    %694 = vector.broadcast %cst_330 : f32 to vector<2x16xf32>
    %695 = arith.addf %694, %693 : vector<2x16xf32>
    %696 = arith.divf %694, %695 : vector<2x16xf32>
    %697 = math.tanh %683 : vector<2x16xf32>
    %698 = arith.mulf %696, %697 : vector<2x16xf32>
    %699 = arith.addf %691, %698 : vector<2x16xf32>
    %700 = arith.negf %685 : vector<2x16xf32>
    %701 = math.exp %700 : vector<2x16xf32>
    %cst_331 = arith.constant 1.000000e+00 : f32
    %702 = vector.broadcast %cst_331 : f32 to vector<2x16xf32>
    %703 = arith.addf %702, %701 : vector<2x16xf32>
    %704 = arith.divf %702, %703 : vector<2x16xf32>
    %705 = math.tanh %699 : vector<2x16xf32>
    %706 = arith.mulf %704, %705 : vector<2x16xf32>
    %c1_i32_332 = arith.constant 1 : i32
    %707 = arith.addi %c1_i32_332, %c7_i32_324 : i32
    %c2_i32_333 = arith.constant 2 : i32
    %708 = arith.muli %707, %c2_i32_333 : i32
    %709 = arith.index_cast %708 : i32 to index
    %c0_334 = arith.constant 0 : index
    %710 = vector.load %arg13[%709, %c0_334] : memref<20x16xf32, #tpu.memory_space<vmem>>, vector<2x16xf32>
    tpu.vector_store %arg13[%709, %c0_334], %706 {strides = array<i32>} : memref<20x16xf32, #tpu.memory_space<vmem>>, vector<2x16xf32>,
    %c8_i32_335 = arith.constant 8 : i32
    %c0_336 = arith.constant 0 : index
    %c0_337 = arith.constant 0 : index
    %711 = vector.load %arg13[%c0_336, %c0_337] : memref<20x16xf32, #tpu.memory_space<vmem>>, vector<16x16xf32>
    %c0_338 = arith.constant 0 : index
    %c0_339 = arith.constant 0 : index
    %c0_340 = arith.constant 0 : index
    %712 = vector.load %arg10[%c0_338, %c0_339, %c0_340] : memref<3x16x16xf32, #tpu.memory_space<vmem>>, vector<1x16x16xf32>
    %713 = vector.shape_cast %712 : vector<1x16x16xf32> to vector<16x16xf32>
    %cst_341 = arith.constant dense<0.000000e+00> : vector<16x16xf32>
    %714 = tpu.matmul %711, %713, %cst_341 {dimension_numbers = #tpu.dot_dimension_numbers<[1], [0], [0], [1], [0, 0, 1, 1], [], []>} : vector<16x16xf32>, vector<16x16xf32>, vector<16x16xf32> -> vector<16x16xf32>
    %c2_342 = arith.constant 2 : index
    %c0_343 = arith.constant 0 : index
    %715 = vector.load %arg13[%c2_342, %c0_343] : memref<20x16xf32, #tpu.memory_space<vmem>>, vector<16x16xf32>
    %c1_344 = arith.constant 1 : index
    %c0_345 = arith.constant 0 : index
    %c0_346 = arith.constant 0 : index
    %716 = vector.load %arg10[%c1_344, %c0_345, %c0_346] : memref<3x16x16xf32, #tpu.memory_space<vmem>>, vector<1x16x16xf32>
    %717 = vector.shape_cast %716 : vector<1x16x16xf32> to vector<16x16xf32>
    %cst_347 = arith.constant dense<0.000000e+00> : vector<16x16xf32>
    %718 = tpu.matmul %715, %717, %cst_347 {dimension_numbers = #tpu.dot_dimension_numbers<[1], [0], [0], [1], [0, 0, 1, 1], [], []>} : vector<16x16xf32>, vector<16x16xf32>, vector<16x16xf32> -> vector<16x16xf32>
    %719 = arith.addf %714, %718 : vector<16x16xf32>
    %c4_348 = arith.constant 4 : index
    %c0_349 = arith.constant 0 : index
    %720 = vector.load %arg13[%c4_348, %c0_349] : memref<20x16xf32, #tpu.memory_space<vmem>>, vector<16x16xf32>
    %c2_350 = arith.constant 2 : index
    %c0_351 = arith.constant 0 : index
    %c0_352 = arith.constant 0 : index
    %721 = vector.load %arg10[%c2_350, %c0_351, %c0_352] : memref<3x16x16xf32, #tpu.memory_space<vmem>>, vector<1x16x16xf32>
    %722 = vector.shape_cast %721 : vector<1x16x16xf32> to vector<16x16xf32>
    %cst_353 = arith.constant dense<0.000000e+00> : vector<16x16xf32>
    %723 = tpu.matmul %720, %722, %cst_353 {dimension_numbers = #tpu.dot_dimension_numbers<[1], [0], [0], [1], [0, 0, 1, 1], [], []>} : vector<16x16xf32>, vector<16x16xf32>, vector<16x16xf32> -> vector<16x16xf32>
    %724 = arith.addf %719, %723 : vector<16x16xf32>
    %c0_354 = arith.constant 0 : index
    %c0_355 = arith.constant 0 : index
    %725 = vector.load %arg11[%c0_354, %c0_355] : memref<1x16xf32, #tpu.memory_space<vmem>>, vector<1x16xf32>
    %726 = vector.broadcast %725 : vector<1x16xf32> to vector<16x16xf32>
    %727 = arith.addf %724, %726 : vector<16x16xf32>
    %c0_356 = arith.constant 0 : index
    %c0_357 = arith.constant 0 : index
    %c0_358 = arith.constant 0 : index
    %728 = vector.load %arg12[%c0_356, %c0_357, %c0_358] : memref<1x16x16xf32, #tpu.memory_space<vmem>>, vector<1x16x16xf32>
    %729 = vector.shape_cast %728 : vector<1x16x16xf32> to vector<16x16xf32>
    %730 = vector.shape_cast %727 : vector<16x16xf32> to vector<1x16x16xf32>
    tpu.vector_store %arg12[%c0_356, %c0_357, %c0_358], %730 {strides = array<i32>} : memref<1x16x16xf32, #tpu.memory_space<vmem>>, vector<1x16x16xf32>,
    return
  }
  func.func @transform_0(%arg0: i32) -> (i32, i32, i32) {
    %c0_i32 = arith.constant 0 : i32
    %c0_i32_0 = arith.constant 0 : i32
    %c0_i32_1 = arith.constant 0 : i32
    return %arg0, %c0_i32, %c0_i32_0 : i32, i32, i32
  }
  func.func @transform_1(%arg0: i32) -> (i32, i32, i32) {
    %c0_i32 = arith.constant 0 : i32
    %c0_i32_0 = arith.constant 0 : i32
    %c0_i32_1 = arith.constant 0 : i32
    %c0_i32_2 = arith.constant 0 : i32
    return %c0_i32, %c0_i32_0, %c0_i32_1 : i32, i32, i32
  }
  func.func @transform_2(%arg0: i32) -> (i32, i32) {
    %c0_i32 = arith.constant 0 : i32
    %c0_i32_0 = arith.constant 0 : i32
    %c0_i32_1 = arith.constant 0 : i32
    return %c0_i32, %c0_i32_0 : i32, i32
  }
  func.func @transform_3(%arg0: i32) -> (i32, i32, i32) {
    %c0_i32 = arith.constant 0 : i32
    %c0_i32_0 = arith.constant 0 : i32
    %c0_i32_1 = arith.constant 0 : i32
    %c0_i32_2 = arith.constant 0 : i32
    return %c0_i32, %c0_i32_0, %c0_i32_1 : i32, i32, i32
  }
  func.func @transform_4(%arg0: i32) -> (i32, i32, i32) {
    %c0_i32 = arith.constant 0 : i32
    %c0_i32_0 = arith.constant 0 : i32
    %c0_i32_1 = arith.constant 0 : i32
    %c0_i32_2 = arith.constant 0 : i32
    return %c0_i32, %c0_i32_0, %c0_i32_1 : i32, i32, i32
  }
  func.func @transform_5(%arg0: i32) -> (i32, i32, i32) {
    %c0_i32 = arith.constant 0 : i32
    %c0_i32_0 = arith.constant 0 : i32
    %c0_i32_1 = arith.constant 0 : i32
    %c0_i32_2 = arith.constant 0 : i32
    return %c0_i32, %c0_i32_0, %c0_i32_1 : i32, i32, i32
  }
  func.func @transform_6(%arg0: i32) -> (i32, i32, i32) {
    %c0_i32 = arith.constant 0 : i32
    %c0_i32_0 = arith.constant 0 : i32
    %c0_i32_1 = arith.constant 0 : i32
    %c0_i32_2 = arith.constant 0 : i32
    return %c0_i32, %c0_i32_0, %c0_i32_1 : i32, i32, i32
  }
  func.func @transform_7(%arg0: i32) -> (i32, i32, i32) {
    %c0_i32 = arith.constant 0 : i32
    %c0_i32_0 = arith.constant 0 : i32
    %c0_i32_1 = arith.constant 0 : i32
    %c0_i32_2 = arith.constant 0 : i32
    return %c0_i32, %c0_i32_0, %c0_i32_1 : i32, i32, i32
  }
  func.func @transform_8(%arg0: i32) -> (i32, i32, i32) {
    %c0_i32 = arith.constant 0 : i32
    %c0_i32_0 = arith.constant 0 : i32
    %c0_i32_1 = arith.constant 0 : i32
    %c0_i32_2 = arith.constant 0 : i32
    return %c0_i32, %c0_i32_0, %c0_i32_1 : i32, i32, i32
  }
  func.func @transform_9(%arg0: i32) -> (i32, i32, i32) {
    %c0_i32 = arith.constant 0 : i32
    %c0_i32_0 = arith.constant 0 : i32
    %c0_i32_1 = arith.constant 0 : i32
    %c0_i32_2 = arith.constant 0 : i32
    return %c0_i32, %c0_i32_0, %c0_i32_1 : i32, i32, i32
  }
  func.func @transform_10(%arg0: i32) -> (i32, i32) {
    %c0_i32 = arith.constant 0 : i32
    %c0_i32_0 = arith.constant 0 : i32
    %c0_i32_1 = arith.constant 0 : i32
    return %c0_i32, %c0_i32_0 : i32, i32
  }
  func.func @transform_11(%arg0: i32) -> (i32, i32, i32) {
    %c0_i32 = arith.constant 0 : i32
    %c0_i32_0 = arith.constant 0 : i32
    %c0_i32_1 = arith.constant 0 : i32
    return %arg0, %c0_i32, %c0_i32_0 : i32, i32, i32
  }
}

</mosaic_0001>

<bundles_post_ra>
// kernel: tpu_custom_call.1
= control target key start
LH: loop header
LB: loop body
LE: loop exit
PB: predicated region body
PF: predicated region fallthrough
CT: control target
= control target key end

     0   :  { %16 = vsyncpa [#allocation5], 0  ;;  %s9039_s0 = inlined_call_operand.hbm [shape: f32[1,16,16], index: 0, kind: input, shape index: {}]   ;;  %s9040_s1 = inlined_call_operand.hbm [shape: f32[3,16,16], index: 1, kind: input, shape index: {}]   ;;  %s9041_s2 = inlined_call_operand.vmem [shape: f32[1,16], index: 2, kind: input, shape index: {}]   ;;  %s9042_s3 = inlined_call_operand.vmem [shape: f32[4,16,32], index: 3, kind: input, shape index: {}]   ;;  %s9043_s4 = inlined_call_operand.vmem [shape: f32[4,32,32], index: 4, kind: input, shape index: {}]   ;;  %s9044_s5 = inlined_call_operand.vmem [shape: f32[4,1,32], index: 5, kind: input, shape index: {}]   ;;  %s9045_s6 = inlined_call_operand.vmem [shape: f32[4,32,16], index: 6, kind: input, shape index: {}]   ;;  %s9046_s7 = inlined_call_operand.hbm [shape: f32[4,16,16], index: 7, kind: input, shape index: {}]   ;;  %s9047_s8 = inlined_call_operand.vmem [shape: f32[4,1,16], index: 8, kind: input, shape index: {}]   ;;  %s9048_s9 = inlined_call_operand.hbm [shape: f32[3,16,16], index: 9, kind: input, shape index: {}]   ;;  %s9049_s10 = inlined_call_operand.vmem [shape: f32[1,16], index: 10, kind: input, shape index: {}]   ;;  %s9050_s11 = inlined_call_operand.hbm [shape: f32[1,16,16], index: 11, kind: output, shape index: {}]  }
   0x1   :  { %17 = vsyncpa [#allocation8], 0 }
   0x2   :  { %18 = vsyncpa [#allocation11], 0 }
   0x3   :  { %19 = vsyncpa [#allocation6], 0  ;;  %s7966_s17 = smov [#allocation7]   ;;  %s7967_s19 = smov [#allocation4]  }
   0x4   :  { %s37_s18 = sshll.u32 %s7966_s17, 4  ;;  %s25_s20 = sshll.u32 %s7967_s19, 4  ;;  %s38_s18 = int_to_ptr.vmem [resolvable:$true] %s37_s18  ;;  %s26_s20 = int_to_ptr.vmem [resolvable:$true] %s25_s20 }
   0x5   :  { %s7866_s21 = scalar_lea.vmem %s38_s18, 768  ;;  %p7871_p1 = scmp.lt.s32.totalorder %s38_s18, %s38_s18 }
   0x6   :  { %p7867_p0 = scmp.ne.s32.totalorder %s38_s18, %s7866_s21  ;;  %p7872_p2 = scmp.lt.s32.totalorder %s7866_s21, %s7866_s21 }
   0x8   :  { %p7873_p3 = por %p7872_p2, %p7871_p1 }
   0xa   :  { %p7874_p4 = pnand %p7873_p3, %p7867_p0 }
   0xc   :  { %7877 = shalt.err (!%p7874_p4)
}
   0xd   :  { %s7968_s22 = smov 128   ;;  %s7969_s23 = smov 8  }
   0xe   :  { %43 = dma.hbm_to_vmem [thread:$0]  %s9040_s1, 768, %s38_s18, [#allocation8], %s7968_s22, %s7968_s22, %s7969_s23  }
   0xf   :  { %s7886_s26 = scalar_lea.vmem %s26_s20, 256  ;;  %p7891_p6 = scmp.lt.s32.totalorder %s26_s20, %s26_s20 }
  0x10   :  { %p7887_p5 = scmp.ne.s32.totalorder %s26_s20, %s7886_s26  ;;  %p7892_p7 = scmp.lt.s32.totalorder %s7886_s26, %s7886_s26 }
  0x12   :  { %p7893_p8 = por %p7892_p7, %p7891_p6 }
  0x14   :  { %p7894_p9 = pnand %p7893_p8, %p7887_p5 }
  0x16   :  { %7897 = shalt.err (!%p7894_p9)
}
  0x17   :  { %31 = dma.hbm_to_vmem [thread:$0]  %s9039_s0, 256, %s26_s20, [#allocation5], %s7968_s22, %s7968_s22, %s7969_s23  }
  0x18   :  { %s7970_s29 = smov [#allocation9]   ;;  %s7971_s12 = smov [#allocation10]  }
  0x19   :  { %s59_s30 = sshll.u32 %s7970_s29, 4  ;;  %s73_s13 = sshll.u32 %s7971_s12, 4  ;;  %s60_s30 = int_to_ptr.vmem [resolvable:$true] %s59_s30  ;;  %s74_s13 = int_to_ptr.vmem [resolvable:$true] %s73_s13 }
  0x1a   :  { %s7906_s1 = scalar_lea.vmem %s60_s30, 1024  ;;  %p7911_p11 = scmp.lt.s32.totalorder %s60_s30, %s60_s30 }
  0x1b   :  { %p7907_p10 = scmp.ne.s32.totalorder %s60_s30, %s7906_s1  ;;  %p7912_p12 = scmp.lt.s32.totalorder %s7906_s1, %s7906_s1 }
  0x1d   :  { %p7913_p13 = por %p7912_p12, %p7911_p11 }
  0x1f   :  { %p7914_p0 = pnand %p7913_p13, %p7907_p10 }
  0x21   :  { %7917 = shalt.err (!%p7914_p0)
}
  0x22   :  { %65 = dma.hbm_to_vmem [thread:$0]  %s9046_s7, 1024, %s60_s30, [#allocation8], %s7968_s22, %s7968_s22, %s7969_s23  }
  0x23   :  { %s7926_s0 = scalar_lea.vmem %s74_s13, 768  ;;  %p7931_p2 = scmp.lt.s32.totalorder %s74_s13, %s74_s13 }
  0x24   :  { %p7927_p1 = scmp.ne.s32.totalorder %s74_s13, %s7926_s0  ;;  %p7932_p3 = scmp.lt.s32.totalorder %s7926_s0, %s7926_s0 }
  0x26   :  { %p7933_p4 = por %p7932_p3, %p7931_p2 }
  0x28   :  { %p7934_p5 = pnand %p7933_p4, %p7927_p1 }
  0x2a   :  { %7937 = shalt.err (!%p7934_p5)
}
  0x2b   :  { %79 = dma.hbm_to_vmem [thread:$0]  %s9048_s9, 768, %s74_s13, [#allocation11], %s7968_s22, %s7968_s22, %s7969_s23  }
  0x2c   :  { %7958 = dma.done.wait [#allocation5], 256  }
  0x2d   :  { %7959 = vsyncadd [#allocation5], 4294967040 }
  0x2e   :  { %7960 = dma.done.wait [#allocation8], 1792  }
  0x2f   :  { %7961 = vsyncadd [#allocation8], 4294965504 }
  0x30   :  { %7962 = dma.done.wait [#allocation11], 768  }
  0x31   :  { %7963 = vsyncadd [#allocation11], 4294966528  ;;  %vm94_vm0 = vcmask 123904   ;;  %v7972_v0 = vmov 0.0   ;;  %vm99_vm1 = vcmask 130048   ;;  %v110_v1 = vld [vmem:[#allocation7 + $0x18] sm:$0xff] }
  0x32   :  { %95 = vst.msk [vmem:[#allocation2] sm:$0x3] %vm94_vm0, %v7972_v0  ;;  %96 = vst.msk [vmem:[#allocation2 + $0x12] sm:$0x3] %vm94_vm0, %v7972_v0  ;;  %v105_v2 = vld [vmem:[#allocation7 + $0x8] sm:$0xff]  ;;  %v109_v3 = vld [vmem:[#allocation7 + $0x10] sm:$0xff]  ;;  %6887 = vmatprep.subr.mxu0 %v110_v1 }
  0x33   :  { %6894 = vmatprep.subr.mxu1 %v105_v2  ;;  %v104_v4 = vld [vmem:[#allocation7] sm:$0xff]  ;;  %v97_v5 = vld [vmem:[#allocation4] sm:$0xff]  ;;  %v98_v6 = vld [vmem:[#allocation4 + $0x8] sm:$0xff]  ;;  %6888 = vmatpush3.msra.mxu0 %v110_v1  ;;  %vm7973_vm2 = vmmov 0   ;;  %vm460_vm3 = vcmask 261120   ;;  %s7974_s28 = smov [#allocation12]  }
  0x34   :  { %6895 = vmatpush3.msra.mxu1 %v105_v2  ;;  %100 = vst.msk [vmem:[#allocation2 + $0x2] sm:$0xff] %vm99_vm1, %v97_v5  ;;  %101 = vst.msk [vmem:[#allocation2 + $0xa] sm:$0xff] %vm99_vm1, %v98_v6  ;;  %v277_v7 = vld [vmem:[#allocation7 + $0x28] sm:$0xff]  ;;  %6889 = vmatprep.subr.mxu0 %v109_v3  ;;  %v276_v12 = vld [vmem:[#allocation7 + $0x20] sm:$0xff]  ;;  %s6383_s29 = sshll.u32 %s7974_s28, 4  ;;  %s6384_s29 = int_to_ptr.vmem [resolvable:$true] %s6383_s29 }
  0x35   :  { %6896 = vmatprep.subr.mxu1 %v104_v4  ;;  %6890 = vmatpush3.msra.mxu0 %v109_v3  ;;  %v371_v15 = vld [vmem:[%s9042_s3 + $0x8] sm:$0xff]  ;;  %v6408_v16 = vld [vmem:[%s9042_s3 + $0x18] sm:$0xff]  ;;  %v370_v17 = vld [vmem:[%s9042_s3] sm:$0xff]  ;;  %p7943_p7 = scmp.lt.s32.totalorder %s6384_s29, %s6384_s29 }
  0x36   :  { %6897 = vmatpush3.msra.mxu1 %v104_v4  ;;  %6901 = vmatprep.subr.mxu0 %v277_v7  ;;  %v6407_v18 = vld [vmem:[%s9042_s3 + $0x10] sm:$0xff]  ;;  %v6414_v19 = vld [vmem:[%s9042_s3 + $0x28] sm:$0xff]  ;;  %v6420_v20 = vld [vmem:[%s9042_s3 + $0x38] sm:$0xff] }
  0x37   :  { %6908 = vmatprep.subr.mxu1 %v371_v15  ;;  %v6403_v30 = vld [vmem:[%s9041_s2] ss:$0 sm:$0xff]  ;;  %v6419_v35 = vld [vmem:[%s9042_s3 + $0x30] sm:$0xff]  ;;  %v8107_v36 = vld [vmem:[%s9043_s4 + $0x18] sm:$0xff] }
  0x38   :  { %v6413_v34 = vld [vmem:[%s9042_s3 + $0x20] sm:$0xff]  ;;  %v8112_v37 = vld [vmem:[%s9043_s4 + $0x38] sm:$0xff]  ;;  %v8121_v38 = vld [vmem:[%s9043_s4 + $0x10] sm:$0xff] }
  0x39   :  { %v8126_v39 = vld [vmem:[%s9043_s4 + $0x30] sm:$0xff]  ;;  %v8135_v40 = vld [vmem:[%s9043_s4 + $0x8] sm:$0xff]  ;;  %v8149_v42 = vld [vmem:[%s9043_s4] sm:$0xff] }
  0x3a   :  { %v8140_v41 = vld [vmem:[%s9043_s4 + $0x28] sm:$0xff]  ;;  %v8156_v43 = vld [vmem:[%s9043_s4 + $0x20] sm:$0xff]  ;;  %v8169_v44 = vld [vmem:[%s9043_s4 + $0x58] sm:$0xff] }
  0x3b   :  { %v106_v8 = vld [vmem:[#allocation2 + $0x2] sm:$0xff]  ;;  %v107_v10 = vld [vmem:[#allocation2 + $0xa] sm:$0xff]  ;;  %v8174_v45 = vld [vmem:[%s9043_s4 + $0x78] sm:$0xff] }
  0x3c   :  { %v102_v9 = vld [vmem:[#allocation2] sm:$0xff]  ;;  %6891 = vmatprep.mubr.msk.f32.mxu0 %vm99_vm1, %v106_v8  ;;  %v103_v11 = vld [vmem:[#allocation2 + $0x8] sm:$0xff]  ;;  %v8183_v46 = vld [vmem:[%s9043_s4 + $0x50] sm:$0xff] }
  0x3d   :  { %6898 = vmatprep.mubr.msk.f32.mxu1 %vm99_vm1, %v102_v9  ;;  %v273_v13 = vld [vmem:[#allocation2 + $0x4] sm:$0xff]  ;;  %6892 = vmatmul.mubr.msk.f32.vlgmr.msra.gmra.mxu0 %vm99_vm1, %v107_v10  ;;  %v274_v14 = vld [vmem:[#allocation2 + $0xc] sm:$0xff]  ;;  %v6404_v52 = vld [vmem:[%s9044_s5] ss:$0 sm:$0xff] }
  0x3e   :  { %6899 = vmatmul.mubr.msk.f32.vlgmr.msra.gmra.mxu1 %vm99_vm1, %v103_v11  ;;  %6902 = vmatpush3.msra.mxu0 %v277_v7  ;;  %v8188_v47 = vld [vmem:[%s9043_s4 + $0x70] sm:$0xff]  ;;  %v8197_v48 = vld [vmem:[%s9043_s4 + $0x48] sm:$0xff]  ;;  %v8211_v50 = vld [vmem:[%s9043_s4 + $0x40] sm:$0xff] }
  0x3f   :  { %6905 = vmatprep.mubr.msk.f32.mxu0 %vm99_vm1, %v273_v13  ;;  %6903 = vmatprep.subr.mxu0 %v276_v12  ;;  %v8202_v49 = vld [vmem:[%s9043_s4 + $0x68] sm:$0xff]  ;;  %v8218_v51 = vld [vmem:[%s9043_s4 + $0x60] sm:$0xff] }
  0x40   :  { %6904 = vmatpush3.msra.mxu0 %v276_v12  ;;  %6909 = vmatpush3.msra.mxu1 %v371_v15  ;;  %v6410_v53 = vld [vmem:[%s9044_s5 + $0x1] ss:$0 sm:$0xff]  ;;  %v6416_v62 = vld [vmem:[%s9044_s5 + $0x2] ss:$0 sm:$0xff]  ;;  %v6422_v63 = vld [vmem:[%s9044_s5 + $0x3] ss:$0 sm:$0xff] }
  0x41   :  { %6906 = vmatmul.mubr.msk.f32.vlgmr.msra.gmra.mxu0 %vm99_vm1, %v274_v14  ;;  %6915 = vmatprep.subr.mxu0 %v6408_v16  ;;  %s7938_s5 = scalar_lea.vmem %s6384_s29, 256 }
  0x42   :  { %6916 = vmatpush3.msra.mxu0 %v6408_v16  ;;  %6910 = vmatprep.subr.mxu1 %v370_v17  ;;  %p7939_p6 = scmp.ne.s32.totalorder %s6384_s29, %s7938_s5  ;;  %p7944_p8 = scmp.lt.s32.totalorder %s7938_s5, %s7938_s5 }
  0x43   :  { %6917 = vmatprep.subr.mxu0 %v6407_v18  ;;  %6911 = vmatpush3.msra.mxu1 %v370_v17 }
  0x44   :  { %6918 = vmatpush3.msra.mxu0 %v6407_v18  ;;  %6922 = vmatprep.subr.mxu1 %v6414_v19  ;;  %p7945_p9 = por %p7944_p8, %p7943_p7 }
  0x45   :  { %6929 = vmatprep.subr.mxu0 %v6420_v20 }
  0x46   :  { %p7946_p10 = pnand %p7945_p9, %p7939_p6 }
  0xfd   :  { %v6893_v21 = vpop.f32.mrf.mxu0 }
  0xfe   :  { %v6900_v22 = vpop.f32.mrf.mxu1 }
  0xff   :  { %v183_v23 = vpop.f32.mrf.mxu0  ;;  %v270_v25 = vadd.f32 %v6900_v22, %v6893_v21 }
 0x100   :  { %v264_v24 = vpop.f32.mrf.mxu1 }
 0x101   :  { %v6907_v26 = vpop.f32.mrf.mxu0  ;;  %v265_v27 = vadd.f32 %v264_v24, %v183_v23 }
 0x102   :  { %v360_v28 = vadd.f32 %v6907_v26, %v270_v25 }
 0x103   :  { %v350_v29 = vpop.f32.mrf.mxu0 }
 0x104   :  { %v359_v31 = vadd.f32 %v350_v29, %v265_v27  ;;  %v369_v33 = vadd.f32 %v6403_v30, %v360_v28 }
 0x106   :  { %v368_v32 = vadd.f32 %v6403_v30, %v359_v31 }
 0x108   :  { %6912 = vmatprep.mubr.msk.f32.mxu1 %vm99_vm1, %v368_v32  ;;  %6919 = vmatprep.mubr.msk.f32.mxu0 %vm99_vm1, %v368_v32 }
 0x109   :  { %6913 = vmatmul.mubr.msk.f32.vlgmr.msra.gmra.mxu1 %vm99_vm1, %v369_v33  ;;  %6920 = vmatmul.mubr.msk.f32.vlgmr.msra.gmra.mxu0 %vm99_vm1, %v369_v33 }
 0x10a   :  { %6923 = vmatpush3.msra.mxu1 %v6414_v19  ;;  %6930 = vmatpush3.msra.mxu0 %v6420_v20 }
 0x10b   :  { %6924 = vmatprep.subr.mxu1 %v6413_v34  ;;  %6926 = vmatprep.mubr.msk.f32.mxu1 %vm99_vm1, %v368_v32 }
 0x10c   :  { %6931 = vmatprep.subr.mxu0 %v6419_v35  ;;  %6933 = vmatprep.mubr.msk.f32.mxu0 %vm99_vm1, %v368_v32 }
 0x10d   :  { %6925 = vmatpush3.msra.mxu1 %v6413_v34  ;;  %6932 = vmatpush3.msra.mxu0 %v6419_v35 }
 0x10e   :  { %6936 = vmatprep.subr.mxu1 %v7972_v0  ;;  %6947 = vmatprep.subr.mxu0 %v7972_v0 }
 0x10f   :  { %6927 = vmatmul.mubr.msk.f32.vlgmr.msra.gmra.mxu1 %vm99_vm1, %v369_v33  ;;  %6934 = vmatmul.mubr.msk.f32.vlgmr.msra.gmra.mxu0 %vm99_vm1, %v369_v33 }
 0x110   :  { %6937 = vmatpush3.msra.mxu1 %v8107_v36  ;;  %6948 = vmatpush3.msra.mxu0 %v8112_v37 }
 0x111   :  { %6938 = vmatprep.subr.mxu1 %v7972_v0  ;;  %6949 = vmatprep.subr.mxu0 %v7972_v0 }
 0x112   :  { %6939 = vmatpush3.msra.mxu1 %v8121_v38  ;;  %6950 = vmatpush3.msra.mxu0 %v8126_v39 }
 0x113   :  { %6940 = vmatprep.subr.mxu1 %v7972_v0  ;;  %6951 = vmatprep.subr.mxu0 %v7972_v0 }
 0x114   :  { %6941 = vmatpush3.msra.mxu1 %v8135_v40  ;;  %6952 = vmatpush3.msra.mxu0 %v8140_v41 }
 0x115   :  { %6942 = vmatprep.subr.mxu1 %v7972_v0  ;;  %6953 = vmatprep.subr.mxu0 %v7972_v0 }
 0x116   :  { %6943 = vmatpush3.msra.mxu1 %v8149_v42  ;;  %6944 = vmatprep.mubr.msk.f32.mxu1 %vm7973_vm2, %v7972_v0 }
 0x117   :  { %6954 = vmatpush3.msra.mxu0 %v8156_v43  ;;  %6955 = vmatprep.mubr.msk.f32.mxu0 %vm7973_vm2, %v7972_v0 }
 0x118   :  { %6945 = vmatmul.mubr.f32.vlgmr.msra.gmra.mxu1 %v7972_v0  ;;  %6956 = vmatmul.mubr.f32.vlgmr.msra.gmra.mxu0 %v7972_v0 }
 0x119   :  { %6958 = vmatprep.subr.mxu1 %v7972_v0  ;;  %6969 = vmatprep.subr.mxu0 %v7972_v0 }
 0x11a   :  { %6959 = vmatpush3.msra.mxu1 %v8169_v44  ;;  %6970 = vmatpush3.msra.mxu0 %v8174_v45 }
 0x11b   :  { %6960 = vmatprep.subr.mxu1 %v7972_v0  ;;  %6971 = vmatprep.subr.mxu0 %v7972_v0 }
 0x11c   :  { %6961 = vmatpush3.msra.mxu1 %v8183_v46  ;;  %6972 = vmatpush3.msra.mxu0 %v8188_v47 }
 0x11d   :  { %6962 = vmatprep.subr.mxu1 %v7972_v0  ;;  %6973 = vmatprep.subr.mxu0 %v7972_v0 }
 0x11e   :  { %6963 = vmatpush3.msra.mxu1 %v8197_v48  ;;  %6974 = vmatpush3.msra.mxu0 %v8202_v49 }
 0x11f   :  { %6964 = vmatprep.subr.mxu1 %v7972_v0  ;;  %6975 = vmatprep.subr.mxu0 %v7972_v0 }
 0x120   :  { %6965 = vmatpush3.msra.mxu1 %v8211_v50  ;;  %6966 = vmatprep.mubr.msk.f32.mxu1 %vm7973_vm2, %v7972_v0 }
 0x121   :  { %6976 = vmatpush3.msra.mxu0 %v8218_v51  ;;  %6977 = vmatprep.mubr.msk.f32.mxu0 %vm7973_vm2, %v7972_v0 }
 0x122   :  { %6967 = vmatmul.mubr.f32.vlgmr.msra.gmra.mxu1 %v7972_v0  ;;  %6978 = vmatmul.mubr.f32.vlgmr.msra.gmra.mxu0 %v7972_v0 }
 0x123   :  { %6980 = vmatprep.subr.mxu1 %v7972_v0  ;;  %6991 = vmatprep.subr.mxu0 %v7972_v0 }
 0x124   :  { %6981 = vmatpush3.msra.mxu1 %v8107_v36  ;;  %6992 = vmatpush3.msra.mxu0 %v8112_v37 }
 0x125   :  { %6982 = vmatprep.subr.mxu1 %v7972_v0  ;;  %6993 = vmatprep.subr.mxu0 %v7972_v0 }
 0x126   :  { %6983 = vmatpush3.msra.mxu1 %v8121_v38  ;;  %6994 = vmatpush3.msra.mxu0 %v8126_v39 }
 0x127   :  { %6984 = vmatprep.subr.mxu1 %v7972_v0  ;;  %6995 = vmatprep.subr.mxu0 %v7972_v0 }
 0x128   :  { %6985 = vmatpush3.msra.mxu1 %v8135_v40  ;;  %6996 = vmatpush3.msra.mxu0 %v8140_v41 }
 0x129   :  { %6986 = vmatprep.subr.mxu1 %v7972_v0  ;;  %6997 = vmatprep.subr.mxu0 %v7972_v0 }
 0x12a   :  { %6987 = vmatpush3.msra.mxu1 %v8149_v42  ;;  %6998 = vmatpush3.msra.mxu0 %v8156_v43 }
 0x12b   :  { %6988 = vmatprep.mubr.msk.f32.mxu1 %vm7973_vm2, %v7972_v0  ;;  %6999 = vmatprep.mubr.msk.f32.mxu0 %vm7973_vm2, %v7972_v0 }
 0x12c   :  { %7002 = vmatprep.subr.mxu1 %v7972_v0  ;;  %7013 = vmatprep.subr.mxu0 %v7972_v0 }
 0x1c9   :  { %v6914_v54 = vpop.f32.mrf.mxu1  ;;  %v6921_v55 = vpop.f32.mrf.mxu0 }
 0x1ca   :  { %v457_v56 = vadd.f32 %v6914_v54, %v6404_v52  ;;  %v546_v57 = vadd.f32 %v6921_v55, %v6410_v53 }
 0x1cb   :  { %v451_v58 = vpop.f32.mrf.mxu1  ;;  %v540_v59 = vpop.f32.mrf.mxu0 }
 0x1cc   :  { %462 = vst.msk [vmem:[#allocation3 + $0x8] sm:$0xff] %vm460_vm3, %v457_v56  ;;  %551 = vst.msk [vmem:[#allocation3 + $0x18] sm:$0xff] %vm460_vm3, %v546_v57  ;;  %v452_v60 = vadd.f32 %v6404_v52, %v451_v58  ;;  %v541_v61 = vadd.f32 %v6410_v53, %v540_v59 }
 0x1ce   :  { %461 = vst.msk [vmem:[#allocation3] sm:$0xff] %vm460_vm3, %v452_v60  ;;  %550 = vst.msk [vmem:[#allocation3 + $0x10] sm:$0xff] %vm460_vm3, %v541_v61 }
 0x1cf   :  { %v6928_v1 = vpop.f32.mrf.mxu1  ;;  %v6935_v2 = vpop.f32.mrf.mxu0 }
 0x1d0   :  { %v635_v3 = vadd.f32 %v6928_v1, %v6416_v62  ;;  %v724_v4 = vadd.f32 %v6935_v2, %v6422_v63 }
 0x1d1   :  { %v629_v5 = vpop.f32.mrf.mxu1  ;;  %v718_v6 = vpop.f32.mrf.mxu0 }
 0x1d2   :  { %640 = vst.msk [vmem:[#allocation3 + $0x28] sm:$0xff] %vm460_vm3, %v635_v3  ;;  %729 = vst.msk [vmem:[#allocation3 + $0x38] sm:$0xff] %vm460_vm3, %v724_v4  ;;  %v630_v7 = vadd.f32 %v6416_v62, %v629_v5  ;;  %v719_v8 = vadd.f32 %v6422_v63, %v718_v6 }
 0x1d4   :  { %639 = vst.msk [vmem:[#allocation3 + $0x20] sm:$0xff] %vm460_vm3, %v630_v7  ;;  %728 = vst.msk [vmem:[#allocation3 + $0x30] sm:$0xff] %vm460_vm3, %v719_v8 }
 0x1d5   :  { %v749_v9 = vld [vmem:[#allocation3] sm:$0x3]  ;;  %v824_v10 = vld [vmem:[#allocation3 + $0x10] sm:$0x3]  ;;  %v1064_v59 = vld [vmem:[#allocation3 + $0x2] sm:$0x3] }
 0x1d6   :  { %v1139_v61 = vld [vmem:[#allocation3 + $0x12] sm:$0x3] }
 0x1d8   :  { %v819_v11 = vpop.f32.mrf.mxu1  ;;  %v891_v12 = vpop.f32.mrf.mxu0 }
 0x1d9   :  { %v823_v13 = vadd.f32 %v819_v11, %v749_v9  ;;  %v895_v14 = vadd.f32 %v891_v12, %v824_v10 }
 0x1da   :  { %v6946_v15 = vpop.f32.mrf.mxu1  ;;  %v6957_v16 = vpop.f32.mrf.mxu0 }
 0x1db   :  { %v6438_v17 = vmul.f32 -1.442695, %v823_v13  ;;  %v6437_v18 = vmul.f32 -1.442695, %v895_v14  ;;  %v968_v20 = vld [vmem:[#allocation3 + $0x30] sm:$0x3] }
 0x1dc   :  { %v896_v25 = vld [vmem:[#allocation3 + $0x20] sm:$0x3]  ;;  %v1283_v8 = vld [vmem:[#allocation3 + $0x32] sm:$0x3]  ;;  %v1211_v12 = vld [vmem:[#allocation3 + $0x22] sm:$0x3] }
 0x1dd   :  { %7586 = vpow2.f32 %v6438_v17 }
 0x1de   :  { %7588 = vpow2.f32 %v6437_v18 }
 0x1e2   :  { %v963_v19 = vpop.f32.mrf.mxu1  ;;  %v1035_v21 = vpop.f32.mrf.mxu0 }
 0x1e3   :  { %v1039_v22 = vadd.f32 %v1035_v21, %v968_v20  ;;  %v967_v27 = vadd.f32 %v963_v19, %v896_v25 }
 0x1e4   :  { %v6968_v23 = vpop.f32.mrf.mxu1  ;;  %v6979_v24 = vpop.f32.mrf.mxu0 }
 0x1e5   :  { %v6439_v26 = vmul.f32 -1.442695, %v1039_v22 }
 0x1e7   :  { %7590 = vpow2.f32 %v6439_v26 }
 0x1e8   :  { %7592 = vtanh.f32 %v967_v27 }
 0x1ea   :  { %v7587_v28 = vpop.eup %7586 }
 0x1eb   :  { %v7589_v29 = vpop.eup %7588  ;;  %v1050_v30 = vadd.f32 1.0, %v7587_v28 }
 0x1ec   :  { %v1043_v31 = vadd.f32 1.0, %v7589_v29 }
 0x1ed   :  { %7594 = vrcp.f32 %v1050_v30  ;;  %v1379_v30 = vld [vmem:[#allocation3 + $0x4] sm:$0x3] }
 0x1ee   :  { %7596 = vrcp.f32 %v1043_v31 }
 0x1f4   :  { %v7591_v32 = vpop.eup %7590 }
 0x1f5   :  { %v7593_v33 = vpop.eup %7592  ;;  %v1059_v53 = vadd.f32 1.0, %v7591_v32  ;;  %v1454_v32 = vld [vmem:[#allocation3 + $0x14] sm:$0x3] }
 0x1f7   :  { %7598 = vrcp.f32 %v1059_v53 }
 0x1fa   :  { %v7595_v34 = vpop.eup %7594 }
 0x1fb   :  { %v7597_v35 = vpop.eup %7596  ;;  %v1054_v52 = vmul.f32 %v7595_v34, %v7593_v33 }
 0x1fc   :  { %v1046_v54 = vmul.f32 0.0, %v7597_v35 }
 0x1fe   :  { %v8272_v55 = vadd.f32 %v1054_v52, %v1046_v54 }
 0x200   :  { %7600 = vtanh.f32 %v8272_v55 }
 0x204   :  { %v7599_v56 = vpop.eup %7598 }
 0x20d   :  { %v7601_v57 = vpop.eup %7600 }
 0x20e   :  { %v1063_v58 = vmul.f32 %v7601_v57, %v7599_v56 }
 0x210   :  { %6989 = vmatmul.mubr.msk.f32.vlgmr.msra.gmra.mxu1 %vm460_vm3, %v1063_v58  ;;  %7000 = vmatmul.mubr.msk.f32.vlgmr.msra.gmra.mxu0 %vm460_vm3, %v1063_v58 }
 0x211   :  { %7003 = vmatpush3.msra.mxu1 %v8169_v44  ;;  %7014 = vmatpush3.msra.mxu0 %v8174_v45 }
 0x212   :  { %7004 = vmatprep.subr.mxu1 %v7972_v0  ;;  %7015 = vmatprep.subr.mxu0 %v7972_v0 }
 0x213   :  { %7005 = vmatpush3.msra.mxu1 %v8183_v46  ;;  %7016 = vmatpush3.msra.mxu0 %v8188_v47 }
 0x214   :  { %7006 = vmatprep.subr.mxu1 %v7972_v0  ;;  %7017 = vmatprep.subr.mxu0 %v7972_v0 }
 0x215   :  { %7007 = vmatpush3.msra.mxu1 %v8197_v48  ;;  %7018 = vmatpush3.msra.mxu0 %v8202_v49 }
 0x216   :  { %7008 = vmatprep.subr.mxu1 %v7972_v0  ;;  %7019 = vmatprep.subr.mxu0 %v7972_v0 }
 0x217   :  { %7009 = vmatpush3.msra.mxu1 %v8211_v50  ;;  %7010 = vmatprep.mubr.msk.f32.mxu1 %vm7973_vm2, %v7972_v0 }
 0x218   :  { %7020 = vmatpush3.msra.mxu0 %v8218_v51  ;;  %7021 = vmatprep.mubr.msk.f32.mxu0 %vm7973_vm2, %v7972_v0 }
 0x219   :  { %7011 = vmatmul.mubr.msk.f32.vlgmr.msra.gmra.mxu1 %vm460_vm3, %v1063_v58  ;;  %7022 = vmatmul.mubr.msk.f32.vlgmr.msra.gmra.mxu0 %vm460_vm3, %v1063_v58  ;;  %v1598_v58 = vld [vmem:[#allocation3 + $0x34] sm:$0x3] }
 0x21a   :  { %7024 = vmatprep.subr.mxu1 %v7972_v0  ;;  %7035 = vmatprep.subr.mxu0 %v7972_v0 }
 0x21b   :  { %7025 = vmatpush3.msra.mxu1 %v8107_v36  ;;  %7036 = vmatpush3.msra.mxu0 %v8112_v37 }
 0x21c   :  { %7026 = vmatprep.subr.mxu1 %v7972_v0  ;;  %7037 = vmatprep.subr.mxu0 %v7972_v0 }
 0x21d   :  { %7027 = vmatpush3.msra.mxu1 %v8121_v38  ;;  %7038 = vmatpush3.msra.mxu0 %v8126_v39 }
 0x21e   :  { %7028 = vmatprep.subr.mxu1 %v7972_v0  ;;  %7039 = vmatprep.subr.mxu0 %v7972_v0 }
 0x21f   :  { %7029 = vmatpush3.msra.mxu1 %v8135_v40  ;;  %7040 = vmatpush3.msra.mxu0 %v8140_v41 }
 0x220   :  { %7030 = vmatprep.subr.mxu1 %v7972_v0  ;;  %7041 = vmatprep.subr.mxu0 %v7972_v0 }
 0x221   :  { %7031 = vmatpush3.msra.mxu1 %v8149_v42  ;;  %7042 = vmatpush3.msra.mxu0 %v8156_v43 }
 0x222   :  { %7032 = vmatprep.mubr.msk.f32.mxu1 %vm7973_vm2, %v7972_v0  ;;  %7043 = vmatprep.mubr.msk.f32.mxu0 %vm7973_vm2, %v7972_v0 }
 0x223   :  { %7046 = vmatprep.subr.mxu1 %v7972_v0  ;;  %7057 = vmatprep.subr.mxu0 %v7972_v0 }
 0x2d0   :  { %v1134_v60 = vpop.f32.mrf.mxu1  ;;  %v1206_v62 = vpop.f32.mrf.mxu0 }
 0x2d1   :  { %v1138_v63 = vadd.f32 %v1134_v60, %v1064_v59  ;;  %v1210_v1 = vadd.f32 %v1206_v62, %v1139_v61  ;;  %v1526_v62 = vld [vmem:[#allocation3 + $0x24] sm:$0x3] }
 0x2d2   :  { %v6990_v2 = vpop.f32.mrf.mxu1  ;;  %v7001_v3 = vpop.f32.mrf.mxu0 }
 0x2d3   :  { %v6445_v4 = vmul.f32 -1.442695, %v1138_v63  ;;  %v6444_v5 = vmul.f32 -1.442695, %v1210_v1 }
 0x2d5   :  { %7602 = vpow2.f32 %v6445_v4 }
 0x2d6   :  { %7604 = vpow2.f32 %v6444_v5 }
 0x2d9   :  { %v1278_v6 = vpop.f32.mrf.mxu1  ;;  %v1350_v7 = vpop.f32.mrf.mxu0 }
 0x2da   :  { %v1354_v9 = vadd.f32 %v1350_v7, %v1283_v8  ;;  %v1282_v14 = vadd.f32 %v1278_v6, %v1211_v12 }
 0x2db   :  { %v7012_v10 = vpop.f32.mrf.mxu1  ;;  %v7023_v11 = vpop.f32.mrf.mxu0 }
 0x2dc   :  { %v6446_v13 = vmul.f32 -1.442695, %v1354_v9 }
 0x2de   :  { %7606 = vpow2.f32 %v6446_v13 }
 0x2df   :  { %7608 = vtanh.f32 %v1282_v14 }
 0x2e2   :  { %v7603_v15 = vpop.eup %7602 }
 0x2e3   :  { %v7605_v16 = vpop.eup %7604  ;;  %v1365_v17 = vadd.f32 1.0, %v7603_v15 }
 0x2e4   :  { %v1358_v18 = vadd.f32 1.0, %v7605_v16 }
 0x2e5   :  { %7610 = vrcp.f32 %v1365_v17  ;;  %v1694_v17 = vld [vmem:[#allocation3 + $0x6] sm:$0x3] }
 0x2e6   :  { %7612 = vrcp.f32 %v1358_v18 }
 0x2eb   :  { %v7607_v19 = vpop.eup %7606 }
 0x2ec   :  { %v7609_v20 = vpop.eup %7608  ;;  %v1374_v24 = vadd.f32 1.0, %v7607_v19  ;;  %v1769_v19 = vld [vmem:[#allocation3 + $0x16] sm:$0x3] }
 0x2ee   :  { %7614 = vrcp.f32 %v1374_v24 }
 0x2f2   :  { %v7611_v21 = vpop.eup %7610 }
 0x2f3   :  { %v7613_v22 = vpop.eup %7612  ;;  %v1369_v23 = vmul.f32 %v7611_v21, %v7609_v20 }
 0x2f4   :  { %v1361_v25 = vmul.f32 %v7613_v22, %v8272_v55 }
 0x2f6   :  { %v8320_v26 = vadd.f32 %v1369_v23, %v1361_v25 }
 0x2f8   :  { %7616 = vtanh.f32 %v8320_v26 }
 0x2fb   :  { %v7615_v27 = vpop.eup %7614 }
 0x305   :  { %v7617_v28 = vpop.eup %7616 }
 0x306   :  { %v1378_v29 = vmul.f32 %v7617_v28, %v7615_v27 }
 0x308   :  { %7033 = vmatmul.mubr.msk.f32.vlgmr.msra.gmra.mxu1 %vm460_vm3, %v1378_v29  ;;  %7044 = vmatmul.mubr.msk.f32.vlgmr.msra.gmra.mxu0 %vm460_vm3, %v1378_v29 }
 0x309   :  { %7047 = vmatpush3.msra.mxu1 %v8169_v44  ;;  %7058 = vmatpush3.msra.mxu0 %v8174_v45 }
 0x30a   :  { %7048 = vmatprep.subr.mxu1 %v7972_v0  ;;  %7059 = vmatprep.subr.mxu0 %v7972_v0 }
 0x30b   :  { %7049 = vmatpush3.msra.mxu1 %v8183_v46  ;;  %7060 = vmatpush3.msra.mxu0 %v8188_v47 }
 0x30c   :  { %7050 = vmatprep.subr.mxu1 %v7972_v0  ;;  %7061 = vmatprep.subr.mxu0 %v7972_v0 }
 0x30d   :  { %7051 = vmatpush3.msra.mxu1 %v8197_v48  ;;  %7062 = vmatpush3.msra.mxu0 %v8202_v49 }
 0x30e   :  { %7052 = vmatprep.subr.mxu1 %v7972_v0  ;;  %7063 = vmatprep.subr.mxu0 %v7972_v0 }
 0x30f   :  { %7053 = vmatpush3.msra.mxu1 %v8211_v50  ;;  %7054 = vmatprep.mubr.msk.f32.mxu1 %vm7973_vm2, %v7972_v0 }
 0x310   :  { %7064 = vmatpush3.msra.mxu0 %v8218_v51  ;;  %7065 = vmatprep.mubr.msk.f32.mxu0 %vm7973_vm2, %v7972_v0 }
 0x311   :  { %7055 = vmatmul.mubr.msk.f32.vlgmr.msra.gmra.mxu1 %vm460_vm3, %v1378_v29  ;;  %7066 = vmatmul.mubr.msk.f32.vlgmr.msra.gmra.mxu0 %vm460_vm3, %v1378_v29  ;;  %v1913_v29 = vld [vmem:[#allocation3 + $0x36] sm:$0x3] }
 0x312   :  { %7068 = vmatprep.subr.mxu1 %v7972_v0  ;;  %7079 = vmatprep.subr.mxu0 %v7972_v0 }
 0x313   :  { %7069 = vmatpush3.msra.mxu1 %v8107_v36  ;;  %7080 = vmatpush3.msra.mxu0 %v8112_v37 }
 0x314   :  { %7070 = vmatprep.subr.mxu1 %v7972_v0  ;;  %7081 = vmatprep.subr.mxu0 %v7972_v0 }
 0x315   :  { %7071 = vmatpush3.msra.mxu1 %v8121_v38  ;;  %7082 = vmatpush3.msra.mxu0 %v8126_v39 }
 0x316   :  { %7072 = vmatprep.subr.mxu1 %v7972_v0  ;;  %7083 = vmatprep.subr.mxu0 %v7972_v0 }
 0x317   :  { %7073 = vmatpush3.msra.mxu1 %v8135_v40  ;;  %7084 = vmatpush3.msra.mxu0 %v8140_v41 }
 0x318   :  { %7074 = vmatprep.subr.mxu1 %v7972_v0  ;;  %7085 = vmatprep.subr.mxu0 %v7972_v0 }
 0x319   :  { %7075 = vmatpush3.msra.mxu1 %v8149_v42  ;;  %7086 = vmatpush3.msra.mxu0 %v8156_v43 }
 0x31a   :  { %7076 = vmatprep.mubr.msk.f32.mxu1 %vm7973_vm2, %v7972_v0  ;;  %7087 = vmatprep.mubr.msk.f32.mxu0 %vm7973_vm2, %v7972_v0 }
 0x31b   :  { %7090 = vmatprep.subr.mxu1 %v7972_v0  ;;  %7101 = vmatprep.subr.mxu0 %v7972_v0 }
 0x3c8   :  { %v1449_v31 = vpop.f32.mrf.mxu1  ;;  %v1521_v33 = vpop.f32.mrf.mxu0 }
 0x3c9   :  { %v1453_v34 = vadd.f32 %v1449_v31, %v1379_v30  ;;  %v1525_v35 = vadd.f32 %v1521_v33, %v1454_v32  ;;  %v1841_v33 = vld [vmem:[#allocation3 + $0x26] sm:$0x3] }
 0x3ca   :  { %v7034_v52 = vpop.f32.mrf.mxu1  ;;  %v7045_v53 = vpop.f32.mrf.mxu0 }
 0x3cb   :  { %v6452_v54 = vmul.f32 -1.442695, %v1453_v34  ;;  %v6451_v55 = vmul.f32 -1.442695, %v1525_v35 }
 0x3cd   :  { %7618 = vpow2.f32 %v6452_v54 }
 0x3ce   :  { %7620 = vpow2.f32 %v6451_v55 }
 0x3d1   :  { %v1593_v56 = vpop.f32.mrf.mxu1  ;;  %v1665_v57 = vpop.f32.mrf.mxu0 }
 0x3d2   :  { %v1669_v59 = vadd.f32 %v1665_v57, %v1598_v58  ;;  %v1597_v1 = vadd.f32 %v1593_v56, %v1526_v62 }
 0x3d3   :  { %v7056_v60 = vpop.f32.mrf.mxu1  ;;  %v7067_v61 = vpop.f32.mrf.mxu0 }
 0x3d4   :  { %v6453_v63 = vmul.f32 -1.442695, %v1669_v59 }
 0x3d6   :  { %7622 = vpow2.f32 %v6453_v63 }
 0x3d7   :  { %7624 = vtanh.f32 %v1597_v1 }
 0x3da   :  { %v7619_v2 = vpop.eup %7618 }
 0x3db   :  { %v7621_v3 = vpop.eup %7620  ;;  %v1680_v4 = vadd.f32 1.0, %v7619_v2 }
 0x3dc   :  { %v1673_v5 = vadd.f32 1.0, %v7621_v3 }
 0x3dd   :  { %7626 = vrcp.f32 %v1680_v4  ;;  %v2009_v4 = vld [vmem:[#allocation3 + $0x8] sm:$0x3] }
 0x3de   :  { %7628 = vrcp.f32 %v1673_v5 }
 0x3e3   :  { %v7623_v6 = vpop.eup %7622 }
 0x3e4   :  { %v7625_v7 = vpop.eup %7624  ;;  %v1689_v11 = vadd.f32 1.0, %v7623_v6  ;;  %v2084_v6 = vld [vmem:[#allocation3 + $0x18] sm:$0x3] }
 0x3e6   :  { %7630 = vrcp.f32 %v1689_v11 }
 0x3ea   :  { %v7627_v8 = vpop.eup %7626 }
 0x3eb   :  { %v7629_v9 = vpop.eup %7628  ;;  %v1684_v10 = vmul.f32 %v7627_v8, %v7625_v7 }
 0x3ec   :  { %v1676_v12 = vmul.f32 %v7629_v9, %v8320_v26 }
 0x3ee   :  { %v8368_v13 = vadd.f32 %v1684_v10, %v1676_v12 }
 0x3f0   :  { %7632 = vtanh.f32 %v8368_v13 }
 0x3f3   :  { %v7631_v14 = vpop.eup %7630 }
 0x3fd   :  { %v7633_v15 = vpop.eup %7632 }
 0x3fe   :  { %v1693_v16 = vmul.f32 %v7633_v15, %v7631_v14 }
 0x400   :  { %7077 = vmatmul.mubr.msk.f32.vlgmr.msra.gmra.mxu1 %vm460_vm3, %v1693_v16  ;;  %7088 = vmatmul.mubr.msk.f32.vlgmr.msra.gmra.mxu0 %vm460_vm3, %v1693_v16 }
 0x401   :  { %7091 = vmatpush3.msra.mxu1 %v8169_v44  ;;  %7102 = vmatpush3.msra.mxu0 %v8174_v45 }
 0x402   :  { %7092 = vmatprep.subr.mxu1 %v7972_v0  ;;  %7103 = vmatprep.subr.mxu0 %v7972_v0 }
 0x403   :  { %7093 = vmatpush3.msra.mxu1 %v8183_v46  ;;  %7104 = vmatpush3.msra.mxu0 %v8188_v47 }
 0x404   :  { %7094 = vmatprep.subr.mxu1 %v7972_v0  ;;  %7105 = vmatprep.subr.mxu0 %v7972_v0 }
 0x405   :  { %7095 = vmatpush3.msra.mxu1 %v8197_v48  ;;  %7106 = vmatpush3.msra.mxu0 %v8202_v49 }
 0x406   :  { %7096 = vmatprep.subr.mxu1 %v7972_v0  ;;  %7107 = vmatprep.subr.mxu0 %v7972_v0 }
 0x407   :  { %7097 = vmatpush3.msra.mxu1 %v8211_v50  ;;  %7098 = vmatprep.mubr.msk.f32.mxu1 %vm7973_vm2, %v7972_v0 }
 0x408   :  { %7108 = vmatpush3.msra.mxu0 %v8218_v51  ;;  %7109 = vmatprep.mubr.msk.f32.mxu0 %vm7973_vm2, %v7972_v0 }
 0x409   :  { %7099 = vmatmul.mubr.msk.f32.vlgmr.msra.gmra.mxu1 %vm460_vm3, %v1693_v16  ;;  %7110 = vmatmul.mubr.msk.f32.vlgmr.msra.gmra.mxu0 %vm460_vm3, %v1693_v16  ;;  %v2228_v16 = vld [vmem:[#allocation3 + $0x38] sm:$0x3] }
 0x40a   :  { %7112 = vmatprep.subr.mxu1 %v7972_v0  ;;  %7123 = vmatprep.subr.mxu0 %v7972_v0 }
 0x40b   :  { %7113 = vmatpush3.msra.mxu1 %v8107_v36  ;;  %7124 = vmatpush3.msra.mxu0 %v8112_v37 }
 0x40c   :  { %7114 = vmatprep.subr.mxu1 %v7972_v0  ;;  %7125 = vmatprep.subr.mxu0 %v7972_v0 }
 0x40d   :  { %7115 = vmatpush3.msra.mxu1 %v8121_v38  ;;  %7126 = vmatpush3.msra.mxu0 %v8126_v39 }
 0x40e   :  { %7116 = vmatprep.subr.mxu1 %v7972_v0  ;;  %7127 = vmatprep.subr.mxu0 %v7972_v0 }
 0x40f   :  { %7117 = vmatpush3.msra.mxu1 %v8135_v40  ;;  %7128 = vmatpush3.msra.mxu0 %v8140_v41 }
 0x410   :  { %7118 = vmatprep.subr.mxu1 %v7972_v0  ;;  %7129 = vmatprep.subr.mxu0 %v7972_v0 }
 0x411   :  { %7119 = vmatpush3.msra.mxu1 %v8149_v42  ;;  %7130 = vmatpush3.msra.mxu0 %v8156_v43 }
 0x412   :  { %7120 = vmatprep.mubr.msk.f32.mxu1 %vm7973_vm2, %v7972_v0  ;;  %7131 = vmatprep.mubr.msk.f32.mxu0 %vm7973_vm2, %v7972_v0 }
 0x413   :  { %7134 = vmatprep.subr.mxu1 %v7972_v0  ;;  %7145 = vmatprep.subr.mxu0 %v7972_v0 }
 0x4c0   :  { %v1764_v18 = vpop.f32.mrf.mxu1  ;;  %v1836_v20 = vpop.f32.mrf.mxu0 }
 0x4c1   :  { %v1768_v21 = vadd.f32 %v1764_v18, %v1694_v17  ;;  %v1840_v22 = vadd.f32 %v1836_v20, %v1769_v19  ;;  %v2156_v20 = vld [vmem:[#allocation3 + $0x28] sm:$0x3] }
 0x4c2   :  { %v7078_v23 = vpop.f32.mrf.mxu1  ;;  %v7089_v24 = vpop.f32.mrf.mxu0 }
 0x4c3   :  { %v6459_v25 = vmul.f32 -1.442695, %v1768_v21  ;;  %v6458_v26 = vmul.f32 -1.442695, %v1840_v22 }
 0x4c5   :  { %7634 = vpow2.f32 %v6459_v25 }
 0x4c6   :  { %7636 = vpow2.f32 %v6458_v26 }
 0x4c9   :  { %v1908_v27 = vpop.f32.mrf.mxu1  ;;  %v1980_v28 = vpop.f32.mrf.mxu0 }
 0x4ca   :  { %v1984_v30 = vadd.f32 %v1980_v28, %v1913_v29  ;;  %v1912_v35 = vadd.f32 %v1908_v27, %v1841_v33 }
 0x4cb   :  { %v7100_v31 = vpop.f32.mrf.mxu1  ;;  %v7111_v32 = vpop.f32.mrf.mxu0 }
 0x4cc   :  { %v6460_v34 = vmul.f32 -1.442695, %v1984_v30 }
 0x4ce   :  { %7638 = vpow2.f32 %v6460_v34 }
 0x4cf   :  { %7640 = vtanh.f32 %v1912_v35 }
 0x4d2   :  { %v7635_v52 = vpop.eup %7634 }
 0x4d3   :  { %v7637_v53 = vpop.eup %7636  ;;  %v1995_v54 = vadd.f32 1.0, %v7635_v52 }
 0x4d4   :  { %v1988_v55 = vadd.f32 1.0, %v7637_v53 }
 0x4d5   :  { %7642 = vrcp.f32 %v1995_v54  ;;  %v2471_v54 = vld [vmem:[#allocation3 + $0x2a] sm:$0x3] }
 0x4d6   :  { %7644 = vrcp.f32 %v1988_v55 }
 0x4db   :  { %v7639_v56 = vpop.eup %7638 }
 0x4dc   :  { %v7641_v57 = vpop.eup %7640  ;;  %v2004_v61 = vadd.f32 1.0, %v7639_v56 }
 0x4de   :  { %7646 = vrcp.f32 %v2004_v61 }
 0x4e2   :  { %v7643_v58 = vpop.eup %7642 }
 0x4e3   :  { %v7645_v59 = vpop.eup %7644  ;;  %v1999_v60 = vmul.f32 %v7643_v58, %v7641_v57 }
 0x4e4   :  { %v1991_v62 = vmul.f32 %v7645_v59, %v8368_v13 }
 0x4e6   :  { %v8416_v63 = vadd.f32 %v1999_v60, %v1991_v62 }
 0x4e8   :  { %7648 = vtanh.f32 %v8416_v63 }
 0x4eb   :  { %v7647_v1 = vpop.eup %7646 }
 0x4f5   :  { %v7649_v2 = vpop.eup %7648 }
 0x4f6   :  { %v2008_v3 = vmul.f32 %v7649_v2, %v7647_v1 }
 0x4f8   :  { %7121 = vmatmul.mubr.msk.f32.vlgmr.msra.gmra.mxu1 %vm460_vm3, %v2008_v3  ;;  %7132 = vmatmul.mubr.msk.f32.vlgmr.msra.gmra.mxu0 %vm460_vm3, %v2008_v3 }
 0x4f9   :  { %7135 = vmatpush3.msra.mxu1 %v8169_v44  ;;  %7146 = vmatpush3.msra.mxu0 %v8174_v45 }
 0x4fa   :  { %7136 = vmatprep.subr.mxu1 %v7972_v0  ;;  %7147 = vmatprep.subr.mxu0 %v7972_v0 }
 0x4fb   :  { %7137 = vmatpush3.msra.mxu1 %v8183_v46  ;;  %7148 = vmatpush3.msra.mxu0 %v8188_v47 }
 0x4fc   :  { %7138 = vmatprep.subr.mxu1 %v7972_v0  ;;  %7149 = vmatprep.subr.mxu0 %v7972_v0 }
 0x4fd   :  { %7139 = vmatpush3.msra.mxu1 %v8197_v48  ;;  %7150 = vmatpush3.msra.mxu0 %v8202_v49 }
 0x4fe   :  { %7140 = vmatprep.subr.mxu1 %v7972_v0  ;;  %7151 = vmatprep.subr.mxu0 %v7972_v0 }
 0x4ff   :  { %7141 = vmatpush3.msra.mxu1 %v8211_v50  ;;  %7142 = vmatprep.mubr.msk.f32.mxu1 %vm7973_vm2, %v7972_v0 }
 0x500   :  { %7152 = vmatpush3.msra.mxu0 %v8218_v51  ;;  %7153 = vmatprep.mubr.msk.f32.mxu0 %vm7973_vm2, %v7972_v0 }
 0x501   :  { %7143 = vmatmul.mubr.msk.f32.vlgmr.msra.gmra.mxu1 %vm460_vm3, %v2008_v3  ;;  %7154 = vmatmul.mubr.msk.f32.vlgmr.msra.gmra.mxu0 %vm460_vm3, %v2008_v3 }
 0x502   :  { %7156 = vmatprep.subr.mxu1 %v7972_v0  ;;  %7167 = vmatprep.subr.mxu0 %v7972_v0 }
 0x503   :  { %7157 = vmatpush3.msra.mxu1 %v8107_v36  ;;  %7168 = vmatpush3.msra.mxu0 %v8112_v37 }
 0x504   :  { %7158 = vmatprep.subr.mxu1 %v7972_v0  ;;  %7169 = vmatprep.subr.mxu0 %v7972_v0 }
 0x505   :  { %7159 = vmatpush3.msra.mxu1 %v8121_v38  ;;  %7170 = vmatpush3.msra.mxu0 %v8126_v39 }
 0x506   :  { %7160 = vmatprep.subr.mxu1 %v7972_v0  ;;  %7171 = vmatprep.subr.mxu0 %v7972_v0 }
 0x507   :  { %7161 = vmatpush3.msra.mxu1 %v8135_v40  ;;  %7172 = vmatpush3.msra.mxu0 %v8140_v41 }
 0x508   :  { %7162 = vmatprep.subr.mxu1 %v7972_v0  ;;  %7173 = vmatprep.subr.mxu0 %v7972_v0 }
 0x509   :  { %7163 = vmatpush3.msra.mxu1 %v8149_v42  ;;  %7174 = vmatpush3.msra.mxu0 %v8156_v43 }
 0x50a   :  { %7164 = vmatprep.mubr.msk.f32.mxu1 %vm7973_vm2, %v7972_v0  ;;  %7175 = vmatprep.mubr.msk.f32.mxu0 %vm7973_vm2, %v7972_v0 }
 0x50b   :  { %7178 = vmatprep.subr.mxu1 %v7972_v0  ;;  %7189 = vmatprep.subr.mxu0 %v7972_v0 }
 0x5b8   :  { %v2079_v5 = vpop.f32.mrf.mxu1  ;;  %v2151_v7 = vpop.f32.mrf.mxu0 }
 0x5b9   :  { %v2083_v8 = vadd.f32 %v2079_v5, %v2009_v4  ;;  %v2155_v9 = vadd.f32 %v2151_v7, %v2084_v6 }
 0x5ba   :  { %v7122_v10 = vpop.f32.mrf.mxu1  ;;  %v7133_v11 = vpop.f32.mrf.mxu0 }
 0x5bb   :  { %v6466_v12 = vmul.f32 -1.442695, %v2083_v8  ;;  %v6465_v13 = vmul.f32 -1.442695, %v2155_v9  ;;  %v8520_v9 = vld [vmem:[%s9043_s4 + $0x58] sm:$0xff]  ;;  %v8534_v11 = vld [vmem:[%s9043_s4 + $0x50] sm:$0xff] }
 0x5bc   :  { %v8526_v10 = vld [vmem:[%s9043_s4 + $0x78] sm:$0xff] }
 0x5bd   :  { %7650 = vpow2.f32 %v6466_v12  ;;  %v8540_v12 = vld [vmem:[%s9043_s4 + $0x70] sm:$0xff] }
 0x5be   :  { %7652 = vpow2.f32 %v6465_v13  ;;  %v8548_v13 = vld [vmem:[%s9043_s4 + $0x48] sm:$0xff] }
 0x5c1   :  { %v2223_v14 = vpop.f32.mrf.mxu1  ;;  %v2295_v15 = vpop.f32.mrf.mxu0 }
 0x5c2   :  { %v2299_v17 = vadd.f32 %v2295_v15, %v2228_v16  ;;  %v2227_v22 = vadd.f32 %v2223_v14, %v2156_v20  ;;  %v8554_v14 = vld [vmem:[%s9043_s4 + $0x68] sm:$0xff]  ;;  %v8562_v15 = vld [vmem:[%s9043_s4 + $0x40] sm:$0xff]  ;;  %v7853_v20 = vld [vmem:[%s9043_s4 + $0x30] sm:$0xff] }
 0x5c3   :  { %v7144_v18 = vpop.f32.mrf.mxu1  ;;  %v7155_v19 = vpop.f32.mrf.mxu0  ;;  %v8570_v16 = vld [vmem:[%s9043_s4 + $0x60] sm:$0xff] }
 0x5c4   :  { %v6467_v21 = vmul.f32 -1.442695, %v2299_v17  ;;  %v7850_v17 = vld [vmem:[%s9043_s4 + $0x18] sm:$0xff]  ;;  %v7852_v19 = vld [vmem:[%s9043_s4 + $0x10] sm:$0xff] }
 0x5c5   :  { %v7851_v18 = vld [vmem:[%s9043_s4 + $0x38] sm:$0xff] }
 0x5c6   :  { %7654 = vpow2.f32 %v6467_v21  ;;  %v7854_v21 = vld [vmem:[%s9043_s4 + $0x8] sm:$0xff] }
 0x5c7   :  { %7656 = vtanh.f32 %v2227_v22  ;;  %v7855_v22 = vld [vmem:[%s9043_s4 + $0x28] sm:$0xff] }
 0x5ca   :  { %v7651_v23 = vpop.eup %7650 }
 0x5cb   :  { %v7653_v24 = vpop.eup %7652  ;;  %v2310_v25 = vadd.f32 1.0, %v7651_v23  ;;  %v7856_v23 = vld [vmem:[%s9043_s4] sm:$0xff] }
 0x5cc   :  { %v2303_v26 = vadd.f32 1.0, %v7653_v24  ;;  %v7857_v24 = vld [vmem:[%s9043_s4 + $0x20] sm:$0xff] }
 0x5cd   :  { %7658 = vrcp.f32 %v2310_v25  ;;  %v2639_v25 = vld [vmem:[#allocation3 + $0xc] sm:$0x3] }
 0x5ce   :  { %7660 = vrcp.f32 %v2303_v26 }
 0x5d3   :  { %v7655_v27 = vpop.eup %7654 }
 0x5d4   :  { %v7657_v28 = vpop.eup %7656  ;;  %v2319_v32 = vadd.f32 1.0, %v7655_v27  ;;  %v2714_v27 = vld [vmem:[#allocation3 + $0x1c] sm:$0x3] }
 0x5d6   :  { %7662 = vrcp.f32 %v2319_v32 }
 0x5da   :  { %v7659_v29 = vpop.eup %7658 }
 0x5db   :  { %v7661_v30 = vpop.eup %7660  ;;  %v2314_v31 = vmul.f32 %v7659_v29, %v7657_v28 }
 0x5dc   :  { %v2306_v33 = vmul.f32 %v7661_v30, %v8416_v63 }
 0x5de   :  { %v8464_v34 = vadd.f32 %v2314_v31, %v2306_v33 }
 0x5e0   :  { %7664 = vtanh.f32 %v8464_v34 }
 0x5e3   :  { %v7663_v35 = vpop.eup %7662 }
 0x5ed   :  { %v7665_v52 = vpop.eup %7664 }
 0x5ee   :  { %v2323_v53 = vmul.f32 %v7665_v52, %v7663_v35 }
 0x5f0   :  { %7165 = vmatmul.mubr.msk.f32.vlgmr.msra.gmra.mxu1 %vm460_vm3, %v2323_v53  ;;  %7176 = vmatmul.mubr.msk.f32.vlgmr.msra.gmra.mxu0 %vm460_vm3, %v2323_v53 }
 0x5f1   :  { %7179 = vmatpush3.msra.mxu1 %v8169_v44  ;;  %7190 = vmatpush3.msra.mxu0 %v8174_v45 }
 0x5f2   :  { %7180 = vmatprep.subr.mxu1 %v7972_v0  ;;  %7191 = vmatprep.subr.mxu0 %v7972_v0 }
 0x5f3   :  { %7181 = vmatpush3.msra.mxu1 %v8183_v46  ;;  %7192 = vmatpush3.msra.mxu0 %v8188_v47 }
 0x5f4   :  { %7182 = vmatprep.subr.mxu1 %v7972_v0  ;;  %7193 = vmatprep.subr.mxu0 %v7972_v0 }
 0x5f5   :  { %7183 = vmatpush3.msra.mxu1 %v8197_v48  ;;  %7194 = vmatpush3.msra.mxu0 %v8202_v49  ;;  %v2543_v48 = vld [vmem:[#allocation3 + $0x3a] sm:$0x3] }
 0x5f6   :  { %7184 = vmatprep.subr.mxu1 %v7972_v0  ;;  %7195 = vmatprep.subr.mxu0 %v7972_v0 }
 0x5f7   :  { %7185 = vmatpush3.msra.mxu1 %v8211_v50  ;;  %7186 = vmatprep.mubr.msk.f32.mxu1 %vm7973_vm2, %v7972_v0 }
 0x5f8   :  { %7196 = vmatpush3.msra.mxu0 %v8218_v51  ;;  %7197 = vmatprep.mubr.msk.f32.mxu0 %vm7973_vm2, %v7972_v0 }
 0x5f9   :  { %7187 = vmatmul.mubr.msk.f32.vlgmr.msra.gmra.mxu1 %vm460_vm3, %v2323_v53  ;;  %7198 = vmatmul.mubr.msk.f32.vlgmr.msra.gmra.mxu0 %vm460_vm3, %v2323_v53  ;;  %v2858_v53 = vld [vmem:[#allocation3 + $0x3c] sm:$0x3] }
 0x5fa   :  { %7200 = vmatprep.subr.mxu1 %v7972_v0  ;;  %7211 = vmatprep.subr.mxu0 %v7972_v0 }
 0x5fb   :  { %7201 = vmatpush3.msra.mxu1 %v8107_v36  ;;  %7212 = vmatpush3.msra.mxu0 %v8112_v37  ;;  %v2324_v36 = vld [vmem:[#allocation3 + $0xa] sm:$0x3] }
 0x5fc   :  { %7202 = vmatprep.subr.mxu1 %v7972_v0  ;;  %7213 = vmatprep.subr.mxu0 %v7972_v0 }
 0x5fd   :  { %7203 = vmatpush3.msra.mxu1 %v8121_v38  ;;  %7214 = vmatpush3.msra.mxu0 %v8126_v39  ;;  %v2399_v38 = vld [vmem:[#allocation3 + $0x1a] sm:$0x3] }
 0x5fe   :  { %7204 = vmatprep.subr.mxu1 %v7972_v0  ;;  %7215 = vmatprep.subr.mxu0 %v7972_v0 }
 0x5ff   :  { %7205 = vmatpush3.msra.mxu1 %v8135_v40  ;;  %7216 = vmatpush3.msra.mxu0 %v8140_v41 }
 0x600   :  { %7206 = vmatprep.subr.mxu1 %v7972_v0  ;;  %7217 = vmatprep.subr.mxu0 %v7972_v0 }
 0x601   :  { %7207 = vmatpush3.msra.mxu1 %v8149_v42  ;;  %7218 = vmatpush3.msra.mxu0 %v8156_v43 }
 0x602   :  { %7208 = vmatprep.mubr.msk.f32.mxu1 %vm7973_vm2, %v7972_v0  ;;  %7219 = vmatprep.mubr.msk.f32.mxu0 %vm7973_vm2, %v7972_v0 }
 0x603   :  { %7222 = vmatprep.subr.mxu1 %v7972_v0  ;;  %7233 = vmatprep.subr.mxu0 %v7972_v0 }
 0x6b0   :  { %v2394_v37 = vpop.f32.mrf.mxu1  ;;  %v2466_v39 = vpop.f32.mrf.mxu0 }
 0x6b1   :  { %v2398_v40 = vadd.f32 %v2394_v37, %v2324_v36  ;;  %v2470_v41 = vadd.f32 %v2466_v39, %v2399_v38  ;;  %v2786_v39 = vld [vmem:[#allocation3 + $0x2c] sm:$0x3] }
 0x6b2   :  { %v7166_v44 = vpop.f32.mrf.mxu1  ;;  %v7177_v42 = vpop.f32.mrf.mxu0 }
 0x6b3   :  { %v6473_v45 = vmul.f32 -1.442695, %v2398_v40  ;;  %v6472_v43 = vmul.f32 -1.442695, %v2470_v41 }
 0x6b5   :  { %7666 = vpow2.f32 %v6473_v45 }
 0x6b6   :  { %7668 = vpow2.f32 %v6472_v43 }
 0x6b9   :  { %v2538_v46 = vpop.f32.mrf.mxu1  ;;  %v2610_v47 = vpop.f32.mrf.mxu0 }
 0x6ba   :  { %v2614_v49 = vadd.f32 %v2610_v47, %v2543_v48  ;;  %v2542_v56 = vadd.f32 %v2538_v46, %v2471_v54 }
 0x6bb   :  { %v7188_v50 = vpop.f32.mrf.mxu1  ;;  %v7199_v51 = vpop.f32.mrf.mxu0 }
 0x6bc   :  { %v6474_v55 = vmul.f32 -1.442695, %v2614_v49 }
 0x6be   :  { %7670 = vpow2.f32 %v6474_v55 }
 0x6bf   :  { %7672 = vtanh.f32 %v2542_v56 }
 0x6c2   :  { %v7667_v57 = vpop.eup %7666 }
 0x6c3   :  { %v7669_v58 = vpop.eup %7668  ;;  %v2625_v59 = vadd.f32 1.0, %v7667_v57 }
 0x6c4   :  { %v2618_v60 = vadd.f32 1.0, %v7669_v58 }
 0x6c5   :  { %7674 = vrcp.f32 %v2625_v59  ;;  %v3272_v59 = vld [vmem:[%s9045_s6 + $0x18] sm:$0xff] }
 0x6c6   :  { %7676 = vrcp.f32 %v2618_v60  ;;  %v6494_v60 = vld [vmem:[%s9045_s6 + $0x38] sm:$0xff] }
 0x6cb   :  { %v7671_v61 = vpop.eup %7670 }
 0x6cc   :  { %v7673_v62 = vpop.eup %7672  ;;  %v2634_v3 = vadd.f32 1.0, %v7671_v61  ;;  %v3271_v61 = vld [vmem:[%s9045_s6 + $0x10] sm:$0xff] }
 0x6ce   :  { %7678 = vrcp.f32 %v2634_v3  ;;  %v6491_v3 = vld [vmem:[%s9045_s6 + $0x20] sm:$0xff] }
 0x6d2   :  { %v7675_v63 = vpop.eup %7674 }
 0x6d3   :  { %v7677_v1 = vpop.eup %7676  ;;  %v2629_v2 = vmul.f32 %v7675_v63, %v7673_v62  ;;  %v6493_v62 = vld [vmem:[%s9045_s6 + $0x30] sm:$0xff]  ;;  %v3270_v63 = vld [vmem:[%s9045_s6 + $0x8] sm:$0xff] }
 0x6d4   :  { %v2621_v4 = vmul.f32 %v7677_v1, %v8464_v34  ;;  %v6492_v1 = vld [vmem:[%s9045_s6 + $0x28] sm:$0xff] }
 0x6d6   :  { %v8512_v5 = vadd.f32 %v2629_v2, %v2621_v4  ;;  %v3269_v2 = vld [vmem:[%s9045_s6] sm:$0xff] }
 0x6d7   :  { %v2954_v4 = vld [vmem:[#allocation3 + $0xe] sm:$0x3] }
 0x6d8   :  { %7680 = vtanh.f32 %v8512_v5 }
 0x6db   :  { %v7679_v6 = vpop.eup %7678 }
 0x6e5   :  { %v7681_v7 = vpop.eup %7680 }
 0x6e6   :  { %v2638_v8 = vmul.f32 %v7681_v7, %v7679_v6  ;;  %v3029_v6 = vld [vmem:[#allocation3 + $0x1e] sm:$0x3] }
 0x6e8   :  { %7209 = vmatmul.mubr.msk.f32.vlgmr.msra.gmra.mxu1 %vm460_vm3, %v2638_v8  ;;  %7220 = vmatmul.mubr.msk.f32.vlgmr.msra.gmra.mxu0 %vm460_vm3, %v2638_v8 }
 0x6e9   :  { %7223 = vmatpush3.msra.mxu1 %v8520_v9  ;;  %7234 = vmatpush3.msra.mxu0 %v8526_v10 }
 0x6ea   :  { %7224 = vmatprep.subr.mxu1 %v7972_v0  ;;  %7235 = vmatprep.subr.mxu0 %v7972_v0 }
 0x6eb   :  { %7225 = vmatpush3.msra.mxu1 %v8534_v11  ;;  %7236 = vmatpush3.msra.mxu0 %v8540_v12 }
 0x6ec   :  { %7226 = vmatprep.subr.mxu1 %v7972_v0  ;;  %7237 = vmatprep.subr.mxu0 %v7972_v0 }
 0x6ed   :  { %7227 = vmatpush3.msra.mxu1 %v8548_v13  ;;  %7238 = vmatpush3.msra.mxu0 %v8554_v14 }
 0x6ee   :  { %7228 = vmatprep.subr.mxu1 %v7972_v0  ;;  %7239 = vmatprep.subr.mxu0 %v7972_v0 }
 0x6ef   :  { %7229 = vmatpush3.msra.mxu1 %v8562_v15  ;;  %7230 = vmatprep.mubr.msk.f32.mxu1 %vm7973_vm2, %v7972_v0 }
 0x6f0   :  { %7240 = vmatpush3.msra.mxu0 %v8570_v16  ;;  %7241 = vmatprep.mubr.msk.f32.mxu0 %vm7973_vm2, %v7972_v0 }
 0x6f1   :  { %7231 = vmatmul.mubr.msk.f32.vlgmr.msra.gmra.mxu1 %vm460_vm3, %v2638_v8  ;;  %7242 = vmatmul.mubr.msk.f32.vlgmr.msra.gmra.mxu0 %vm460_vm3, %v2638_v8 }
 0x6f2   :  { %7244 = vmatprep.subr.mxu1 %v7972_v0  ;;  %7255 = vmatprep.subr.mxu0 %v7972_v0 }
 0x6f3   :  { %7245 = vmatpush3.msra.mxu1 %v7850_v17  ;;  %7256 = vmatpush3.msra.mxu0 %v7851_v18 }
 0x6f4   :  { %7246 = vmatprep.subr.mxu1 %v7972_v0  ;;  %7257 = vmatprep.subr.mxu0 %v7972_v0 }
 0x6f5   :  { %7247 = vmatpush3.msra.mxu1 %v7852_v19  ;;  %7258 = vmatpush3.msra.mxu0 %v7853_v20  ;;  %v3101_v20 = vld [vmem:[#allocation3 + $0x2e] sm:$0x3] }
 0x6f6   :  { %7248 = vmatprep.subr.mxu1 %v7972_v0  ;;  %7259 = vmatprep.subr.mxu0 %v7972_v0 }
 0x6f7   :  { %7249 = vmatpush3.msra.mxu1 %v7854_v21  ;;  %7260 = vmatpush3.msra.mxu0 %v7855_v22 }
 0x6f8   :  { %7250 = vmatprep.subr.mxu1 %v7972_v0  ;;  %7261 = vmatprep.subr.mxu0 %v7972_v0 }
 0x6f9   :  { %7251 = vmatpush3.msra.mxu1 %v7856_v23  ;;  %7262 = vmatpush3.msra.mxu0 %v7857_v24 }
 0x6fa   :  { %7252 = vmatprep.mubr.msk.f32.mxu1 %vm7973_vm2, %v7972_v0  ;;  %7263 = vmatprep.mubr.msk.f32.mxu0 %vm7973_vm2, %v7972_v0 }
 0x6fb   :  { %7266 = vmatprep.subr.mxu1 %v7972_v0  ;;  %7277 = vmatprep.subr.mxu0 %v7972_v0 }
 0x7a8   :  { %v2709_v26 = vpop.f32.mrf.mxu1  ;;  %v2781_v28 = vpop.f32.mrf.mxu0 }
 0x7a9   :  { %v2713_v29 = vadd.f32 %v2709_v26, %v2639_v25  ;;  %v2785_v30 = vadd.f32 %v2781_v28, %v2714_v27 }
 0x7aa   :  { %v7210_v31 = vpop.f32.mrf.mxu1  ;;  %v7221_v32 = vpop.f32.mrf.mxu0 }
 0x7ab   :  { %v6480_v33 = vmul.f32 -1.442695, %v2713_v29  ;;  %v6479_v34 = vmul.f32 -1.442695, %v2785_v30 }
 0x7ad   :  { %7682 = vpow2.f32 %v6480_v33 }
 0x7ae   :  { %7684 = vpow2.f32 %v6479_v34 }
 0x7b1   :  { %v2853_v35 = vpop.f32.mrf.mxu1  ;;  %v2925_v52 = vpop.f32.mrf.mxu0 }
 0x7b2   :  { %v2929_v36 = vadd.f32 %v2925_v52, %v2858_v53  ;;  %v2857_v41 = vadd.f32 %v2853_v35, %v2786_v39  ;;  %v6507_v39 = vld [vmem:[%s9045_s6 + $0x70] sm:$0xff] }
 0x7b3   :  { %v7232_v37 = vpop.f32.mrf.mxu1  ;;  %v7243_v38 = vpop.f32.mrf.mxu0 }
 0x7b4   :  { %v6481_v40 = vmul.f32 -1.442695, %v2929_v36  ;;  %v6501_v36 = vld [vmem:[%s9045_s6 + $0x58] sm:$0xff]  ;;  %v6500_v38 = vld [vmem:[%s9045_s6 + $0x50] sm:$0xff] }
 0x7b5   :  { %v6508_v37 = vld [vmem:[%s9045_s6 + $0x78] sm:$0xff] }
 0x7b6   :  { %7686 = vpow2.f32 %v6481_v40  ;;  %v6499_v40 = vld [vmem:[%s9045_s6 + $0x48] sm:$0xff] }
 0x7b7   :  { %7688 = vtanh.f32 %v2857_v41  ;;  %v6506_v41 = vld [vmem:[%s9045_s6 + $0x68] sm:$0xff] }
 0x7ba   :  { %v7683_v44 = vpop.eup %7682 }
 0x7bb   :  { %v7685_v42 = vpop.eup %7684  ;;  %v2940_v45 = vadd.f32 1.0, %v7683_v44  ;;  %v6498_v44 = vld [vmem:[%s9045_s6 + $0x40] sm:$0xff] }
 0x7bc   :  { %v2933_v43 = vadd.f32 1.0, %v7685_v42  ;;  %v6505_v42 = vld [vmem:[%s9045_s6 + $0x60] sm:$0xff] }
 0x7bd   :  { %7690 = vrcp.f32 %v2940_v45  ;;  %v8716_v45 = vld [vmem:[#allocation9 + $0x8] sm:$0xff] }
 0x7be   :  { %7692 = vrcp.f32 %v2933_v43  ;;  %v8718_v43 = vld [vmem:[#allocation9 + $0x18] sm:$0xff] }
 0x7c3   :  { %v7687_v46 = vpop.eup %7686 }
 0x7c4   :  { %v7689_v47 = vpop.eup %7688  ;;  %v2949_v51 = vadd.f32 1.0, %v7687_v46  ;;  %v8724_v46 = vld [vmem:[#allocation9] sm:$0xff] }
 0x7c6   :  { %7694 = vrcp.f32 %v2949_v51  ;;  %v8750_v51 = vld [vmem:[#allocation9 + $0x30] sm:$0xff] }
 0x7ca   :  { %v7691_v48 = vpop.eup %7690 }
 0x7cb   :  { %v7693_v49 = vpop.eup %7692  ;;  %v2944_v50 = vmul.f32 %v7691_v48, %v7689_v47  ;;  %v8728_v47 = vld [vmem:[#allocation9 + $0x10] sm:$0xff]  ;;  %v8738_v48 = vld [vmem:[#allocation9 + $0x28] sm:$0xff] }
 0x7cc   :  { %v2936_v54 = vmul.f32 %v7693_v49, %v8512_v5  ;;  %v8740_v49 = vld [vmem:[#allocation9 + $0x38] sm:$0xff] }
 0x7ce   :  { %v8616_v55 = vadd.f32 %v2944_v50, %v2936_v54  ;;  %v8746_v50 = vld [vmem:[#allocation9 + $0x20] sm:$0xff] }
 0x7d0   :  { %7696 = vtanh.f32 %v8616_v55 }
 0x7d3   :  { %v7695_v56 = vpop.eup %7694 }
 0x7dd   :  { %v7697_v57 = vpop.eup %7696 }
 0x7de   :  { %v2953_v58 = vmul.f32 %v7697_v57, %v7695_v56 }
 0x7e0   :  { %7253 = vmatmul.mubr.msk.f32.vlgmr.msra.gmra.mxu1 %vm460_vm3, %v2953_v58  ;;  %7264 = vmatmul.mubr.msk.f32.vlgmr.msra.gmra.mxu0 %vm460_vm3, %v2953_v58 }
 0x7e1   :  { %7267 = vmatpush3.msra.mxu1 %v8520_v9  ;;  %7278 = vmatpush3.msra.mxu0 %v8526_v10 }
 0x7e2   :  { %7268 = vmatprep.subr.mxu1 %v7972_v0  ;;  %7279 = vmatprep.subr.mxu0 %v7972_v0 }
 0x7e3   :  { %7269 = vmatpush3.msra.mxu1 %v8534_v11  ;;  %7280 = vmatpush3.msra.mxu0 %v8540_v12 }
 0x7e4   :  { %7270 = vmatprep.subr.mxu1 %v7972_v0  ;;  %7281 = vmatprep.subr.mxu0 %v7972_v0 }
 0x7e5   :  { %7271 = vmatpush3.msra.mxu1 %v8548_v13  ;;  %7282 = vmatpush3.msra.mxu0 %v8554_v14 }
 0x7e6   :  { %7272 = vmatprep.subr.mxu1 %v7972_v0  ;;  %7283 = vmatprep.subr.mxu0 %v7972_v0 }
 0x7e7   :  { %7273 = vmatpush3.msra.mxu1 %v8562_v15  ;;  %7274 = vmatprep.mubr.msk.f32.mxu1 %vm7973_vm2, %v7972_v0 }
 0x7e8   :  { %7284 = vmatpush3.msra.mxu0 %v8570_v16  ;;  %7285 = vmatprep.mubr.msk.f32.mxu0 %vm7973_vm2, %v7972_v0  ;;  %v3173_v16 = vld [vmem:[#allocation3 + $0x3e] sm:$0x3] }
 0x7e9   :  { %7275 = vmatmul.mubr.msk.f32.vlgmr.msra.gmra.mxu1 %vm460_vm3, %v2953_v58  ;;  %7286 = vmatmul.mubr.msk.f32.vlgmr.msra.gmra.mxu0 %vm460_vm3, %v2953_v58 }
 0x7ea   :  { %7288 = vmatprep.subr.mxu1 %v7972_v0  ;;  %7299 = vmatprep.subr.mxu0 %v7972_v0 }
 0x7eb   :  { %7296 = vmatprep.mubr.msk.f32.mxu1 %vm7973_vm2, %v7972_v0  ;;  %7307 = vmatprep.mubr.msk.f32.mxu0 %vm7973_vm2, %v7972_v0 }
 0x7ec   :  { %7289 = vmatpush3.msra.mxu1 %v3272_v59  ;;  %7300 = vmatpush3.msra.mxu0 %v6494_v60  ;;  %v6489_v60 = vld [vmem:[%s9047_s8] ss:$0 sm:$0xff] }
 0x7ed   :  { %7290 = vmatprep.subr.mxu1 %v7972_v0  ;;  %7301 = vmatprep.subr.mxu0 %v7972_v0 }
 0x7ee   :  { %7291 = vmatpush3.msra.mxu1 %v3271_v61  ;;  %7302 = vmatpush3.msra.mxu0 %v6493_v62  ;;  %v6496_v61 = vld [vmem:[%s9047_s8 + $0x1] ss:$0 sm:$0xff] }
 0x7ef   :  { %7292 = vmatprep.subr.mxu1 %v7972_v0  ;;  %7303 = vmatprep.subr.mxu0 %v7972_v0 }
 0x7f0   :  { %7293 = vmatpush3.msra.mxu1 %v3270_v63  ;;  %7304 = vmatpush3.msra.mxu0 %v6492_v1 }
 0x7f1   :  { %7294 = vmatprep.subr.mxu1 %v7972_v0  ;;  %7305 = vmatprep.subr.mxu0 %v7972_v0 }
 0x7f2   :  { %7295 = vmatpush3.msra.mxu1 %v3269_v2  ;;  %7306 = vmatpush3.msra.mxu0 %v6491_v3 }
 0x7f3   :  { %7310 = vmatprep.subr.mxu1 %v7972_v0  ;;  %7321 = vmatprep.subr.mxu0 %v7972_v0 }
 0x8a0   :  { %v3024_v5 = vpop.f32.mrf.mxu1  ;;  %v3096_v7 = vpop.f32.mrf.mxu0 }
 0x8a1   :  { %v3028_v8 = vadd.f32 %v3024_v5, %v2954_v4  ;;  %v3100_v9 = vadd.f32 %v3096_v7, %v3029_v6 }
 0x8a2   :  { %v7254_v10 = vpop.f32.mrf.mxu1  ;;  %v7265_v11 = vpop.f32.mrf.mxu0 }
 0x8a3   :  { %v6487_v12 = vmul.f32 -1.442695, %v3028_v8  ;;  %v6486_v13 = vmul.f32 -1.442695, %v3100_v9  ;;  %v6510_v11 = vld [vmem:[%s9047_s8 + $0x3] ss:$0 sm:$0xff] }
 0x8a5   :  { %7698 = vpow2.f32 %v6487_v12 }
 0x8a6   :  { %7700 = vpow2.f32 %v6486_v13 }
 0x8a9   :  { %v3168_v14 = vpop.f32.mrf.mxu1  ;;  %v3240_v15 = vpop.f32.mrf.mxu0 }
 0x8aa   :  { %v3244_v17 = vadd.f32 %v3240_v15, %v3173_v16  ;;  %v3172_v22 = vadd.f32 %v3168_v14, %v3101_v20 }
 0x8ab   :  { %v7276_v18 = vpop.f32.mrf.mxu1  ;;  %v7287_v19 = vpop.f32.mrf.mxu0 }
 0x8ac   :  { %v6488_v21 = vmul.f32 -1.442695, %v3244_v17  ;;  %v6503_v17 = vld [vmem:[%s9047_s8 + $0x2] ss:$0 sm:$0xff] }
 0x8ae   :  { %7702 = vpow2.f32 %v6488_v21 }
 0x8af   :  { %7704 = vtanh.f32 %v3172_v22 }
 0x8b2   :  { %v7699_v23 = vpop.eup %7698 }
 0x8b3   :  { %v7701_v24 = vpop.eup %7700  ;;  %v3255_v25 = vadd.f32 1.0, %v7699_v23 }
 0x8b4   :  { %v3248_v26 = vadd.f32 1.0, %v7701_v24 }
 0x8b5   :  { %7706 = vrcp.f32 %v3255_v25 }
 0x8b6   :  { %7708 = vrcp.f32 %v3248_v26 }
 0x8bb   :  { %v7703_v27 = vpop.eup %7702 }
 0x8bc   :  { %v7705_v28 = vpop.eup %7704  ;;  %v3264_v32 = vadd.f32 1.0, %v7703_v27 }
 0x8be   :  { %7710 = vrcp.f32 %v3264_v32 }
 0x8c2   :  { %v7707_v29 = vpop.eup %7706 }
 0x8c3   :  { %v7709_v30 = vpop.eup %7708  ;;  %v3259_v31 = vmul.f32 %v7707_v29, %v7705_v28 }
 0x8c4   :  { %v3251_v33 = vmul.f32 %v7709_v30, %v8616_v55 }
 0x8c6   :  { %v3260_v34 = vadd.f32 %v3259_v31, %v3251_v33 }
 0x8c8   :  { %7712 = vtanh.f32 %v3260_v34 }
 0x8cb   :  { %v7711_v35 = vpop.eup %7710 }
 0x8d5   :  { %v7713_v52 = vpop.eup %7712 }
 0x8d6   :  { %v3268_v53 = vmul.f32 %v7713_v52, %v7711_v35 }
 0x8d8   :  { %7297 = vmatmul.mubr.msk.f32.vlgmr.msra.gmra.mxu1 %vm460_vm3, %v3268_v53  ;;  %7308 = vmatmul.mubr.msk.f32.vlgmr.msra.gmra.mxu0 %vm460_vm3, %v3268_v53 }
 0x8d9   :  { %7311 = vmatpush3.msra.mxu1 %v6501_v36  ;;  %7322 = vmatpush3.msra.mxu0 %v6508_v37 }
 0x8da   :  { %7312 = vmatprep.subr.mxu1 %v7972_v0  ;;  %7323 = vmatprep.subr.mxu0 %v7972_v0 }
 0x8db   :  { %7313 = vmatpush3.msra.mxu1 %v6500_v38  ;;  %7324 = vmatpush3.msra.mxu0 %v6507_v39 }
 0x8dc   :  { %7314 = vmatprep.subr.mxu1 %v7972_v0  ;;  %7325 = vmatprep.subr.mxu0 %v7972_v0 }
 0x8dd   :  { %7315 = vmatpush3.msra.mxu1 %v6499_v40  ;;  %7326 = vmatpush3.msra.mxu0 %v6506_v41 }
 0x8de   :  { %7316 = vmatprep.subr.mxu1 %v7972_v0  ;;  %7327 = vmatprep.subr.mxu0 %v7972_v0 }
 0x8df   :  { %7317 = vmatpush3.msra.mxu1 %v6498_v44  ;;  %7318 = vmatprep.mubr.msk.f32.mxu1 %vm7973_vm2, %v7972_v0 }
 0x8e0   :  { %7328 = vmatpush3.msra.mxu0 %v6505_v42  ;;  %7329 = vmatprep.mubr.msk.f32.mxu0 %vm7973_vm2, %v7972_v0 }
 0x8e1   :  { %7319 = vmatmul.mubr.msk.f32.vlgmr.msra.gmra.mxu1 %vm460_vm3, %v3268_v53  ;;  %7330 = vmatmul.mubr.msk.f32.vlgmr.msra.gmra.mxu0 %vm460_vm3, %v3268_v53 }
 0x8e2   :  { %7332 = vmatprep.subr.mxu1 %v7972_v0  ;;  %7339 = vmatprep.subr.mxu0 %v7972_v0 }
 0x8e3   :  { %7333 = vmatpush3.msra.mxu1 %v8716_v45  ;;  %7340 = vmatpush3.msra.mxu0 %v8718_v43 }
 0x8e4   :  { %7334 = vmatprep.subr.mxu1 %v7972_v0  ;;  %7341 = vmatprep.subr.mxu0 %v7972_v0 }
 0x8e5   :  { %7335 = vmatpush3.msra.mxu1 %v8724_v46  ;;  %7336 = vmatprep.mubr.msk.f32.mxu1 %vm7973_vm2, %v7972_v0 }
 0x8e6   :  { %7342 = vmatpush3.msra.mxu0 %v8728_v47  ;;  %7343 = vmatprep.mubr.msk.f32.mxu0 %vm7973_vm2, %v7972_v0 }
 0x8e7   :  { %7337 = vmatmul.mubr.f32.vlgmr.msra.gmra.mxu1 %v7972_v0  ;;  %7344 = vmatmul.mubr.f32.vlgmr.msra.gmra.mxu0 %v7972_v0 }
 0x8e8   :  { %7346 = vmatprep.subr.mxu1 %v7972_v0  ;;  %7353 = vmatprep.subr.mxu0 %v7972_v0 }
 0x8e9   :  { %7347 = vmatpush3.msra.mxu1 %v8738_v48  ;;  %7354 = vmatpush3.msra.mxu0 %v8740_v49 }
 0x8ea   :  { %7348 = vmatprep.subr.mxu1 %v7972_v0  ;;  %7355 = vmatprep.subr.mxu0 %v7972_v0 }
 0x8eb   :  { %7349 = vmatpush3.msra.mxu1 %v8746_v50  ;;  %7350 = vmatprep.mubr.msk.f32.mxu1 %vm7973_vm2, %v7972_v0 }
 0x8ec   :  { %7356 = vmatpush3.msra.mxu0 %v8750_v51  ;;  %7357 = vmatprep.mubr.msk.f32.mxu0 %vm7973_vm2, %v7972_v0 }
 0x8ed   :  { %7351 = vmatmul.mubr.f32.vlgmr.msra.gmra.mxu1 %v7972_v0  ;;  %7358 = vmatmul.mubr.f32.vlgmr.msra.gmra.mxu0 %v7972_v0 }
 0x8ee   :  { %7360 = vmatprep.subr.mxu1 %v7972_v0  ;;  %7367 = vmatprep.subr.mxu0 %v7972_v0 }
 0x8ef   :  { %7361 = vmatpush3.msra.mxu1 %v8716_v45  ;;  %7368 = vmatpush3.msra.mxu0 %v8718_v43 }
 0x8f0   :  { %7362 = vmatprep.subr.mxu1 %v7972_v0  ;;  %7369 = vmatprep.subr.mxu0 %v7972_v0 }
 0x8f1   :  { %7363 = vmatpush3.msra.mxu1 %v8724_v46  ;;  %7364 = vmatprep.mubr.msk.f32.mxu1 %vm7973_vm2, %v7972_v0 }
 0x8f2   :  { %7370 = vmatpush3.msra.mxu0 %v8728_v47  ;;  %7371 = vmatprep.mubr.msk.f32.mxu0 %vm7973_vm2, %v7972_v0 }
 0x8f3   :  { %7374 = vmatprep.subr.mxu1 %v7972_v0  ;;  %7381 = vmatprep.subr.mxu0 %v7972_v0 }
 0x998   :  { %v3349_v54 = vpop.f32.mrf.mxu1  ;;  %v3432_v55 = vpop.f32.mrf.mxu0 }
 0x999   :  { %v8782_v1 = vadd.f32 %v6489_v60, %v3349_v54  ;;  %v8784_v2 = vadd.f32 %v6496_v61, %v3432_v55 }
 0x99a   :  { %v7298_v56 = vpop.f32.mrf.mxu1  ;;  %v7309_v57 = vpop.f32.mrf.mxu0 }
 0x9a1   :  { %v3515_v58 = vpop.f32.mrf.mxu1  ;;  %v3598_v59 = vpop.f32.mrf.mxu0 }
 0x9a2   :  { %v8791_v16 = vadd.f32 %v6510_v11, %v3598_v59  ;;  %v8797_v19 = vadd.f32 %v6503_v17, %v3515_v58 }
 0x9a3   :  { %v7320_v62 = vpop.f32.mrf.mxu1  ;;  %v7331_v63 = vpop.f32.mrf.mxu0 }
 0x9a7   :  { %v3681_v3 = vpop.f32.mrf.mxu1  ;;  %v3752_v4 = vpop.f32.mrf.mxu0 }
 0x9a8   :  { %v3685_v5 = vadd.f32 %v3681_v3, %v8782_v1  ;;  %v3756_v6 = vadd.f32 %v3752_v4, %v8784_v2 }
 0x9a9   :  { %v7338_v7 = vpop.f32.mrf.mxu1  ;;  %v7345_v8 = vpop.f32.mrf.mxu0 }
 0x9aa   :  { %v6513_v9 = vmul.f32 -1.442695, %v3685_v5  ;;  %v6512_v10 = vmul.f32 -1.442695, %v3756_v6 }
 0x9ac   :  { %7714 = vpow2.f32 %v6513_v9 }
 0x9ad   :  { %7716 = vpow2.f32 %v6512_v10  ;;  %v3823_v12 = vpop.f32.mrf.mxu1  ;;  %v3894_v13 = vpop.f32.mrf.mxu0 }
 0x9ae   :  { %v3898_v18 = vadd.f32 %v3894_v13, %v8791_v16  ;;  %v3827_v21 = vadd.f32 %v3823_v12, %v8797_v19 }
 0x9af   :  { %v7352_v14 = vpop.f32.mrf.mxu1  ;;  %v7359_v15 = vpop.f32.mrf.mxu0 }
 0x9b0   :  { %v6514_v20 = vmul.f32 -1.442695, %v3898_v18 }
 0x9b2   :  { %7718 = vpow2.f32 %v6514_v20 }
 0x9b3   :  { %7720 = vtanh.f32 %v3827_v21 }
 0x9b9   :  { %v7715_v22 = vpop.eup %7714 }
 0x9ba   :  { %v7717_v23 = vpop.eup %7716  ;;  %v3909_v24 = vadd.f32 1.0, %v7715_v22 }
 0x9bb   :  { %v3902_v25 = vadd.f32 1.0, %v7717_v23 }
 0x9bc   :  { %7722 = vrcp.f32 %v3909_v24 }
 0x9bd   :  { %7724 = vrcp.f32 %v3902_v25 }
 0x9bf   :  { %v7719_v26 = vpop.eup %7718 }
 0x9c0   :  { %v7721_v27 = vpop.eup %7720  ;;  %v3918_v31 = vadd.f32 1.0, %v7719_v26 }
 0x9c2   :  { %7726 = vrcp.f32 %v3918_v31 }
 0x9c9   :  { %v7723_v28 = vpop.eup %7722 }
 0x9ca   :  { %v7725_v29 = vpop.eup %7724  ;;  %v3913_v30 = vmul.f32 %v7723_v28, %v7721_v27 }
 0x9cb   :  { %v3905_v32 = vmul.f32 0.0, %v7725_v29 }
 0x9cd   :  { %v3914_v33 = vadd.f32 %v3913_v30, %v3905_v32 }
 0x9cf   :  { %7728 = vtanh.f32 %v3914_v33  ;;  %v7727_v34 = vpop.eup %7726 }
 0x9dc   :  { %v7729_v35 = vpop.eup %7728 }
 0x9dd   :  { %v3922_v52 = vmul.f32 %v7729_v35, %v7727_v34 }
 0x9df   :  { %3923 = vst.msk [vmem:[#allocation2 + $0x2] sm:$0x3] %vm94_vm0, %v3922_v52  ;;  %7365 = vmatmul.mubr.msk.f32.vlgmr.msra.gmra.mxu1 %vm99_vm1, %v3922_v52  ;;  %7372 = vmatmul.mubr.msk.f32.vlgmr.msra.gmra.mxu0 %vm99_vm1, %v3922_v52 }
 0x9e0   :  { %7375 = vmatpush3.msra.mxu1 %v8738_v48  ;;  %7382 = vmatpush3.msra.mxu0 %v8740_v49 }
 0x9e1   :  { %7376 = vmatprep.subr.mxu1 %v7972_v0  ;;  %7383 = vmatprep.subr.mxu0 %v7972_v0 }
 0x9e2   :  { %7377 = vmatpush3.msra.mxu1 %v8746_v50  ;;  %7378 = vmatprep.mubr.msk.f32.mxu1 %vm7973_vm2, %v7972_v0 }
 0x9e3   :  { %7384 = vmatpush3.msra.mxu0 %v8750_v51  ;;  %7385 = vmatprep.mubr.msk.f32.mxu0 %vm7973_vm2, %v7972_v0 }
 0x9e4   :  { %7379 = vmatmul.mubr.msk.f32.vlgmr.msra.gmra.mxu1 %vm99_vm1, %v3922_v52  ;;  %7386 = vmatmul.mubr.msk.f32.vlgmr.msra.gmra.mxu0 %vm99_vm1, %v3922_v52 }
 0x9e5   :  { %7388 = vmatprep.subr.mxu1 %v7972_v0  ;;  %7395 = vmatprep.subr.mxu0 %v7972_v0 }
 0x9e6   :  { %7389 = vmatpush3.msra.mxu1 %v8716_v45  ;;  %7396 = vmatpush3.msra.mxu0 %v8718_v43 }
 0x9e7   :  { %7390 = vmatprep.subr.mxu1 %v7972_v0  ;;  %7397 = vmatprep.subr.mxu0 %v7972_v0 }
 0x9e8   :  { %7391 = vmatpush3.msra.mxu1 %v8724_v46  ;;  %7392 = vmatprep.mubr.msk.f32.mxu1 %vm7973_vm2, %v7972_v0 }
 0x9e9   :  { %7398 = vmatpush3.msra.mxu0 %v8728_v47  ;;  %7399 = vmatprep.mubr.msk.f32.mxu0 %vm7973_vm2, %v7972_v0 }
 0x9ea   :  { %7402 = vmatprep.subr.mxu1 %v7972_v0  ;;  %7409 = vmatprep.subr.mxu0 %v7972_v0 }
 0xa9f   :  { %v3993_v53 = vpop.f32.mrf.mxu1  ;;  %v4064_v36 = vpop.f32.mrf.mxu0 }
 0xaa0   :  { %v3997_v37 = vadd.f32 %v3993_v53, %v8782_v1  ;;  %v4068_v38 = vadd.f32 %v4064_v36, %v8784_v2 }
 0xaa1   :  { %v7366_v39 = vpop.f32.mrf.mxu1  ;;  %v7373_v40 = vpop.f32.mrf.mxu0 }
 0xaa2   :  { %v6520_v41 = vmul.f32 -1.442695, %v3997_v37  ;;  %v6519_v44 = vmul.f32 -1.442695, %v4068_v38 }
 0xaa4   :  { %7730 = vpow2.f32 %v6520_v41  ;;  %v4135_v42 = vpop.f32.mrf.mxu1  ;;  %v4206_v54 = vpop.f32.mrf.mxu0 }
 0xaa5   :  { %7732 = vpow2.f32 %v6519_v44  ;;  %v4210_v57 = vadd.f32 %v4206_v54, %v8791_v16  ;;  %v4139_v59 = vadd.f32 %v4135_v42, %v8797_v19 }
 0xaa6   :  { %v7380_v55 = vpop.f32.mrf.mxu1  ;;  %v7387_v56 = vpop.f32.mrf.mxu0 }
 0xaa7   :  { %v6521_v58 = vmul.f32 -1.442695, %v4210_v57 }
 0xaa9   :  { %7734 = vpow2.f32 %v6521_v58 }
 0xaaa   :  { %7736 = vtanh.f32 %v4139_v59 }
 0xab1   :  { %v7731_v60 = vpop.eup %7730 }
 0xab2   :  { %v7733_v61 = vpop.eup %7732  ;;  %v4221_v62 = vadd.f32 1.0, %v7731_v60 }
 0xab3   :  { %v4214_v63 = vadd.f32 1.0, %v7733_v61 }
 0xab4   :  { %7738 = vrcp.f32 %v4221_v62 }
 0xab5   :  { %7740 = vrcp.f32 %v4214_v63 }
 0xab6   :  { %v7735_v3 = vpop.eup %7734 }
 0xab7   :  { %v7737_v4 = vpop.eup %7736  ;;  %v4230_v8 = vadd.f32 1.0, %v7735_v3 }
 0xab9   :  { %7742 = vrcp.f32 %v4230_v8 }
 0xac1   :  { %v7739_v5 = vpop.eup %7738 }
 0xac2   :  { %v7741_v6 = vpop.eup %7740  ;;  %v4225_v7 = vmul.f32 %v7739_v5, %v7737_v4 }
 0xac3   :  { %v4217_v9 = vmul.f32 %v7741_v6, %v3914_v33 }
 0xac5   :  { %v4226_v10 = vadd.f32 %v4225_v7, %v4217_v9 }
 0xac6   :  { %v7743_v11 = vpop.eup %7742 }
 0xac7   :  { %7744 = vtanh.f32 %v4226_v10 }
 0xad4   :  { %v7745_v12 = vpop.eup %7744 }
 0xad5   :  { %v4234_v13 = vmul.f32 %v7745_v12, %v7743_v11 }
 0xad7   :  { %7393 = vmatmul.mubr.msk.f32.vlgmr.msra.gmra.mxu1 %vm99_vm1, %v4234_v13  ;;  %4235 = vst.msk [vmem:[#allocation2 + $0x4] sm:$0x3] %vm94_vm0, %v4234_v13  ;;  %7400 = vmatmul.mubr.msk.f32.vlgmr.msra.gmra.mxu0 %vm99_vm1, %v4234_v13 }
 0xad8   :  { %7403 = vmatpush3.msra.mxu1 %v8738_v48  ;;  %7410 = vmatpush3.msra.mxu0 %v8740_v49 }
 0xad9   :  { %7404 = vmatprep.subr.mxu1 %v7972_v0  ;;  %7411 = vmatprep.subr.mxu0 %v7972_v0 }
 0xada   :  { %7405 = vmatpush3.msra.mxu1 %v8746_v50  ;;  %7406 = vmatprep.mubr.msk.f32.mxu1 %vm7973_vm2, %v7972_v0 }
 0xadb   :  { %7412 = vmatpush3.msra.mxu0 %v8750_v51  ;;  %7413 = vmatprep.mubr.msk.f32.mxu0 %vm7973_vm2, %v7972_v0 }
 0xadc   :  { %7407 = vmatmul.mubr.msk.f32.vlgmr.msra.gmra.mxu1 %vm99_vm1, %v4234_v13  ;;  %7414 = vmatmul.mubr.msk.f32.vlgmr.msra.gmra.mxu0 %vm99_vm1, %v4234_v13 }
 0xadd   :  { %7416 = vmatprep.subr.mxu1 %v7972_v0  ;;  %7423 = vmatprep.subr.mxu0 %v7972_v0 }
 0xade   :  { %7417 = vmatpush3.msra.mxu1 %v8716_v45  ;;  %7424 = vmatpush3.msra.mxu0 %v8718_v43 }
 0xadf   :  { %7418 = vmatprep.subr.mxu1 %v7972_v0  ;;  %7425 = vmatprep.subr.mxu0 %v7972_v0 }
 0xae0   :  { %7419 = vmatpush3.msra.mxu1 %v8724_v46  ;;  %7420 = vmatprep.mubr.msk.f32.mxu1 %vm7973_vm2, %v7972_v0 }
 0xae1   :  { %7426 = vmatpush3.msra.mxu0 %v8728_v47  ;;  %7427 = vmatprep.mubr.msk.f32.mxu0 %vm7973_vm2, %v7972_v0 }
 0xae2   :  { %7430 = vmatprep.subr.mxu1 %v7972_v0  ;;  %7437 = vmatprep.subr.mxu0 %v7972_v0 }
 0xb97   :  { %v4305_v14 = vpop.f32.mrf.mxu1  ;;  %v4376_v15 = vpop.f32.mrf.mxu0 }
 0xb98   :  { %v4309_v17 = vadd.f32 %v4305_v14, %v8782_v1  ;;  %v4380_v18 = vadd.f32 %v4376_v15, %v8784_v2 }
 0xb99   :  { %v7394_v20 = vpop.f32.mrf.mxu1  ;;  %v7401_v21 = vpop.f32.mrf.mxu0 }
 0xb9a   :  { %v6527_v22 = vmul.f32 -1.442695, %v4309_v17  ;;  %v6526_v23 = vmul.f32 -1.442695, %v4380_v18 }
 0xb9c   :  { %7746 = vpow2.f32 %v6527_v22  ;;  %v4447_v24 = vpop.f32.mrf.mxu1  ;;  %v4518_v25 = vpop.f32.mrf.mxu0 }
 0xb9d   :  { %7748 = vpow2.f32 %v6526_v23  ;;  %v4522_v28 = vadd.f32 %v4518_v25, %v8791_v16  ;;  %v4451_v30 = vadd.f32 %v4447_v24, %v8797_v19 }
 0xb9e   :  { %v7408_v26 = vpop.f32.mrf.mxu1  ;;  %v7415_v27 = vpop.f32.mrf.mxu0 }
 0xb9f   :  { %v6528_v29 = vmul.f32 -1.442695, %v4522_v28 }
 0xba1   :  { %7750 = vpow2.f32 %v6528_v29 }
 0xba2   :  { %7752 = vtanh.f32 %v4451_v30 }
 0xba9   :  { %v7747_v31 = vpop.eup %7746 }
 0xbaa   :  { %v7749_v32 = vpop.eup %7748  ;;  %v4533_v33 = vadd.f32 1.0, %v7747_v31 }
 0xbab   :  { %v4526_v34 = vadd.f32 1.0, %v7749_v32 }
 0xbac   :  { %7754 = vrcp.f32 %v4533_v33 }
 0xbad   :  { %7756 = vrcp.f32 %v4526_v34 }
 0xbae   :  { %v7751_v35 = vpop.eup %7750 }
 0xbaf   :  { %v7753_v52 = vpop.eup %7752  ;;  %v4542_v38 = vadd.f32 1.0, %v7751_v35 }
 0xbb1   :  { %7758 = vrcp.f32 %v4542_v38 }
 0xbb9   :  { %v7755_v53 = vpop.eup %7754 }
 0xbba   :  { %v7757_v36 = vpop.eup %7756  ;;  %v4537_v37 = vmul.f32 %v7755_v53, %v7753_v52 }
 0xbbb   :  { %v4529_v39 = vmul.f32 %v7757_v36, %v4226_v10 }
 0xbbd   :  { %v4538_v40 = vadd.f32 %v4537_v37, %v4529_v39 }
 0xbbe   :  { %v7759_v41 = vpop.eup %7758 }
 0xbbf   :  { %7760 = vtanh.f32 %v4538_v40 }
 0xbcc   :  { %v7761_v44 = vpop.eup %7760 }
 0xbcd   :  { %v4546_v42 = vmul.f32 %v7761_v44, %v7759_v41 }
 0xbcf   :  { %7421 = vmatmul.mubr.msk.f32.vlgmr.msra.gmra.mxu1 %vm99_vm1, %v4546_v42  ;;  %4547 = vst.msk [vmem:[#allocation2 + $0x6] sm:$0x3] %vm94_vm0, %v4546_v42  ;;  %7428 = vmatmul.mubr.msk.f32.vlgmr.msra.gmra.mxu0 %vm99_vm1, %v4546_v42 }
 0xbd0   :  { %7431 = vmatpush3.msra.mxu1 %v8738_v48  ;;  %7438 = vmatpush3.msra.mxu0 %v8740_v49 }
 0xbd1   :  { %7432 = vmatprep.subr.mxu1 %v7972_v0  ;;  %7439 = vmatprep.subr.mxu0 %v7972_v0 }
 0xbd2   :  { %7433 = vmatpush3.msra.mxu1 %v8746_v50  ;;  %7434 = vmatprep.mubr.msk.f32.mxu1 %vm7973_vm2, %v7972_v0 }
 0xbd3   :  { %7440 = vmatpush3.msra.mxu0 %v8750_v51  ;;  %7441 = vmatprep.mubr.msk.f32.mxu0 %vm7973_vm2, %v7972_v0 }
 0xbd4   :  { %7435 = vmatmul.mubr.msk.f32.vlgmr.msra.gmra.mxu1 %vm99_vm1, %v4546_v42  ;;  %7442 = vmatmul.mubr.msk.f32.vlgmr.msra.gmra.mxu0 %vm99_vm1, %v4546_v42 }
 0xbd5   :  { %7444 = vmatprep.subr.mxu1 %v7972_v0  ;;  %7451 = vmatprep.subr.mxu0 %v7972_v0 }
 0xbd6   :  { %7445 = vmatpush3.msra.mxu1 %v8716_v45  ;;  %7452 = vmatpush3.msra.mxu0 %v8718_v43 }
 0xbd7   :  { %7446 = vmatprep.subr.mxu1 %v7972_v0  ;;  %7453 = vmatprep.subr.mxu0 %v7972_v0 }
 0xbd8   :  { %7447 = vmatpush3.msra.mxu1 %v8724_v46  ;;  %7448 = vmatprep.mubr.msk.f32.mxu1 %vm7973_vm2, %v7972_v0 }
 0xbd9   :  { %7454 = vmatpush3.msra.mxu0 %v8728_v47  ;;  %7455 = vmatprep.mubr.msk.f32.mxu0 %vm7973_vm2, %v7972_v0 }
 0xbda   :  { %7458 = vmatprep.subr.mxu1 %v7972_v0  ;;  %7465 = vmatprep.subr.mxu0 %v7972_v0 }
 0xc8f   :  { %v4617_v54 = vpop.f32.mrf.mxu1  ;;  %v4688_v55 = vpop.f32.mrf.mxu0 }
 0xc90   :  { %v4621_v56 = vadd.f32 %v4617_v54, %v8782_v1  ;;  %v4692_v57 = vadd.f32 %v4688_v55, %v8784_v2 }
 0xc91   :  { %v7422_v58 = vpop.f32.mrf.mxu1  ;;  %v7429_v59 = vpop.f32.mrf.mxu0 }
 0xc92   :  { %v6534_v60 = vmul.f32 -1.442695, %v4621_v56  ;;  %v6533_v61 = vmul.f32 -1.442695, %v4692_v57 }
 0xc94   :  { %7762 = vpow2.f32 %v6534_v60  ;;  %v4759_v62 = vpop.f32.mrf.mxu1  ;;  %v4830_v63 = vpop.f32.mrf.mxu0 }
 0xc95   :  { %7764 = vpow2.f32 %v6533_v61  ;;  %v4834_v5 = vadd.f32 %v4830_v63, %v8791_v16  ;;  %v4763_v7 = vadd.f32 %v4759_v62, %v8797_v19 }
 0xc96   :  { %v7436_v3 = vpop.f32.mrf.mxu1  ;;  %v7443_v4 = vpop.f32.mrf.mxu0 }
 0xc97   :  { %v6535_v6 = vmul.f32 -1.442695, %v4834_v5 }
 0xc99   :  { %7766 = vpow2.f32 %v6535_v6 }
 0xc9a   :  { %7768 = vtanh.f32 %v4763_v7 }
 0xca1   :  { %v7763_v8 = vpop.eup %7762 }
 0xca2   :  { %v7765_v9 = vpop.eup %7764  ;;  %v4845_v10 = vadd.f32 1.0, %v7763_v8 }
 0xca3   :  { %v4838_v11 = vadd.f32 1.0, %v7765_v9 }
 0xca4   :  { %7770 = vrcp.f32 %v4845_v10 }
 0xca5   :  { %7772 = vrcp.f32 %v4838_v11 }
 0xca6   :  { %v7767_v12 = vpop.eup %7766 }
 0xca7   :  { %v7769_v13 = vpop.eup %7768  ;;  %v4854_v18 = vadd.f32 1.0, %v7767_v12 }
 0xca9   :  { %7774 = vrcp.f32 %v4854_v18 }
 0xcb1   :  { %v7771_v14 = vpop.eup %7770 }
 0xcb2   :  { %v7773_v15 = vpop.eup %7772  ;;  %v4849_v17 = vmul.f32 %v7771_v14, %v7769_v13 }
 0xcb3   :  { %v4841_v20 = vmul.f32 %v7773_v15, %v4538_v40 }
 0xcb5   :  { %v4850_v21 = vadd.f32 %v4849_v17, %v4841_v20 }
 0xcb6   :  { %v7775_v22 = vpop.eup %7774 }
 0xcb7   :  { %7776 = vtanh.f32 %v4850_v21 }
 0xcc4   :  { %v7777_v23 = vpop.eup %7776 }
 0xcc5   :  { %v4858_v24 = vmul.f32 %v7777_v23, %v7775_v22 }
 0xcc7   :  { %7449 = vmatmul.mubr.msk.f32.vlgmr.msra.gmra.mxu1 %vm99_vm1, %v4858_v24  ;;  %4859 = vst.msk [vmem:[#allocation2 + $0x8] sm:$0x3] %vm94_vm0, %v4858_v24  ;;  %7456 = vmatmul.mubr.msk.f32.vlgmr.msra.gmra.mxu0 %vm99_vm1, %v4858_v24 }
 0xcc8   :  { %7459 = vmatpush3.msra.mxu1 %v8738_v48  ;;  %7466 = vmatpush3.msra.mxu0 %v8740_v49 }
 0xcc9   :  { %7460 = vmatprep.subr.mxu1 %v7972_v0  ;;  %7467 = vmatprep.subr.mxu0 %v7972_v0 }
 0xcca   :  { %7461 = vmatpush3.msra.mxu1 %v8746_v50  ;;  %7462 = vmatprep.mubr.msk.f32.mxu1 %vm7973_vm2, %v7972_v0 }
 0xccb   :  { %7468 = vmatpush3.msra.mxu0 %v8750_v51  ;;  %7469 = vmatprep.mubr.msk.f32.mxu0 %vm7973_vm2, %v7972_v0 }
 0xccc   :  { %7463 = vmatmul.mubr.msk.f32.vlgmr.msra.gmra.mxu1 %vm99_vm1, %v4858_v24  ;;  %7470 = vmatmul.mubr.msk.f32.vlgmr.msra.gmra.mxu0 %vm99_vm1, %v4858_v24 }
 0xccd   :  { %7472 = vmatprep.subr.mxu1 %v7972_v0  ;;  %7479 = vmatprep.subr.mxu0 %v7972_v0 }
 0xcce   :  { %7473 = vmatpush3.msra.mxu1 %v8716_v45  ;;  %7480 = vmatpush3.msra.mxu0 %v8718_v43 }
 0xccf   :  { %7474 = vmatprep.subr.mxu1 %v7972_v0  ;;  %7481 = vmatprep.subr.mxu0 %v7972_v0 }
 0xcd0   :  { %7475 = vmatpush3.msra.mxu1 %v8724_v46  ;;  %7476 = vmatprep.mubr.msk.f32.mxu1 %vm7973_vm2, %v7972_v0 }
 0xcd1   :  { %7482 = vmatpush3.msra.mxu0 %v8728_v47  ;;  %7483 = vmatprep.mubr.msk.f32.mxu0 %vm7973_vm2, %v7972_v0 }
 0xcd2   :  { %7486 = vmatprep.subr.mxu1 %v7972_v0  ;;  %7493 = vmatprep.subr.mxu0 %v7972_v0 }
 0xd87   :  { %v4929_v25 = vpop.f32.mrf.mxu1  ;;  %v5000_v26 = vpop.f32.mrf.mxu0 }
 0xd88   :  { %v4933_v27 = vadd.f32 %v4929_v25, %v8782_v1  ;;  %v5004_v28 = vadd.f32 %v5000_v26, %v8784_v2 }
 0xd89   :  { %v7450_v29 = vpop.f32.mrf.mxu1  ;;  %v7457_v30 = vpop.f32.mrf.mxu0 }
 0xd8a   :  { %v6541_v31 = vmul.f32 -1.442695, %v4933_v27  ;;  %v6540_v32 = vmul.f32 -1.442695, %v5004_v28 }
 0xd8c   :  { %7778 = vpow2.f32 %v6541_v31  ;;  %v5071_v33 = vpop.f32.mrf.mxu1  ;;  %v5142_v34 = vpop.f32.mrf.mxu0 }
 0xd8d   :  { %7780 = vpow2.f32 %v6540_v32  ;;  %v5146_v53 = vadd.f32 %v5142_v34, %v8791_v16  ;;  %v5075_v37 = vadd.f32 %v5071_v33, %v8797_v19 }
 0xd8e   :  { %v7464_v35 = vpop.f32.mrf.mxu1  ;;  %v7471_v52 = vpop.f32.mrf.mxu0 }
 0xd8f   :  { %v6542_v36 = vmul.f32 -1.442695, %v5146_v53 }
 0xd91   :  { %7782 = vpow2.f32 %v6542_v36 }
 0xd92   :  { %7784 = vtanh.f32 %v5075_v37 }
 0xd99   :  { %v7779_v38 = vpop.eup %7778 }
 0xd9a   :  { %v7781_v39 = vpop.eup %7780  ;;  %v5157_v40 = vadd.f32 1.0, %v7779_v38 }
 0xd9b   :  { %v5150_v41 = vadd.f32 1.0, %v7781_v39 }
 0xd9c   :  { %7786 = vrcp.f32 %v5157_v40 }
 0xd9d   :  { %7788 = vrcp.f32 %v5150_v41 }
 0xd9e   :  { %v7783_v44 = vpop.eup %7782 }
 0xd9f   :  { %v7785_v42 = vpop.eup %7784  ;;  %v5166_v57 = vadd.f32 1.0, %v7783_v44 }
 0xda1   :  { %7790 = vrcp.f32 %v5166_v57 }
 0xda9   :  { %v7787_v54 = vpop.eup %7786 }
 0xdaa   :  { %v7789_v55 = vpop.eup %7788  ;;  %v5161_v56 = vmul.f32 %v7787_v54, %v7785_v42 }
 0xdab   :  { %v5153_v58 = vmul.f32 %v7789_v55, %v4850_v21 }
 0xdad   :  { %v5162_v59 = vadd.f32 %v5161_v56, %v5153_v58 }
 0xdae   :  { %v7791_v60 = vpop.eup %7790 }
 0xdaf   :  { %7792 = vtanh.f32 %v5162_v59 }
 0xdbc   :  { %v7793_v61 = vpop.eup %7792 }
 0xdbd   :  { %v5170_v62 = vmul.f32 %v7793_v61, %v7791_v60 }
 0xdbf   :  { %5171 = vst.msk [vmem:[#allocation2 + $0xa] sm:$0x3] %vm94_vm0, %v5170_v62  ;;  %7477 = vmatmul.mubr.msk.f32.vlgmr.msra.gmra.mxu1 %vm99_vm1, %v5170_v62  ;;  %7484 = vmatmul.mubr.msk.f32.vlgmr.msra.gmra.mxu0 %vm99_vm1, %v5170_v62 }
 0xdc0   :  { %7487 = vmatpush3.msra.mxu1 %v8738_v48  ;;  %7494 = vmatpush3.msra.mxu0 %v8740_v49 }
 0xdc1   :  { %7488 = vmatprep.subr.mxu1 %v7972_v0  ;;  %7495 = vmatprep.subr.mxu0 %v7972_v0 }
 0xdc2   :  { %7489 = vmatpush3.msra.mxu1 %v8746_v50  ;;  %7490 = vmatprep.mubr.msk.f32.mxu1 %vm7973_vm2, %v7972_v0 }
 0xdc3   :  { %7496 = vmatpush3.msra.mxu0 %v8750_v51  ;;  %7497 = vmatprep.mubr.msk.f32.mxu0 %vm7973_vm2, %v7972_v0 }
 0xdc4   :  { %7491 = vmatmul.mubr.msk.f32.vlgmr.msra.gmra.mxu1 %vm99_vm1, %v5170_v62  ;;  %7498 = vmatmul.mubr.msk.f32.vlgmr.msra.gmra.mxu0 %vm99_vm1, %v5170_v62 }
 0xdc5   :  { %7500 = vmatprep.subr.mxu1 %v7972_v0  ;;  %7507 = vmatprep.subr.mxu0 %v7972_v0 }
 0xdc6   :  { %7501 = vmatpush3.msra.mxu1 %v8716_v45  ;;  %7508 = vmatpush3.msra.mxu0 %v8718_v43 }
 0xdc7   :  { %7502 = vmatprep.subr.mxu1 %v7972_v0  ;;  %7509 = vmatprep.subr.mxu0 %v7972_v0 }
 0xdc8   :  { %7503 = vmatpush3.msra.mxu1 %v8724_v46  ;;  %7504 = vmatprep.mubr.msk.f32.mxu1 %vm7973_vm2, %v7972_v0 }
 0xdc9   :  { %7510 = vmatpush3.msra.mxu0 %v8728_v47  ;;  %7511 = vmatprep.mubr.msk.f32.mxu0 %vm7973_vm2, %v7972_v0 }
 0xdca   :  { %7514 = vmatprep.subr.mxu1 %v7972_v0  ;;  %7521 = vmatprep.subr.mxu0 %v7972_v0 }
 0xe7f   :  { %v5241_v63 = vpop.f32.mrf.mxu1  ;;  %v5312_v3 = vpop.f32.mrf.mxu0 }
 0xe80   :  { %v5245_v4 = vadd.f32 %v5241_v63, %v8782_v1  ;;  %v5316_v5 = vadd.f32 %v5312_v3, %v8784_v2 }
 0xe81   :  { %v7478_v6 = vpop.f32.mrf.mxu1  ;;  %v7485_v7 = vpop.f32.mrf.mxu0 }
 0xe82   :  { %v6548_v8 = vmul.f32 -1.442695, %v5245_v4  ;;  %v6547_v9 = vmul.f32 -1.442695, %v5316_v5  ;;  %v6111_v7 = vld [vmem:[#allocation10 + $0x8] sm:$0xff] }
 0xe84   :  { %7794 = vpow2.f32 %v6548_v8  ;;  %v5383_v10 = vpop.f32.mrf.mxu1  ;;  %v5454_v11 = vpop.f32.mrf.mxu0  ;;  %v6108_v8 = vld [vmem:[#allocation2] sm:$0xff] }
 0xe85   :  { %7796 = vpow2.f32 %v6547_v9  ;;  %v5458_v14 = vadd.f32 %v5454_v11, %v8791_v16  ;;  %v5387_v17 = vadd.f32 %v5383_v10, %v8797_v19  ;;  %v6283_v9 = vld [vmem:[#allocation10 + $0x28] sm:$0xff] }
 0xe86   :  { %v7492_v12 = vpop.f32.mrf.mxu1  ;;  %v7499_v13 = vpop.f32.mrf.mxu0 }
 0xe87   :  { %v6549_v15 = vmul.f32 -1.442695, %v5458_v14 }
 0xe89   :  { %7798 = vpow2.f32 %v6549_v15 }
 0xe8a   :  { %7800 = vtanh.f32 %v5387_v17 }
 0xe91   :  { %v7795_v18 = vpop.eup %7794 }
 0xe92   :  { %v7797_v20 = vpop.eup %7796  ;;  %v5469_v21 = vadd.f32 1.0, %v7795_v18 }
 0xe93   :  { %v5462_v22 = vadd.f32 1.0, %v7797_v20 }
 0xe94   :  { %7802 = vrcp.f32 %v5469_v21 }
 0xe95   :  { %7804 = vrcp.f32 %v5462_v22 }
 0xe96   :  { %v7799_v23 = vpop.eup %7798 }
 0xe97   :  { %v7801_v24 = vpop.eup %7800  ;;  %v5478_v28 = vadd.f32 1.0, %v7799_v23 }
 0xe99   :  { %7806 = vrcp.f32 %v5478_v28 }
 0xea1   :  { %v7803_v25 = vpop.eup %7802 }
 0xea2   :  { %v7805_v26 = vpop.eup %7804  ;;  %v5473_v27 = vmul.f32 %v7803_v25, %v7801_v24 }
 0xea3   :  { %v5465_v29 = vmul.f32 %v7805_v26, %v5162_v59 }
 0xea5   :  { %v5474_v30 = vadd.f32 %v5473_v27, %v5465_v29 }
 0xea6   :  { %v7807_v31 = vpop.eup %7806 }
 0xea7   :  { %7808 = vtanh.f32 %v5474_v30 }
 0xeb4   :  { %v7809_v32 = vpop.eup %7808 }
 0xeb5   :  { %v5482_v33 = vmul.f32 %v7809_v32, %v7807_v31 }
 0xeb7   :  { %5483 = vst.msk [vmem:[#allocation2 + $0xc] sm:$0x3] %vm94_vm0, %v5482_v33  ;;  %7505 = vmatmul.mubr.msk.f32.vlgmr.msra.gmra.mxu1 %vm99_vm1, %v5482_v33  ;;  %7512 = vmatmul.mubr.msk.f32.vlgmr.msra.gmra.mxu0 %vm99_vm1, %v5482_v33 }
 0xeb8   :  { %7515 = vmatpush3.msra.mxu1 %v8738_v48  ;;  %7522 = vmatpush3.msra.mxu0 %v8740_v49 }
 0xeb9   :  { %7516 = vmatprep.subr.mxu1 %v7972_v0  ;;  %7523 = vmatprep.subr.mxu0 %v7972_v0 }
 0xeba   :  { %7517 = vmatpush3.msra.mxu1 %v8746_v50  ;;  %7518 = vmatprep.mubr.msk.f32.mxu1 %vm7973_vm2, %v7972_v0 }
 0xebb   :  { %7524 = vmatpush3.msra.mxu0 %v8750_v51  ;;  %7525 = vmatprep.mubr.msk.f32.mxu0 %vm7973_vm2, %v7972_v0 }
 0xebc   :  { %7519 = vmatmul.mubr.msk.f32.vlgmr.msra.gmra.mxu1 %vm99_vm1, %v5482_v33  ;;  %7526 = vmatmul.mubr.msk.f32.vlgmr.msra.gmra.mxu0 %vm99_vm1, %v5482_v33 }
 0xebd   :  { %7528 = vmatprep.subr.mxu1 %v7972_v0  ;;  %7535 = vmatprep.subr.mxu0 %v7972_v0 }
 0xebe   :  { %7529 = vmatpush3.msra.mxu1 %v8716_v45  ;;  %7536 = vmatpush3.msra.mxu0 %v8718_v43 }
 0xebf   :  { %7530 = vmatprep.subr.mxu1 %v7972_v0  ;;  %7537 = vmatprep.subr.mxu0 %v7972_v0 }
 0xec0   :  { %7531 = vmatpush3.msra.mxu1 %v8724_v46  ;;  %7532 = vmatprep.mubr.msk.f32.mxu1 %vm7973_vm2, %v7972_v0 }
 0xec1   :  { %7538 = vmatpush3.msra.mxu0 %v8728_v47  ;;  %7539 = vmatprep.mubr.msk.f32.mxu0 %vm7973_vm2, %v7972_v0 }
 0xec2   :  { %7542 = vmatprep.subr.mxu1 %v7972_v0  ;;  %7549 = vmatprep.subr.mxu0 %v7972_v0 }
 0xf77   :  { %v5553_v45 = vpop.f32.mrf.mxu1  ;;  %v5624_v43 = vpop.f32.mrf.mxu0 }
 0xf78   :  { %v5557_v34 = vadd.f32 %v5553_v45, %v8782_v1  ;;  %v5628_v35 = vadd.f32 %v5624_v43, %v8784_v2 }
 0xf79   :  { %v7506_v52 = vpop.f32.mrf.mxu1  ;;  %v7513_v46 = vpop.f32.mrf.mxu0 }
 0xf7a   :  { %v6555_v53 = vmul.f32 -1.442695, %v5557_v34  ;;  %v6554_v36 = vmul.f32 -1.442695, %v5628_v35  ;;  %v6282_v46 = vld [vmem:[#allocation10 + $0x20] sm:$0xff] }
 0xf7c   :  { %7810 = vpow2.f32 %v6555_v53  ;;  %v5695_v37 = vpop.f32.mrf.mxu1  ;;  %v5766_v47 = vpop.f32.mrf.mxu0  ;;  %v6279_v53 = vld [vmem:[#allocation2 + $0x4] sm:$0xff] }
 0xf7d   :  { %7812 = vpow2.f32 %v6554_v36  ;;  %v5770_v40 = vadd.f32 %v5766_v47, %v8791_v16  ;;  %v5699_v44 = vadd.f32 %v5695_v37, %v8797_v19 }
 0xf7e   :  { %v7520_v38 = vpop.f32.mrf.mxu1  ;;  %v7527_v39 = vpop.f32.mrf.mxu0 }
 0xf7f   :  { %v6556_v41 = vmul.f32 -1.442695, %v5770_v40 }
 0xf81   :  { %7814 = vpow2.f32 %v6556_v41 }
 0xf82   :  { %7816 = vtanh.f32 %v5699_v44  ;;  %v6570_v44 = vld [vmem:[%s9049_s10] ss:$0 sm:$0xff] }
 0xf89   :  { %v7811_v42 = vpop.eup %7810 }
 0xf8a   :  { %v7813_v54 = vpop.eup %7812  ;;  %v5781_v55 = vadd.f32 1.0, %v7811_v42 }
 0xf8b   :  { %v5774_v56 = vadd.f32 1.0, %v7813_v54 }
 0xf8c   :  { %7818 = vrcp.f32 %v5781_v55 }
 0xf8d   :  { %7820 = vrcp.f32 %v5774_v56 }
 0xf8e   :  { %v7815_v57 = vpop.eup %7814 }
 0xf8f   :  { %v7817_v58 = vpop.eup %7816  ;;  %v5790_v62 = vadd.f32 1.0, %v7815_v57 }
 0xf91   :  { %7822 = vrcp.f32 %v5790_v62 }
 0xf99   :  { %v7819_v59 = vpop.eup %7818 }
 0xf9a   :  { %v7821_v60 = vpop.eup %7820  ;;  %v5785_v61 = vmul.f32 %v7819_v59, %v7817_v58 }
 0xf9b   :  { %v5777_v63 = vmul.f32 %v7821_v60, %v5474_v30 }
 0xf9d   :  { %v8998_v3 = vadd.f32 %v5785_v61, %v5777_v63 }
 0xf9e   :  { %v7823_v4 = vpop.eup %7822 }
 0xf9f   :  { %7824 = vtanh.f32 %v8998_v3 }
 0xfac   :  { %v7825_v5 = vpop.eup %7824 }
 0xfad   :  { %v5794_v6 = vmul.f32 %v7825_v5, %v7823_v4 }
 0xfaf   :  { %5795 = vst.msk [vmem:[#allocation2 + $0xe] sm:$0x3] %vm94_vm0, %v5794_v6  ;;  %7533 = vmatmul.mubr.msk.f32.vlgmr.msra.gmra.mxu1 %vm99_vm1, %v5794_v6  ;;  %7540 = vmatmul.mubr.msk.f32.vlgmr.msra.gmra.mxu0 %vm99_vm1, %v5794_v6 }
 0xfb0   :  { %7543 = vmatpush3.msra.mxu1 %v8738_v48  ;;  %7550 = vmatpush3.msra.mxu0 %v8740_v49  ;;  %v6112_v48 = vld [vmem:[#allocation2 + $0x2] sm:$0xff]  ;;  %v6110_v49 = vld [vmem:[#allocation10] sm:$0xff] }
 0xfb1   :  { %7544 = vmatprep.subr.mxu1 %v7972_v0  ;;  %7551 = vmatprep.subr.mxu0 %v7972_v0 }
 0xfb2   :  { %7545 = vmatpush3.msra.mxu1 %v8746_v50  ;;  %7546 = vmatprep.mubr.msk.f32.mxu1 %vm7973_vm2, %v7972_v0 }
 0xfb3   :  { %7552 = vmatpush3.msra.mxu0 %v8750_v51  ;;  %7553 = vmatprep.mubr.msk.f32.mxu0 %vm7973_vm2, %v7972_v0  ;;  %v6116_v51 = vld [vmem:[#allocation10 + $0x18] sm:$0xff]  ;;  %v6115_v0 = vld [vmem:[#allocation10 + $0x10] sm:$0xff] }
 0xfb4   :  { %7547 = vmatmul.mubr.msk.f32.vlgmr.msra.gmra.mxu1 %vm99_vm1, %v5794_v6  ;;  %7554 = vmatmul.mubr.msk.f32.vlgmr.msra.gmra.mxu0 %vm99_vm1, %v5794_v6 }
 0xfb5   :  { %7563 = vmatprep.subr.mxu0 %v6111_v7  ;;  %7560 = vmatprep.mubr.msk.f32.mxu1 %vm99_vm1, %v6112_v48 }
 0xfb6   :  { %7564 = vmatpush3.msra.mxu0 %v6111_v7  ;;  %7567 = vmatprep.mubr.msk.f32.mxu0 %vm99_vm1, %v6108_v8  ;;  %v6109_v50 = vld [vmem:[#allocation2 + $0x8] sm:$0xff] }
 0xfb7   :  { %7565 = vmatprep.subr.mxu0 %v6110_v49  ;;  %7556 = vmatprep.subr.mxu1 %v6116_v51 }
 0xfb8   :  { %7566 = vmatpush3.msra.mxu0 %v6110_v49  ;;  %7557 = vmatpush3.msra.mxu1 %v6116_v51 }
 0xfb9   :  { %7568 = vmatmul.mubr.msk.f32.vlgmr.msra.gmra.mxu0 %vm99_vm1, %v6109_v50  ;;  %7558 = vmatprep.subr.mxu1 %v6115_v0 }
 0xfba   :  { %7559 = vmatpush3.msra.mxu1 %v6115_v0 }
 0xfbb   :  { %7570 = vmatprep.subr.mxu1 %v6283_v9 }
0x106f   :  { %v5865_v10 = vpop.f32.mrf.mxu1  ;;  %v5936_v11 = vpop.f32.mrf.mxu0 }
0x1070   :  { %v5869_v12 = vadd.f32 %v5865_v10, %v8782_v1  ;;  %v5940_v13 = vadd.f32 %v5936_v11, %v8784_v2 }
0x1071   :  { %v7534_v14 = vpop.f32.mrf.mxu1  ;;  %v7541_v15 = vpop.f32.mrf.mxu0 }
0x1072   :  { %v6562_v17 = vmul.f32 -1.442695, %v5869_v12  ;;  %v6561_v18 = vmul.f32 -1.442695, %v5940_v13 }
0x1074   :  { %7826 = vpow2.f32 %v6562_v17  ;;  %v6007_v20 = vpop.f32.mrf.mxu1  ;;  %v6078_v21 = vpop.f32.mrf.mxu0 }
0x1075   :  { %7828 = vpow2.f32 %v6561_v18  ;;  %v6082_v24 = vadd.f32 %v6078_v21, %v8791_v16  ;;  %v6011_v26 = vadd.f32 %v6007_v20, %v8797_v19 }
0x1076   :  { %v7548_v22 = vpop.f32.mrf.mxu1  ;;  %v7555_v23 = vpop.f32.mrf.mxu0 }
0x1077   :  { %v6563_v25 = vmul.f32 -1.442695, %v6082_v24 }
0x1079   :  { %7830 = vpow2.f32 %v6563_v25  ;;  %v7569_v37 = vpop.f32.mrf.mxu0 }
0x107a   :  { %7832 = vtanh.f32 %v6011_v26 }
0x107b   :  { %v6270_v40 = vpop.f32.mrf.mxu0 }
0x1081   :  { %v7827_v27 = vpop.eup %7826 }
0x1082   :  { %v7829_v28 = vpop.eup %7828  ;;  %v6093_v1 = vadd.f32 1.0, %v7827_v27 }
0x1083   :  { %v6086_v2 = vadd.f32 1.0, %v7829_v28 }
0x1084   :  { %7834 = vrcp.f32 %v6093_v1 }
0x1085   :  { %7836 = vrcp.f32 %v6086_v2 }
0x1086   :  { %v7831_v29 = vpop.eup %7830 }
0x1087   :  { %v7833_v30 = vpop.eup %7832  ;;  %v6102_v45 = vadd.f32 1.0, %v7831_v29 }
0x1089   :  { %7838 = vrcp.f32 %v6102_v45 }
0x1091   :  { %v7835_v31 = vpop.eup %7834 }
0x1092   :  { %v7837_v32 = vpop.eup %7836  ;;  %v6097_v33 = vmul.f32 %v7835_v31, %v7833_v30 }
0x1093   :  { %v6089_v43 = vmul.f32 %v7837_v32, %v8998_v3 }
0x1095   :  { %v6098_v16 = vadd.f32 %v6097_v33, %v6089_v43 }
0x1096   :  { %v7839_v19 = vpop.eup %7838 }
0x1097   :  { %7840 = vtanh.f32 %v6098_v16 }
0x10a4   :  { %v7841_v34 = vpop.eup %7840 }
0x10a5   :  { %v6106_v35 = vmul.f32 %v7841_v34, %v7839_v19 }
0x10a7   :  { %6107 = vst.msk [vmem:[#allocation2 + $0x10] sm:$0x3] %vm94_vm0, %v6106_v35 }
0x10ae   :  { %v6113_v52 = vld [vmem:[#allocation2 + $0xa] sm:$0xff] }
0x10af   :  { %7561 = vmatmul.mubr.msk.f32.vlgmr.msra.gmra.mxu1 %vm99_vm1, %v6113_v52  ;;  %v6280_v36 = vld [vmem:[#allocation2 + $0xc] sm:$0xff] }
0x10b0   :  { %7571 = vmatpush3.msra.mxu1 %v6283_v9  ;;  %7574 = vmatprep.mubr.msk.f32.mxu1 %vm99_vm1, %v6279_v53 }
0x10b1   :  { %7572 = vmatprep.subr.mxu1 %v6282_v46 }
0x10b2   :  { %7573 = vmatpush3.msra.mxu1 %v6282_v46 }
0x10b3   :  { %7575 = vmatmul.mubr.msk.f32.vlgmr.msra.gmra.mxu1 %vm99_vm1, %v6280_v36 }
0x116f   :  { %v7562_v47 = vpop.f32.mrf.mxu1 }
0x1170   :  { %v6276_v39 = vadd.f32 %v7569_v37, %v7562_v47 }
0x1171   :  { %v6189_v38 = vpop.f32.mrf.mxu1 }
0x1172   :  { %v6271_v42 = vadd.f32 %v6270_v40, %v6189_v38 }
0x1173   :  { %v7576_v41 = vpop.f32.mrf.mxu1 }
0x1174   :  { %v6366_v54 = vadd.f32 %v7576_v41, %v6276_v39 }
0x1175   :  { %v6356_v55 = vpop.f32.mrf.mxu1 }
0x1176   :  { %v6375_v56 = vadd.f32 %v6570_v44, %v6366_v54  ;;  %v6365_v57 = vadd.f32 %v6356_v55, %v6271_v42 }
0x1178   :  { %6377 = vst.msk [vmem:[#allocation12 + $0x8] sm:$0xff] %vm99_vm1, %v6375_v56  ;;  %v6374_v58 = vadd.f32 %v6570_v44, %v6365_v57 }
0x117a   :  { %6376 = vst.msk [vmem:[#allocation12] sm:$0xff] %vm99_vm1, %v6374_v58 }
0x117b   :  { %7949 = shalt.err (!%p7946_p10)
}
0x117c   :  { %6389 = dma.vmem_to_hbm [thread:$0]  %s6384_s29, 256, %s9050_s11, [#allocation6], %s7968_s22, %s7968_s22, %s7969_s23  }
0x117d   :  { %7964 = dma.done.wait [#allocation6], 256  }
0x117e   :  { %7965 = vsyncadd [#allocation6], 4294967040 }
0x117f   :  { %6393 = vsyncpa [#allocation5], 1 }
0x1180   :  { %6394 = vsyncpa [#allocation8], 1 }
0x1181   :  { %6395 = vsyncpa [#allocation11], 1 }
0x1182   :  { %6396 = vsyncpa [#allocation6], 1 }

</bundles_post_ra>
